<compile_context>
chip_gen: v7x
topology: tpu7x:2x2x1
jax: 0.10.0
libtpu: 0.0.40
codegen_flags: <defaults>
</compile_context>

<pallas_src>
import functools

import jax
import jax.numpy as jnp
from jax import lax
from jax.experimental import pallas as pl
from jax.experimental.pallas import tpu as pltpu

HI = jax.lax.Precision.HIGHEST


# -----------------------------------------------------------------------------
# Fused multi-layer bidirectional LSTM kernel.
# -----------------------------------------------------------------------------
def _make_encoder_kernel(num_layers, T, N, Hd):
    """Build the kernel for static (num_layers, T, N, Hd).

    Ref layout (L = num_layers, G = 4*Hd):
      gx0_ref : (T, N, 2G)        layer-0 x-projected gates  [fwd cols | bwd cols]
      whh_ref : (L, 2Hd, G)       per-layer block-diag recurrent weights
      wih_ref : (L-1, 2Hd, 2G)    per-layer input projections (layers >= 1)
      b_ref   : (L-1, 1, 2G)      per-layer biases            (layers >= 1)
      out_ref : (T, N, 2Hd)       final layer output  [fwd | bwd] per timestep
      x_scr   : (T, N, 2Hd)       inter-layer activations (VMEM scratch)
      gx_scr  : (T, N, 2G)        projected gates for layers >= 1 (VMEM scratch)
    Gate columns within each direction are permuted to [i | f | o | g].
    """
    G = 4 * Hd
    N2 = 2 * N

    def kernel(*refs):
        if num_layers > 1:
            gx0_ref, whh_ref, wih_ref, b_ref, out_ref, x_scr, gx_scr = refs
        else:
            gx0_ref, whh_ref, out_ref = refs
            wih_ref = b_ref = x_scr = gx_scr = None

        # Block-diagonal placement mask, hoisted out of all loops:
        # rows [0:N] (forward) keep lanes [0:Hd], rows [N:2N] keep [Hd:2Hd].
        row = lax.broadcasted_iota(jnp.int32, (N2, 2 * Hd), 0)
        col = lax.broadcasted_iota(jnp.int32, (N2, 2 * Hd), 1)
        bd_mask = ((row < N) == (col < Hd)).astype(jnp.float32)

        def run_layer(gx_ref, whh_bd, dest_ref):
            def step(t, carry):
                h_all, c_all = carry                       # (2N, Hd) each
                rt = T - 1 - t
                # x-gates for both directions stacked on sublanes:
                # rows [0:N] = forward @ time t, rows [N:2N] = backward @ rt.
                gxt = jnp.concatenate(
                    [gx_ref[t][:, :G], gx_ref[rt][:, G:]], axis=0)   # (2N, G)
                # One fused (2N, 2Hd) x (2Hd, G) MXU dot per step.
                h_bd = jnp.concatenate([h_all, h_all], axis=1) * bd_mask
                gates = gxt + jnp.dot(h_bd, whh_bd,
                                      preferred_element_type=jnp.float32)
                # Gate order [i | f | o | g]: sigmoid over 3*Hd lanes,
                # tanh over Hd lanes.
                sg = jax.nn.sigmoid(gates[:, :3 * Hd])
                g_g = jnp.tanh(gates[:, 3 * Hd:])
                c_new = sg[:, Hd:2 * Hd] * c_all + sg[:, :Hd] * g_g
                h_new = sg[:, 2 * Hd:3 * Hd] * jnp.tanh(c_new)
                # Forward hidden -> time t, backward hidden -> time rt.
                dest_ref[t, :, :Hd] = h_new[:N]
                dest_ref[rt, :, Hd:] = h_new[N:]
                return (h_new, c_new)

            z = jnp.zeros((N2, Hd), jnp.float32)           # zero init (PyTorch)
            # Small T: full unroll is fine.  Use partial unroll for long W.
            lax.fori_loop(0, T, step, (z, z), unroll=True)

        for l in range(num_layers):
            if l == 0:
                gx_ref = gx0_ref
            else:
                # In-kernel input projection for layer l (contraction = 2*Hd).
                # Static per-timestep matmuls -> no reshapes / dynamic sublane
                # offsets; all independent of the recurrence chain.
                wih_l = wih_ref[l - 1]                     # (2Hd, 2G)
                b_l = b_ref[l - 1]                         # (1, 2G)
                for tt in range(T):
                    gx_scr[tt] = (jnp.dot(x_scr[tt], wih_l,
                                          preferred_element_type=jnp.float32)
                                  + b_l)
                gx_ref = gx_scr
            dest = out_ref if l == num_layers - 1 else x_scr
            run_layer(gx_ref, whh_ref[l], dest)

    return kernel


# -----------------------------------------------------------------------------
# Parameter preparation (gate reorder [i|f|g|o] -> [i|f|o|g], transpose, stack).
# -----------------------------------------------------------------------------
def _reorder_gate_cols(w):
    hd = w.shape[-1] // 4
    return jnp.concatenate(
        [w[..., :2 * hd], w[..., 3 * hd:], w[..., 2 * hd:3 * hd]], axis=-1)


def _prep_params(params):
    num_layers = len(params)

    def direction(p, d):
        wih = _reorder_gate_cols(p["wih_" + d].T)                    # (in, 4Hd)
        whh = _reorder_gate_cols(p["whh_" + d].T)                    # (Hd, 4Hd)
        b = _reorder_gate_cols((p["bih_" + d] + p["bhh_" + d])[None, :])
        return wih, whh, b

    wih_f, whh_f, b_f = direction(params[0], "f")
    wih_b, whh_b, b_b = direction(params[0], "b")
    prep = {
        "wih0": jnp.concatenate([wih_f, wih_b], axis=1),             # (Din, 2G)
        "b0": jnp.concatenate([b_f, b_b], axis=1),                   # (1, 2G)
    }
    whh_all = [jnp.concatenate([whh_f, whh_b], axis=0)]              # (2Hd, G)
    wih_rest, b_rest = [], []
    for l in range(1, num_layers):
        wf, hf, bf = direction(params[l], "f")
        wb, hb, bb = direction(params[l], "b")
        wih_rest.append(jnp.concatenate([wf, wb], axis=1))           # (2Hd, 2G)
        b_rest.append(jnp.concatenate([bf, bb], axis=1))             # (1, 2G)
        whh_all.append(jnp.concatenate([hf, hb], axis=0))
    prep["whh"] = jnp.stack(whh_all)                                 # (L, 2Hd, G)
    if num_layers > 1:
        prep["wih_rest"] = jnp.stack(wih_rest)                       # (L-1, 2Hd, 2G)
        prep["b_rest"] = jnp.stack(b_rest)                           # (L-1, 1, 2G)
    return prep


# -----------------------------------------------------------------------------
# EncoderBRNN forward (Pallas path).
# -----------------------------------------------------------------------------
def encoder_brnn_pallas(rows, params, num_layers):
    """rows: (H, W, B, 512). Returns (H*W, B, hidden_dim_encoder)."""
    H, W, B, D = rows.shape
    Hd = params[0]["whh_f"].shape[1]
    G = 4 * Hd
    T = W
    N = H * B
    # Pad the folded batch so 2*N fills the 8 sublanes of a vreg.
    N_pad = max(4, ((N + 3) // 4) * 4)

    # Fold rows into batch (weights shared, zero initial state per row).
    x = jnp.transpose(rows, (1, 0, 2, 3)).reshape(T, N, D)
    if N_pad != N:
        x = jnp.pad(x, ((0, 0), (0, N_pad - N), (0, 0)))

    prep = _prep_params(params)

    # Layer-0 input projection (Din = 512) stays in XLA: one well-shaped
    # (T*N, 512) x (512, 2G) matmul with both directions + biases fused.
    gx0 = (jnp.dot(x.reshape(T * N_pad, D), prep["wih0"], precision=HI)
           + prep["b0"]).reshape(T, N_pad, 2 * G)

    kernel = _make_encoder_kernel(num_layers, T, N_pad, Hd)

    in_specs = [
        pl.BlockSpec((T, N_pad, 2 * G), lambda i: (0, 0, 0)),        # gx0
        pl.BlockSpec((num_layers, 2 * Hd, G), lambda i: (0, 0, 0)),  # whh
    ]
    inputs = [gx0, prep["whh"]]
    scratch_shapes = []
    if num_layers > 1:
        in_specs += [
            pl.BlockSpec((num_layers - 1, 2 * Hd, 2 * G), lambda i: (0, 0, 0)),
            pl.BlockSpec((num_layers - 1, 1, 2 * G), lambda i: (0, 0, 0)),
        ]
        inputs += [prep["wih_rest"], prep["b_rest"]]
        scratch_shapes = [
            pltpu.VMEM((T, N_pad, 2 * Hd), jnp.float32),   # inter-layer activations
            pltpu.VMEM((T, N_pad, 2 * G), jnp.float32),    # projected gates, l >= 1
        ]

    out = pl.pallas_call(
        kernel,
        out_shape=jax.ShapeDtypeStruct((T, N_pad, 2 * Hd), jnp.float32),
        grid_spec=pltpu.PrefetchScalarGridSpec(
            num_scalar_prefetch=0,
            grid=(1,),                       # whole (tiny) problem resident in VMEM
            in_specs=in_specs,
            out_specs=pl.BlockSpec((T, N_pad, 2 * Hd), lambda i: (0, 0, 0)),
            scratch_shapes=scratch_shapes,
        ),
        compiler_params=pltpu.CompilerParams(
            dimension_semantics=("arbitrary",)),
    )(*inputs)

    out = out[:, :N]                                       # drop padded batch rows
    hid = out.shape[-1]
    out = out.reshape(T, H, B, hid)
    out = jnp.transpose(out, (1, 0, 2, 3))
    return out.reshape(H * W, B, hid)                      # == torch.cat(rows, 0)


# -----------------------------------------------------------------------------
# Pure-JAX reference, structured like the PyTorch module (per-row loop,
# flip-based backward direction, standard [i,f,g,o] gate order).
# -----------------------------------------------------------------------------
def _lstm_dir_ref(x, wih_t, whh_t, b):
    N = x.shape[1]
    Hd = whh_t.shape[0]

    def step(carry, x_t):
        h, c = carry
        gates = (jnp.dot(x_t, wih_t, precision=HI)
                 + jnp.dot(h, whh_t, precision=HI) + b)
        i_g = jax.nn.sigmoid(gates[:, 0 * Hd:1 * Hd])
        f_g = jax.nn.sigmoid(gates[:, 1 * Hd:2 * Hd])
        g_g = jnp.tanh(gates[:, 2 * Hd:3 * Hd])
        o_g = jax.nn.sigmoid(gates[:, 3 * Hd:4 * Hd])
        c = f_g * c + i_g * g_g
        h = o_g * jnp.tanh(c)
        return (h, c), h

    init = (jnp.zeros((N, Hd), jnp.float32), jnp.zeros((N, Hd), jnp.float32))
    _, hs = lax.scan(step, init, x)
    return hs


def bilstm_layer_ref(x, p):
    fwd = _lstm_dir_ref(x, p["wih_f"].T, p["whh_f"].T,
                        (p["bih_f"] + p["bhh_f"])[None])
    bwd = jnp.flip(_lstm_dir_ref(jnp.flip(x, 0), p["wih_b"].T, p["whh_b"].T,
                                 (p["bih_b"] + p["bhh_b"])[None]), 0)
    return jnp.concatenate([fwd, bwd], axis=-1)


def encoder_brnn_ref(rows, params, num_layers):
    outs = []
    for r in range(rows.shape[0]):
        h = rows[r]
        for l in range(num_layers):
            h = bilstm_layer_ref(h, params[l])
        outs.append(h)
    return jnp.concatenate(outs, axis=0)


# -----------------------------------------------------------------------------
# Deterministic PyTorch-style parameter init: uniform(-1/sqrt(Hd), 1/sqrt(Hd)).
# -----------------------------------------------------------------------------
def init_params(key, num_layers, input_dim, hd):
    k = 1.0 / jnp.sqrt(jnp.float32(hd))
    params = []
    for l in range(num_layers):
        in_dim = input_dim if l == 0 else 2 * hd
        layer = {}
        for d in ("f", "b"):
            key, k1, k2, k3, k4 = jax.random.split(key, 5)
            layer["wih_" + d] = jax.random.uniform(k1, (4 * hd, in_dim),
                                                   jnp.float32, -k, k)
            layer["whh_" + d] = jax.random.uniform(k2, (4 * hd, hd),
                                                   jnp.float32, -k, k)
            layer["bih_" + d] = jax.random.uniform(k3, (4 * hd,),
                                                   jnp.float32, -k, k)
            layer["bhh_" + d] = jax.random.uniform(k4, (4 * hd,),
                                                   jnp.float32, -k, k)
        params.append(layer)
    return params


if __name__ == "__main__":
    # Small, module-consistent shapes.
    NUM_LAYERS = 2          # num_layers_encoder
    HIDDEN_DIM = 64         # hidden_dim_encoder  -> per-direction Hd = 32
    INPUT_DIM = 512         # output_channels_cnn (fixed by the module)
    H_ROWS = 2              # number of feature rows
    W_SEQ = 8               # sequence length per row
    BATCH = 2

    hd = HIDDEN_DIM // 2

    key = jax.random.PRNGKey(0)
    key, pkey, xkey = jax.random.split(key, 3)
    params = init_params(pkey, NUM_LAYERS, INPUT_DIM, hd)

    # list_rows as a stacked array: (H, W, B, 512), time-major per row.
    rows = jax.random.normal(xkey, (H_ROWS, W_SEQ, BATCH, INPUT_DIM),
                             dtype=jnp.float32)

    fwd_pallas = jax.jit(functools.partial(encoder_brnn_pallas,
                                           num_layers=NUM_LAYERS))
    fwd_ref = jax.jit(functools.partial(encoder_brnn_ref,
                                        num_layers=NUM_LAYERS))

    out = jax.block_until_ready(fwd_pallas(rows, params))
    ref = jax.block_until_ready(fwd_ref(rows, params))

    assert out.shape == (H_ROWS * W_SEQ, BATCH, HIDDEN_DIM), out.shape
    max_err = float(jnp.max(jnp.abs(out - ref)))
    assert jnp.allclose(out, ref, atol=2e-4, rtol=2e-4), max_err

    print("KERNEL_OK")
</pallas_src>

<mosaic_0001>
module attributes {stable_mosaic.version = 11 : i64} {
  func.func @kernel(%arg0: i32, %arg1: memref<8x4x256xf32, #tpu.memory_space<vmem>>, %arg2: memref<2x64x128xf32, #tpu.memory_space<vmem>>, %arg3: memref<1x64x256xf32, #tpu.memory_space<vmem>>, %arg4: memref<1x1x256xf32, #tpu.memory_space<vmem>>, %arg5: memref<8x4x64xf32, #tpu.memory_space<vmem>>, %arg6: memref<8x4x64xf32, #tpu.memory_space<vmem>>, %arg7: memref<8x4x256xf32, #tpu.memory_space<vmem>>) attributes {dimension_semantics = [#tpu.dimension_semantics<arbitrary>], iteration_bounds = array<i64: 1>, scalar_prefetch = 0 : i64, scratch_operands = 2 : i64, tpu.core_type = #tpu.core_type<tc>, window_params = [{pipeline_mode = #tpu.pipeline_mode<synchronous>, transform_indices = @transform_0, window_bounds = array<i64: 8, 4, 256>}, {pipeline_mode = #tpu.pipeline_mode<synchronous>, transform_indices = @transform_1, window_bounds = array<i64: 2, 64, 128>}, {pipeline_mode = #tpu.pipeline_mode<synchronous>, transform_indices = @transform_2, window_bounds = array<i64: 1, 64, 256>}, {pipeline_mode = #tpu.pipeline_mode<synchronous>, transform_indices = @transform_3, window_bounds = array<i64: 1, 1, 256>}, {pipeline_mode = #tpu.pipeline_mode<synchronous>, transform_indices = @transform_4, window_bounds = array<i64: 8, 4, 64>}]} {
    %0 = tpu.iota {dimensions = array<i32: 0>} : vector<8x64xi32>
    %1 = tpu.iota {dimensions = array<i32: 1>} : vector<8x64xi32>
    %c4_i32 = arith.constant 4 : i32
    %2 = vector.broadcast %c4_i32 : i32 to vector<8x64xi32>
    %3 = arith.cmpi slt, %0, %2 : vector<8x64xi32>
    %c32_i32 = arith.constant 32 : i32
    %4 = vector.broadcast %c32_i32 : i32 to vector<8x64xi32>
    %5 = arith.cmpi slt, %1, %4 : vector<8x64xi32>
    %6 = arith.xori %3, %5 : vector<8x64xi1>
    %cst = arith.constant dense<true> : vector<8x64xi1>
    %7 = arith.xori %6, %cst : vector<8x64xi1>
    %8 = arith.extui %7 : vector<8x64xi1> to vector<8x64xi32>
    %9 = arith.sitofp %8 : vector<8x64xi32> to vector<8x64xf32>
    %c0 = arith.constant 0 : index
    %c0_0 = arith.constant 0 : index
    %c0_1 = arith.constant 0 : index
    %10 = vector.load %arg2[%c0, %c0_0, %c0_1] : memref<2x64x128xf32, #tpu.memory_space<vmem>>, vector<1x64x128xf32>
    %11 = vector.shape_cast %10 : vector<1x64x128xf32> to vector<64x128xf32>
    %cst_2 = arith.constant 0.000000e+00 : f32
    %12 = vector.broadcast %cst_2 : f32 to vector<8x32xf32>
    %c0_i32 = arith.constant 0 : i32
    %c7_i32 = arith.constant 7 : i32
    %13 = arith.subi %c7_i32, %c0_i32 : i32
    %14 = arith.index_cast %c0_i32 : i32 to index
    %c0_3 = arith.constant 0 : index
    %c0_4 = arith.constant 0 : index
    %15 = vector.load %arg1[%14, %c0_3, %c0_4] : memref<8x4x256xf32, #tpu.memory_space<vmem>>, vector<1x4x256xf32>
    %16 = vector.shape_cast %15 : vector<1x4x256xf32> to vector<4x256xf32>
    %17 = vector.extract_strided_slice %16 {offsets = [0, 0], sizes = [4, 128], strides = [1, 1]} : vector<4x256xf32> to vector<4x128xf32>
    %18 = arith.index_cast %13 : i32 to index
    %c0_5 = arith.constant 0 : index
    %c0_6 = arith.constant 0 : index
    %19 = vector.load %arg1[%18, %c0_5, %c0_6] : memref<8x4x256xf32, #tpu.memory_space<vmem>>, vector<1x4x256xf32>
    %20 = vector.shape_cast %19 : vector<1x4x256xf32> to vector<4x256xf32>
    %21 = vector.extract_strided_slice %20 {offsets = [0, 128], sizes = [4, 128], strides = [1, 1]} : vector<4x256xf32> to vector<4x128xf32>
    %22 = tpu.concatenate %17, %21 in 0 : vector<4x128xf32>, vector<4x128xf32> -> vector<8x128xf32>
    %23 = tpu.concatenate %12, %12 in 1 : vector<8x32xf32>, vector<8x32xf32> -> vector<8x64xf32>
    %24 = arith.mulf %23, %9 : vector<8x64xf32>
    %cst_7 = arith.constant dense<0.000000e+00> : vector<8x128xf32>
    %25 = tpu.matmul %24, %11, %cst_7 {dimension_numbers = #tpu.dot_dimension_numbers<[1], [0], [0], [1], [0, 0, 1, 1], [], []>} : vector<8x64xf32>, vector<64x128xf32>, vector<8x128xf32> -> vector<8x128xf32>
    %26 = arith.addf %22, %25 : vector<8x128xf32>
    %27 = vector.extract_strided_slice %26 {offsets = [0, 0], sizes = [8, 96], strides = [1, 1]} : vector<8x128xf32> to vector<8x96xf32>
    %28 = arith.negf %27 : vector<8x96xf32>
    %29 = math.exp %28 : vector<8x96xf32>
    %cst_8 = arith.constant 1.000000e+00 : f32
    %30 = vector.broadcast %cst_8 : f32 to vector<8x96xf32>
    %31 = arith.addf %30, %29 : vector<8x96xf32>
    %32 = arith.divf %30, %31 : vector<8x96xf32>
    %33 = vector.extract_strided_slice %26 {offsets = [0, 96], sizes = [8, 32], strides = [1, 1]} : vector<8x128xf32> to vector<8x32xf32>
    %34 = math.tanh %33 : vector<8x32xf32>
    %35 = vector.extract_strided_slice %32 {offsets = [0, 32], sizes = [8, 32], strides = [1, 1]} : vector<8x96xf32> to vector<8x32xf32>
    %36 = arith.mulf %35, %12 : vector<8x32xf32>
    %37 = vector.extract_strided_slice %32 {offsets = [0, 0], sizes = [8, 32], strides = [1, 1]} : vector<8x96xf32> to vector<8x32xf32>
    %38 = arith.mulf %37, %34 : vector<8x32xf32>
    %39 = arith.addf %36, %38 : vector<8x32xf32>
    %40 = vector.extract_strided_slice %32 {offsets = [0, 64], sizes = [8, 32], strides = [1, 1]} : vector<8x96xf32> to vector<8x32xf32>
    %41 = math.tanh %39 : vector<8x32xf32>
    %42 = arith.mulf %40, %41 : vector<8x32xf32>
    %43 = vector.extract_strided_slice %42 {offsets = [0, 0], sizes = [4, 32], strides = [1, 1]} : vector<8x32xf32> to vector<4x32xf32>
    %44 = arith.index_cast %c0_i32 : i32 to index
    %c0_9 = arith.constant 0 : index
    %c0_10 = arith.constant 0 : index
    %45 = vector.load %arg6[%44, %c0_9, %c0_10] : memref<8x4x64xf32, #tpu.memory_space<vmem>>, vector<1x4x32xf32>
    %46 = vector.shape_cast %45 : vector<1x4x32xf32> to vector<4x32xf32>
    %47 = vector.shape_cast %43 : vector<4x32xf32> to vector<1x4x32xf32>
    tpu.vector_store %arg6[%44, %c0_9, %c0_10], %47 {strides = array<i32>} : memref<8x4x64xf32, #tpu.memory_space<vmem>>, vector<1x4x32xf32>,
    %48 = vector.extract_strided_slice %42 {offsets = [4, 0], sizes = [4, 32], strides = [1, 1]} : vector<8x32xf32> to vector<4x32xf32>
    %49 = arith.index_cast %13 : i32 to index
    %c0_11 = arith.constant 0 : index
    %c32 = arith.constant 32 : index
    %50 = vector.load %arg6[%49, %c0_11, %c32] : memref<8x4x64xf32, #tpu.memory_space<vmem>>, vector<1x4x32xf32>
    %51 = vector.shape_cast %50 : vector<1x4x32xf32> to vector<4x32xf32>
    %52 = vector.shape_cast %48 : vector<4x32xf32> to vector<1x4x32xf32>
    tpu.vector_store %arg6[%49, %c0_11, %c32], %52 {strides = array<i32>} : memref<8x4x64xf32, #tpu.memory_space<vmem>>, vector<1x4x32xf32>,
    %c1_i32 = arith.constant 1 : i32
    %c7_i32_12 = arith.constant 7 : i32
    %53 = arith.subi %c7_i32_12, %c1_i32 : i32
    %54 = arith.index_cast %c1_i32 : i32 to index
    %c0_13 = arith.constant 0 : index
    %c0_14 = arith.constant 0 : index
    %55 = vector.load %arg1[%54, %c0_13, %c0_14] : memref<8x4x256xf32, #tpu.memory_space<vmem>>, vector<1x4x256xf32>
    %56 = vector.shape_cast %55 : vector<1x4x256xf32> to vector<4x256xf32>
    %57 = vector.extract_strided_slice %56 {offsets = [0, 0], sizes = [4, 128], strides = [1, 1]} : vector<4x256xf32> to vector<4x128xf32>
    %58 = arith.index_cast %53 : i32 to index
    %c0_15 = arith.constant 0 : index
    %c0_16 = arith.constant 0 : index
    %59 = vector.load %arg1[%58, %c0_15, %c0_16] : memref<8x4x256xf32, #tpu.memory_space<vmem>>, vector<1x4x256xf32>
    %60 = vector.shape_cast %59 : vector<1x4x256xf32> to vector<4x256xf32>
    %61 = vector.extract_strided_slice %60 {offsets = [0, 128], sizes = [4, 128], strides = [1, 1]} : vector<4x256xf32> to vector<4x128xf32>
    %62 = tpu.concatenate %57, %61 in 0 : vector<4x128xf32>, vector<4x128xf32> -> vector<8x128xf32>
    %63 = tpu.concatenate %42, %42 in 1 : vector<8x32xf32>, vector<8x32xf32> -> vector<8x64xf32>
    %64 = arith.mulf %63, %9 : vector<8x64xf32>
    %cst_17 = arith.constant dense<0.000000e+00> : vector<8x128xf32>
    %65 = tpu.matmul %64, %11, %cst_17 {dimension_numbers = #tpu.dot_dimension_numbers<[1], [0], [0], [1], [0, 0, 1, 1], [], []>} : vector<8x64xf32>, vector<64x128xf32>, vector<8x128xf32> -> vector<8x128xf32>
    %66 = arith.addf %62, %65 : vector<8x128xf32>
    %67 = vector.extract_strided_slice %66 {offsets = [0, 0], sizes = [8, 96], strides = [1, 1]} : vector<8x128xf32> to vector<8x96xf32>
    %68 = arith.negf %67 : vector<8x96xf32>
    %69 = math.exp %68 : vector<8x96xf32>
    %cst_18 = arith.constant 1.000000e+00 : f32
    %70 = vector.broadcast %cst_18 : f32 to vector<8x96xf32>
    %71 = arith.addf %70, %69 : vector<8x96xf32>
    %72 = arith.divf %70, %71 : vector<8x96xf32>
    %73 = vector.extract_strided_slice %66 {offsets = [0, 96], sizes = [8, 32], strides = [1, 1]} : vector<8x128xf32> to vector<8x32xf32>
    %74 = math.tanh %73 : vector<8x32xf32>
    %75 = vector.extract_strided_slice %72 {offsets = [0, 32], sizes = [8, 32], strides = [1, 1]} : vector<8x96xf32> to vector<8x32xf32>
    %76 = arith.mulf %75, %39 : vector<8x32xf32>
    %77 = vector.extract_strided_slice %72 {offsets = [0, 0], sizes = [8, 32], strides = [1, 1]} : vector<8x96xf32> to vector<8x32xf32>
    %78 = arith.mulf %77, %74 : vector<8x32xf32>
    %79 = arith.addf %76, %78 : vector<8x32xf32>
    %80 = vector.extract_strided_slice %72 {offsets = [0, 64], sizes = [8, 32], strides = [1, 1]} : vector<8x96xf32> to vector<8x32xf32>
    %81 = math.tanh %79 : vector<8x32xf32>
    %82 = arith.mulf %80, %81 : vector<8x32xf32>
    %83 = vector.extract_strided_slice %82 {offsets = [0, 0], sizes = [4, 32], strides = [1, 1]} : vector<8x32xf32> to vector<4x32xf32>
    %84 = arith.index_cast %c1_i32 : i32 to index
    %c0_19 = arith.constant 0 : index
    %c0_20 = arith.constant 0 : index
    %85 = vector.load %arg6[%84, %c0_19, %c0_20] : memref<8x4x64xf32, #tpu.memory_space<vmem>>, vector<1x4x32xf32>
    %86 = vector.shape_cast %85 : vector<1x4x32xf32> to vector<4x32xf32>
    %87 = vector.shape_cast %83 : vector<4x32xf32> to vector<1x4x32xf32>
    tpu.vector_store %arg6[%84, %c0_19, %c0_20], %87 {strides = array<i32>} : memref<8x4x64xf32, #tpu.memory_space<vmem>>, vector<1x4x32xf32>,
    %88 = vector.extract_strided_slice %82 {offsets = [4, 0], sizes = [4, 32], strides = [1, 1]} : vector<8x32xf32> to vector<4x32xf32>
    %89 = arith.index_cast %53 : i32 to index
    %c0_21 = arith.constant 0 : index
    %c32_22 = arith.constant 32 : index
    %90 = vector.load %arg6[%89, %c0_21, %c32_22] : memref<8x4x64xf32, #tpu.memory_space<vmem>>, vector<1x4x32xf32>
    %91 = vector.shape_cast %90 : vector<1x4x32xf32> to vector<4x32xf32>
    %92 = vector.shape_cast %88 : vector<4x32xf32> to vector<1x4x32xf32>
    tpu.vector_store %arg6[%89, %c0_21, %c32_22], %92 {strides = array<i32>} : memref<8x4x64xf32, #tpu.memory_space<vmem>>, vector<1x4x32xf32>,
    %c2_i32 = arith.constant 2 : i32
    %c7_i32_23 = arith.constant 7 : i32
    %93 = arith.subi %c7_i32_23, %c2_i32 : i32
    %94 = arith.index_cast %c2_i32 : i32 to index
    %c0_24 = arith.constant 0 : index
    %c0_25 = arith.constant 0 : index
    %95 = vector.load %arg1[%94, %c0_24, %c0_25] : memref<8x4x256xf32, #tpu.memory_space<vmem>>, vector<1x4x256xf32>
    %96 = vector.shape_cast %95 : vector<1x4x256xf32> to vector<4x256xf32>
    %97 = vector.extract_strided_slice %96 {offsets = [0, 0], sizes = [4, 128], strides = [1, 1]} : vector<4x256xf32> to vector<4x128xf32>
    %98 = arith.index_cast %93 : i32 to index
    %c0_26 = arith.constant 0 : index
    %c0_27 = arith.constant 0 : index
    %99 = vector.load %arg1[%98, %c0_26, %c0_27] : memref<8x4x256xf32, #tpu.memory_space<vmem>>, vector<1x4x256xf32>
    %100 = vector.shape_cast %99 : vector<1x4x256xf32> to vector<4x256xf32>
    %101 = vector.extract_strided_slice %100 {offsets = [0, 128], sizes = [4, 128], strides = [1, 1]} : vector<4x256xf32> to vector<4x128xf32>
    %102 = tpu.concatenate %97, %101 in 0 : vector<4x128xf32>, vector<4x128xf32> -> vector<8x128xf32>
    %103 = tpu.concatenate %82, %82 in 1 : vector<8x32xf32>, vector<8x32xf32> -> vector<8x64xf32>
    %104 = arith.mulf %103, %9 : vector<8x64xf32>
    %cst_28 = arith.constant dense<0.000000e+00> : vector<8x128xf32>
    %105 = tpu.matmul %104, %11, %cst_28 {dimension_numbers = #tpu.dot_dimension_numbers<[1], [0], [0], [1], [0, 0, 1, 1], [], []>} : vector<8x64xf32>, vector<64x128xf32>, vector<8x128xf32> -> vector<8x128xf32>
    %106 = arith.addf %102, %105 : vector<8x128xf32>
    %107 = vector.extract_strided_slice %106 {offsets = [0, 0], sizes = [8, 96], strides = [1, 1]} : vector<8x128xf32> to vector<8x96xf32>
    %108 = arith.negf %107 : vector<8x96xf32>
    %109 = math.exp %108 : vector<8x96xf32>
    %cst_29 = arith.constant 1.000000e+00 : f32
    %110 = vector.broadcast %cst_29 : f32 to vector<8x96xf32>
    %111 = arith.addf %110, %109 : vector<8x96xf32>
    %112 = arith.divf %110, %111 : vector<8x96xf32>
    %113 = vector.extract_strided_slice %106 {offsets = [0, 96], sizes = [8, 32], strides = [1, 1]} : vector<8x128xf32> to vector<8x32xf32>
    %114 = math.tanh %113 : vector<8x32xf32>
    %115 = vector.extract_strided_slice %112 {offsets = [0, 32], sizes = [8, 32], strides = [1, 1]} : vector<8x96xf32> to vector<8x32xf32>
    %116 = arith.mulf %115, %79 : vector<8x32xf32>
    %117 = vector.extract_strided_slice %112 {offsets = [0, 0], sizes = [8, 32], strides = [1, 1]} : vector<8x96xf32> to vector<8x32xf32>
    %118 = arith.mulf %117, %114 : vector<8x32xf32>
    %119 = arith.addf %116, %118 : vector<8x32xf32>
    %120 = vector.extract_strided_slice %112 {offsets = [0, 64], sizes = [8, 32], strides = [1, 1]} : vector<8x96xf32> to vector<8x32xf32>
    %121 = math.tanh %119 : vector<8x32xf32>
    %122 = arith.mulf %120, %121 : vector<8x32xf32>
    %123 = vector.extract_strided_slice %122 {offsets = [0, 0], sizes = [4, 32], strides = [1, 1]} : vector<8x32xf32> to vector<4x32xf32>
    %124 = arith.index_cast %c2_i32 : i32 to index
    %c0_30 = arith.constant 0 : index
    %c0_31 = arith.constant 0 : index
    %125 = vector.load %arg6[%124, %c0_30, %c0_31] : memref<8x4x64xf32, #tpu.memory_space<vmem>>, vector<1x4x32xf32>
    %126 = vector.shape_cast %125 : vector<1x4x32xf32> to vector<4x32xf32>
    %127 = vector.shape_cast %123 : vector<4x32xf32> to vector<1x4x32xf32>
    tpu.vector_store %arg6[%124, %c0_30, %c0_31], %127 {strides = array<i32>} : memref<8x4x64xf32, #tpu.memory_space<vmem>>, vector<1x4x32xf32>,
    %128 = vector.extract_strided_slice %122 {offsets = [4, 0], sizes = [4, 32], strides = [1, 1]} : vector<8x32xf32> to vector<4x32xf32>
    %129 = arith.index_cast %93 : i32 to index
    %c0_32 = arith.constant 0 : index
    %c32_33 = arith.constant 32 : index
    %130 = vector.load %arg6[%129, %c0_32, %c32_33] : memref<8x4x64xf32, #tpu.memory_space<vmem>>, vector<1x4x32xf32>
    %131 = vector.shape_cast %130 : vector<1x4x32xf32> to vector<4x32xf32>
    %132 = vector.shape_cast %128 : vector<4x32xf32> to vector<1x4x32xf32>
    tpu.vector_store %arg6[%129, %c0_32, %c32_33], %132 {strides = array<i32>} : memref<8x4x64xf32, #tpu.memory_space<vmem>>, vector<1x4x32xf32>,
    %c3_i32 = arith.constant 3 : i32
    %c7_i32_34 = arith.constant 7 : i32
    %133 = arith.subi %c7_i32_34, %c3_i32 : i32
    %134 = arith.index_cast %c3_i32 : i32 to index
    %c0_35 = arith.constant 0 : index
    %c0_36 = arith.constant 0 : index
    %135 = vector.load %arg1[%134, %c0_35, %c0_36] : memref<8x4x256xf32, #tpu.memory_space<vmem>>, vector<1x4x256xf32>
    %136 = vector.shape_cast %135 : vector<1x4x256xf32> to vector<4x256xf32>
    %137 = vector.extract_strided_slice %136 {offsets = [0, 0], sizes = [4, 128], strides = [1, 1]} : vector<4x256xf32> to vector<4x128xf32>
    %138 = arith.index_cast %133 : i32 to index
    %c0_37 = arith.constant 0 : index
    %c0_38 = arith.constant 0 : index
    %139 = vector.load %arg1[%138, %c0_37, %c0_38] : memref<8x4x256xf32, #tpu.memory_space<vmem>>, vector<1x4x256xf32>
    %140 = vector.shape_cast %139 : vector<1x4x256xf32> to vector<4x256xf32>
    %141 = vector.extract_strided_slice %140 {offsets = [0, 128], sizes = [4, 128], strides = [1, 1]} : vector<4x256xf32> to vector<4x128xf32>
    %142 = tpu.concatenate %137, %141 in 0 : vector<4x128xf32>, vector<4x128xf32> -> vector<8x128xf32>
    %143 = tpu.concatenate %122, %122 in 1 : vector<8x32xf32>, vector<8x32xf32> -> vector<8x64xf32>
    %144 = arith.mulf %143, %9 : vector<8x64xf32>
    %cst_39 = arith.constant dense<0.000000e+00> : vector<8x128xf32>
    %145 = tpu.matmul %144, %11, %cst_39 {dimension_numbers = #tpu.dot_dimension_numbers<[1], [0], [0], [1], [0, 0, 1, 1], [], []>} : vector<8x64xf32>, vector<64x128xf32>, vector<8x128xf32> -> vector<8x128xf32>
    %146 = arith.addf %142, %145 : vector<8x128xf32>
    %147 = vector.extract_strided_slice %146 {offsets = [0, 0], sizes = [8, 96], strides = [1, 1]} : vector<8x128xf32> to vector<8x96xf32>
    %148 = arith.negf %147 : vector<8x96xf32>
    %149 = math.exp %148 : vector<8x96xf32>
    %cst_40 = arith.constant 1.000000e+00 : f32
    %150 = vector.broadcast %cst_40 : f32 to vector<8x96xf32>
    %151 = arith.addf %150, %149 : vector<8x96xf32>
    %152 = arith.divf %150, %151 : vector<8x96xf32>
    %153 = vector.extract_strided_slice %146 {offsets = [0, 96], sizes = [8, 32], strides = [1, 1]} : vector<8x128xf32> to vector<8x32xf32>
    %154 = math.tanh %153 : vector<8x32xf32>
    %155 = vector.extract_strided_slice %152 {offsets = [0, 32], sizes = [8, 32], strides = [1, 1]} : vector<8x96xf32> to vector<8x32xf32>
    %156 = arith.mulf %155, %119 : vector<8x32xf32>
    %157 = vector.extract_strided_slice %152 {offsets = [0, 0], sizes = [8, 32], strides = [1, 1]} : vector<8x96xf32> to vector<8x32xf32>
    %158 = arith.mulf %157, %154 : vector<8x32xf32>
    %159 = arith.addf %156, %158 : vector<8x32xf32>
    %160 = vector.extract_strided_slice %152 {offsets = [0, 64], sizes = [8, 32], strides = [1, 1]} : vector<8x96xf32> to vector<8x32xf32>
    %161 = math.tanh %159 : vector<8x32xf32>
    %162 = arith.mulf %160, %161 : vector<8x32xf32>
    %163 = vector.extract_strided_slice %162 {offsets = [0, 0], sizes = [4, 32], strides = [1, 1]} : vector<8x32xf32> to vector<4x32xf32>
    %164 = arith.index_cast %c3_i32 : i32 to index
    %c0_41 = arith.constant 0 : index
    %c0_42 = arith.constant 0 : index
    %165 = vector.load %arg6[%164, %c0_41, %c0_42] : memref<8x4x64xf32, #tpu.memory_space<vmem>>, vector<1x4x32xf32>
    %166 = vector.shape_cast %165 : vector<1x4x32xf32> to vector<4x32xf32>
    %167 = vector.shape_cast %163 : vector<4x32xf32> to vector<1x4x32xf32>
    tpu.vector_store %arg6[%164, %c0_41, %c0_42], %167 {strides = array<i32>} : memref<8x4x64xf32, #tpu.memory_space<vmem>>, vector<1x4x32xf32>,
    %168 = vector.extract_strided_slice %162 {offsets = [4, 0], sizes = [4, 32], strides = [1, 1]} : vector<8x32xf32> to vector<4x32xf32>
    %169 = arith.index_cast %133 : i32 to index
    %c0_43 = arith.constant 0 : index
    %c32_44 = arith.constant 32 : index
    %170 = vector.load %arg6[%169, %c0_43, %c32_44] : memref<8x4x64xf32, #tpu.memory_space<vmem>>, vector<1x4x32xf32>
    %171 = vector.shape_cast %170 : vector<1x4x32xf32> to vector<4x32xf32>
    %172 = vector.shape_cast %168 : vector<4x32xf32> to vector<1x4x32xf32>
    tpu.vector_store %arg6[%169, %c0_43, %c32_44], %172 {strides = array<i32>} : memref<8x4x64xf32, #tpu.memory_space<vmem>>, vector<1x4x32xf32>,
    %c4_i32_45 = arith.constant 4 : i32
    %c7_i32_46 = arith.constant 7 : i32
    %173 = arith.subi %c7_i32_46, %c4_i32_45 : i32
    %174 = arith.index_cast %c4_i32_45 : i32 to index
    %c0_47 = arith.constant 0 : index
    %c0_48 = arith.constant 0 : index
    %175 = vector.load %arg1[%174, %c0_47, %c0_48] : memref<8x4x256xf32, #tpu.memory_space<vmem>>, vector<1x4x256xf32>
    %176 = vector.shape_cast %175 : vector<1x4x256xf32> to vector<4x256xf32>
    %177 = vector.extract_strided_slice %176 {offsets = [0, 0], sizes = [4, 128], strides = [1, 1]} : vector<4x256xf32> to vector<4x128xf32>
    %178 = arith.index_cast %173 : i32 to index
    %c0_49 = arith.constant 0 : index
    %c0_50 = arith.constant 0 : index
    %179 = vector.load %arg1[%178, %c0_49, %c0_50] : memref<8x4x256xf32, #tpu.memory_space<vmem>>, vector<1x4x256xf32>
    %180 = vector.shape_cast %179 : vector<1x4x256xf32> to vector<4x256xf32>
    %181 = vector.extract_strided_slice %180 {offsets = [0, 128], sizes = [4, 128], strides = [1, 1]} : vector<4x256xf32> to vector<4x128xf32>
    %182 = tpu.concatenate %177, %181 in 0 : vector<4x128xf32>, vector<4x128xf32> -> vector<8x128xf32>
    %183 = tpu.concatenate %162, %162 in 1 : vector<8x32xf32>, vector<8x32xf32> -> vector<8x64xf32>
    %184 = arith.mulf %183, %9 : vector<8x64xf32>
    %cst_51 = arith.constant dense<0.000000e+00> : vector<8x128xf32>
    %185 = tpu.matmul %184, %11, %cst_51 {dimension_numbers = #tpu.dot_dimension_numbers<[1], [0], [0], [1], [0, 0, 1, 1], [], []>} : vector<8x64xf32>, vector<64x128xf32>, vector<8x128xf32> -> vector<8x128xf32>
    %186 = arith.addf %182, %185 : vector<8x128xf32>
    %187 = vector.extract_strided_slice %186 {offsets = [0, 0], sizes = [8, 96], strides = [1, 1]} : vector<8x128xf32> to vector<8x96xf32>
    %188 = arith.negf %187 : vector<8x96xf32>
    %189 = math.exp %188 : vector<8x96xf32>
    %cst_52 = arith.constant 1.000000e+00 : f32
    %190 = vector.broadcast %cst_52 : f32 to vector<8x96xf32>
    %191 = arith.addf %190, %189 : vector<8x96xf32>
    %192 = arith.divf %190, %191 : vector<8x96xf32>
    %193 = vector.extract_strided_slice %186 {offsets = [0, 96], sizes = [8, 32], strides = [1, 1]} : vector<8x128xf32> to vector<8x32xf32>
    %194 = math.tanh %193 : vector<8x32xf32>
    %195 = vector.extract_strided_slice %192 {offsets = [0, 32], sizes = [8, 32], strides = [1, 1]} : vector<8x96xf32> to vector<8x32xf32>
    %196 = arith.mulf %195, %159 : vector<8x32xf32>
    %197 = vector.extract_strided_slice %192 {offsets = [0, 0], sizes = [8, 32], strides = [1, 1]} : vector<8x96xf32> to vector<8x32xf32>
    %198 = arith.mulf %197, %194 : vector<8x32xf32>
    %199 = arith.addf %196, %198 : vector<8x32xf32>
    %200 = vector.extract_strided_slice %192 {offsets = [0, 64], sizes = [8, 32], strides = [1, 1]} : vector<8x96xf32> to vector<8x32xf32>
    %201 = math.tanh %199 : vector<8x32xf32>
    %202 = arith.mulf %200, %201 : vector<8x32xf32>
    %203 = vector.extract_strided_slice %202 {offsets = [0, 0], sizes = [4, 32], strides = [1, 1]} : vector<8x32xf32> to vector<4x32xf32>
    %204 = arith.index_cast %c4_i32_45 : i32 to index
    %c0_53 = arith.constant 0 : index
    %c0_54 = arith.constant 0 : index
    %205 = vector.load %arg6[%204, %c0_53, %c0_54] : memref<8x4x64xf32, #tpu.memory_space<vmem>>, vector<1x4x32xf32>
    %206 = vector.shape_cast %205 : vector<1x4x32xf32> to vector<4x32xf32>
    %207 = vector.shape_cast %203 : vector<4x32xf32> to vector<1x4x32xf32>
    tpu.vector_store %arg6[%204, %c0_53, %c0_54], %207 {strides = array<i32>} : memref<8x4x64xf32, #tpu.memory_space<vmem>>, vector<1x4x32xf32>,
    %208 = vector.extract_strided_slice %202 {offsets = [4, 0], sizes = [4, 32], strides = [1, 1]} : vector<8x32xf32> to vector<4x32xf32>
    %209 = arith.index_cast %173 : i32 to index
    %c0_55 = arith.constant 0 : index
    %c32_56 = arith.constant 32 : index
    %210 = vector.load %arg6[%209, %c0_55, %c32_56] : memref<8x4x64xf32, #tpu.memory_space<vmem>>, vector<1x4x32xf32>
    %211 = vector.shape_cast %210 : vector<1x4x32xf32> to vector<4x32xf32>
    %212 = vector.shape_cast %208 : vector<4x32xf32> to vector<1x4x32xf32>
    tpu.vector_store %arg6[%209, %c0_55, %c32_56], %212 {strides = array<i32>} : memref<8x4x64xf32, #tpu.memory_space<vmem>>, vector<1x4x32xf32>,
    %c5_i32 = arith.constant 5 : i32
    %c7_i32_57 = arith.constant 7 : i32
    %213 = arith.subi %c7_i32_57, %c5_i32 : i32
    %214 = arith.index_cast %c5_i32 : i32 to index
    %c0_58 = arith.constant 0 : index
    %c0_59 = arith.constant 0 : index
    %215 = vector.load %arg1[%214, %c0_58, %c0_59] : memref<8x4x256xf32, #tpu.memory_space<vmem>>, vector<1x4x256xf32>
    %216 = vector.shape_cast %215 : vector<1x4x256xf32> to vector<4x256xf32>
    %217 = vector.extract_strided_slice %216 {offsets = [0, 0], sizes = [4, 128], strides = [1, 1]} : vector<4x256xf32> to vector<4x128xf32>
    %218 = arith.index_cast %213 : i32 to index
    %c0_60 = arith.constant 0 : index
    %c0_61 = arith.constant 0 : index
    %219 = vector.load %arg1[%218, %c0_60, %c0_61] : memref<8x4x256xf32, #tpu.memory_space<vmem>>, vector<1x4x256xf32>
    %220 = vector.shape_cast %219 : vector<1x4x256xf32> to vector<4x256xf32>
    %221 = vector.extract_strided_slice %220 {offsets = [0, 128], sizes = [4, 128], strides = [1, 1]} : vector<4x256xf32> to vector<4x128xf32>
    %222 = tpu.concatenate %217, %221 in 0 : vector<4x128xf32>, vector<4x128xf32> -> vector<8x128xf32>
    %223 = tpu.concatenate %202, %202 in 1 : vector<8x32xf32>, vector<8x32xf32> -> vector<8x64xf32>
    %224 = arith.mulf %223, %9 : vector<8x64xf32>
    %cst_62 = arith.constant dense<0.000000e+00> : vector<8x128xf32>
    %225 = tpu.matmul %224, %11, %cst_62 {dimension_numbers = #tpu.dot_dimension_numbers<[1], [0], [0], [1], [0, 0, 1, 1], [], []>} : vector<8x64xf32>, vector<64x128xf32>, vector<8x128xf32> -> vector<8x128xf32>
    %226 = arith.addf %222, %225 : vector<8x128xf32>
    %227 = vector.extract_strided_slice %226 {offsets = [0, 0], sizes = [8, 96], strides = [1, 1]} : vector<8x128xf32> to vector<8x96xf32>
    %228 = arith.negf %227 : vector<8x96xf32>
    %229 = math.exp %228 : vector<8x96xf32>
    %cst_63 = arith.constant 1.000000e+00 : f32
    %230 = vector.broadcast %cst_63 : f32 to vector<8x96xf32>
    %231 = arith.addf %230, %229 : vector<8x96xf32>
    %232 = arith.divf %230, %231 : vector<8x96xf32>
    %233 = vector.extract_strided_slice %226 {offsets = [0, 96], sizes = [8, 32], strides = [1, 1]} : vector<8x128xf32> to vector<8x32xf32>
    %234 = math.tanh %233 : vector<8x32xf32>
    %235 = vector.extract_strided_slice %232 {offsets = [0, 32], sizes = [8, 32], strides = [1, 1]} : vector<8x96xf32> to vector<8x32xf32>
    %236 = arith.mulf %235, %199 : vector<8x32xf32>
    %237 = vector.extract_strided_slice %232 {offsets = [0, 0], sizes = [8, 32], strides = [1, 1]} : vector<8x96xf32> to vector<8x32xf32>
    %238 = arith.mulf %237, %234 : vector<8x32xf32>
    %239 = arith.addf %236, %238 : vector<8x32xf32>
    %240 = vector.extract_strided_slice %232 {offsets = [0, 64], sizes = [8, 32], strides = [1, 1]} : vector<8x96xf32> to vector<8x32xf32>
    %241 = math.tanh %239 : vector<8x32xf32>
    %242 = arith.mulf %240, %241 : vector<8x32xf32>
    %243 = vector.extract_strided_slice %242 {offsets = [0, 0], sizes = [4, 32], strides = [1, 1]} : vector<8x32xf32> to vector<4x32xf32>
    %244 = arith.index_cast %c5_i32 : i32 to index
    %c0_64 = arith.constant 0 : index
    %c0_65 = arith.constant 0 : index
    %245 = vector.load %arg6[%244, %c0_64, %c0_65] : memref<8x4x64xf32, #tpu.memory_space<vmem>>, vector<1x4x32xf32>
    %246 = vector.shape_cast %245 : vector<1x4x32xf32> to vector<4x32xf32>
    %247 = vector.shape_cast %243 : vector<4x32xf32> to vector<1x4x32xf32>
    tpu.vector_store %arg6[%244, %c0_64, %c0_65], %247 {strides = array<i32>} : memref<8x4x64xf32, #tpu.memory_space<vmem>>, vector<1x4x32xf32>,
    %248 = vector.extract_strided_slice %242 {offsets = [4, 0], sizes = [4, 32], strides = [1, 1]} : vector<8x32xf32> to vector<4x32xf32>
    %249 = arith.index_cast %213 : i32 to index
    %c0_66 = arith.constant 0 : index
    %c32_67 = arith.constant 32 : index
    %250 = vector.load %arg6[%249, %c0_66, %c32_67] : memref<8x4x64xf32, #tpu.memory_space<vmem>>, vector<1x4x32xf32>
    %251 = vector.shape_cast %250 : vector<1x4x32xf32> to vector<4x32xf32>
    %252 = vector.shape_cast %248 : vector<4x32xf32> to vector<1x4x32xf32>
    tpu.vector_store %arg6[%249, %c0_66, %c32_67], %252 {strides = array<i32>} : memref<8x4x64xf32, #tpu.memory_space<vmem>>, vector<1x4x32xf32>,
    %c6_i32 = arith.constant 6 : i32
    %c7_i32_68 = arith.constant 7 : i32
    %253 = arith.subi %c7_i32_68, %c6_i32 : i32
    %254 = arith.index_cast %c6_i32 : i32 to index
    %c0_69 = arith.constant 0 : index
    %c0_70 = arith.constant 0 : index
    %255 = vector.load %arg1[%254, %c0_69, %c0_70] : memref<8x4x256xf32, #tpu.memory_space<vmem>>, vector<1x4x256xf32>
    %256 = vector.shape_cast %255 : vector<1x4x256xf32> to vector<4x256xf32>
    %257 = vector.extract_strided_slice %256 {offsets = [0, 0], sizes = [4, 128], strides = [1, 1]} : vector<4x256xf32> to vector<4x128xf32>
    %258 = arith.index_cast %253 : i32 to index
    %c0_71 = arith.constant 0 : index
    %c0_72 = arith.constant 0 : index
    %259 = vector.load %arg1[%258, %c0_71, %c0_72] : memref<8x4x256xf32, #tpu.memory_space<vmem>>, vector<1x4x256xf32>
    %260 = vector.shape_cast %259 : vector<1x4x256xf32> to vector<4x256xf32>
    %261 = vector.extract_strided_slice %260 {offsets = [0, 128], sizes = [4, 128], strides = [1, 1]} : vector<4x256xf32> to vector<4x128xf32>
    %262 = tpu.concatenate %257, %261 in 0 : vector<4x128xf32>, vector<4x128xf32> -> vector<8x128xf32>
    %263 = tpu.concatenate %242, %242 in 1 : vector<8x32xf32>, vector<8x32xf32> -> vector<8x64xf32>
    %264 = arith.mulf %263, %9 : vector<8x64xf32>
    %cst_73 = arith.constant dense<0.000000e+00> : vector<8x128xf32>
    %265 = tpu.matmul %264, %11, %cst_73 {dimension_numbers = #tpu.dot_dimension_numbers<[1], [0], [0], [1], [0, 0, 1, 1], [], []>} : vector<8x64xf32>, vector<64x128xf32>, vector<8x128xf32> -> vector<8x128xf32>
    %266 = arith.addf %262, %265 : vector<8x128xf32>
    %267 = vector.extract_strided_slice %266 {offsets = [0, 0], sizes = [8, 96], strides = [1, 1]} : vector<8x128xf32> to vector<8x96xf32>
    %268 = arith.negf %267 : vector<8x96xf32>
    %269 = math.exp %268 : vector<8x96xf32>
    %cst_74 = arith.constant 1.000000e+00 : f32
    %270 = vector.broadcast %cst_74 : f32 to vector<8x96xf32>
    %271 = arith.addf %270, %269 : vector<8x96xf32>
    %272 = arith.divf %270, %271 : vector<8x96xf32>
    %273 = vector.extract_strided_slice %266 {offsets = [0, 96], sizes = [8, 32], strides = [1, 1]} : vector<8x128xf32> to vector<8x32xf32>
    %274 = math.tanh %273 : vector<8x32xf32>
    %275 = vector.extract_strided_slice %272 {offsets = [0, 32], sizes = [8, 32], strides = [1, 1]} : vector<8x96xf32> to vector<8x32xf32>
    %276 = arith.mulf %275, %239 : vector<8x32xf32>
    %277 = vector.extract_strided_slice %272 {offsets = [0, 0], sizes = [8, 32], strides = [1, 1]} : vector<8x96xf32> to vector<8x32xf32>
    %278 = arith.mulf %277, %274 : vector<8x32xf32>
    %279 = arith.addf %276, %278 : vector<8x32xf32>
    %280 = vector.extract_strided_slice %272 {offsets = [0, 64], sizes = [8, 32], strides = [1, 1]} : vector<8x96xf32> to vector<8x32xf32>
    %281 = math.tanh %279 : vector<8x32xf32>
    %282 = arith.mulf %280, %281 : vector<8x32xf32>
    %283 = vector.extract_strided_slice %282 {offsets = [0, 0], sizes = [4, 32], strides = [1, 1]} : vector<8x32xf32> to vector<4x32xf32>
    %284 = arith.index_cast %c6_i32 : i32 to index
    %c0_75 = arith.constant 0 : index
    %c0_76 = arith.constant 0 : index
    %285 = vector.load %arg6[%284, %c0_75, %c0_76] : memref<8x4x64xf32, #tpu.memory_space<vmem>>, vector<1x4x32xf32>
    %286 = vector.shape_cast %285 : vector<1x4x32xf32> to vector<4x32xf32>
    %287 = vector.shape_cast %283 : vector<4x32xf32> to vector<1x4x32xf32>
    tpu.vector_store %arg6[%284, %c0_75, %c0_76], %287 {strides = array<i32>} : memref<8x4x64xf32, #tpu.memory_space<vmem>>, vector<1x4x32xf32>,
    %288 = vector.extract_strided_slice %282 {offsets = [4, 0], sizes = [4, 32], strides = [1, 1]} : vector<8x32xf32> to vector<4x32xf32>
    %289 = arith.index_cast %253 : i32 to index
    %c0_77 = arith.constant 0 : index
    %c32_78 = arith.constant 32 : index
    %290 = vector.load %arg6[%289, %c0_77, %c32_78] : memref<8x4x64xf32, #tpu.memory_space<vmem>>, vector<1x4x32xf32>
    %291 = vector.shape_cast %290 : vector<1x4x32xf32> to vector<4x32xf32>
    %292 = vector.shape_cast %288 : vector<4x32xf32> to vector<1x4x32xf32>
    tpu.vector_store %arg6[%289, %c0_77, %c32_78], %292 {strides = array<i32>} : memref<8x4x64xf32, #tpu.memory_space<vmem>>, vector<1x4x32xf32>,
    %c7_i32_79 = arith.constant 7 : i32
    %c7_i32_80 = arith.constant 7 : i32
    %293 = arith.subi %c7_i32_80, %c7_i32_79 : i32
    %294 = arith.index_cast %c7_i32_79 : i32 to index
    %c0_81 = arith.constant 0 : index
    %c0_82 = arith.constant 0 : index
    %295 = vector.load %arg1[%294, %c0_81, %c0_82] : memref<8x4x256xf32, #tpu.memory_space<vmem>>, vector<1x4x256xf32>
    %296 = vector.shape_cast %295 : vector<1x4x256xf32> to vector<4x256xf32>
    %297 = vector.extract_strided_slice %296 {offsets = [0, 0], sizes = [4, 128], strides = [1, 1]} : vector<4x256xf32> to vector<4x128xf32>
    %298 = arith.index_cast %293 : i32 to index
    %c0_83 = arith.constant 0 : index
    %c0_84 = arith.constant 0 : index
    %299 = vector.load %arg1[%298, %c0_83, %c0_84] : memref<8x4x256xf32, #tpu.memory_space<vmem>>, vector<1x4x256xf32>
    %300 = vector.shape_cast %299 : vector<1x4x256xf32> to vector<4x256xf32>
    %301 = vector.extract_strided_slice %300 {offsets = [0, 128], sizes = [4, 128], strides = [1, 1]} : vector<4x256xf32> to vector<4x128xf32>
    %302 = tpu.concatenate %297, %301 in 0 : vector<4x128xf32>, vector<4x128xf32> -> vector<8x128xf32>
    %303 = tpu.concatenate %282, %282 in 1 : vector<8x32xf32>, vector<8x32xf32> -> vector<8x64xf32>
    %304 = arith.mulf %303, %9 : vector<8x64xf32>
    %cst_85 = arith.constant dense<0.000000e+00> : vector<8x128xf32>
    %305 = tpu.matmul %304, %11, %cst_85 {dimension_numbers = #tpu.dot_dimension_numbers<[1], [0], [0], [1], [0, 0, 1, 1], [], []>} : vector<8x64xf32>, vector<64x128xf32>, vector<8x128xf32> -> vector<8x128xf32>
    %306 = arith.addf %302, %305 : vector<8x128xf32>
    %307 = vector.extract_strided_slice %306 {offsets = [0, 0], sizes = [8, 96], strides = [1, 1]} : vector<8x128xf32> to vector<8x96xf32>
    %308 = arith.negf %307 : vector<8x96xf32>
    %309 = math.exp %308 : vector<8x96xf32>
    %cst_86 = arith.constant 1.000000e+00 : f32
    %310 = vector.broadcast %cst_86 : f32 to vector<8x96xf32>
    %311 = arith.addf %310, %309 : vector<8x96xf32>
    %312 = arith.divf %310, %311 : vector<8x96xf32>
    %313 = vector.extract_strided_slice %306 {offsets = [0, 96], sizes = [8, 32], strides = [1, 1]} : vector<8x128xf32> to vector<8x32xf32>
    %314 = math.tanh %313 : vector<8x32xf32>
    %315 = vector.extract_strided_slice %312 {offsets = [0, 32], sizes = [8, 32], strides = [1, 1]} : vector<8x96xf32> to vector<8x32xf32>
    %316 = arith.mulf %315, %279 : vector<8x32xf32>
    %317 = vector.extract_strided_slice %312 {offsets = [0, 0], sizes = [8, 32], strides = [1, 1]} : vector<8x96xf32> to vector<8x32xf32>
    %318 = arith.mulf %317, %314 : vector<8x32xf32>
    %319 = arith.addf %316, %318 : vector<8x32xf32>
    %320 = vector.extract_strided_slice %312 {offsets = [0, 64], sizes = [8, 32], strides = [1, 1]} : vector<8x96xf32> to vector<8x32xf32>
    %321 = math.tanh %319 : vector<8x32xf32>
    %322 = arith.mulf %320, %321 : vector<8x32xf32>
    %323 = vector.extract_strided_slice %322 {offsets = [0, 0], sizes = [4, 32], strides = [1, 1]} : vector<8x32xf32> to vector<4x32xf32>
    %324 = arith.index_cast %c7_i32_79 : i32 to index
    %c0_87 = arith.constant 0 : index
    %c0_88 = arith.constant 0 : index
    %325 = vector.load %arg6[%324, %c0_87, %c0_88] : memref<8x4x64xf32, #tpu.memory_space<vmem>>, vector<1x4x32xf32>
    %326 = vector.shape_cast %325 : vector<1x4x32xf32> to vector<4x32xf32>
    %327 = vector.shape_cast %323 : vector<4x32xf32> to vector<1x4x32xf32>
    tpu.vector_store %arg6[%324, %c0_87, %c0_88], %327 {strides = array<i32>} : memref<8x4x64xf32, #tpu.memory_space<vmem>>, vector<1x4x32xf32>,
    %328 = vector.extract_strided_slice %322 {offsets = [4, 0], sizes = [4, 32], strides = [1, 1]} : vector<8x32xf32> to vector<4x32xf32>
    %329 = arith.index_cast %293 : i32 to index
    %c0_89 = arith.constant 0 : index
    %c32_90 = arith.constant 32 : index
    %330 = vector.load %arg6[%329, %c0_89, %c32_90] : memref<8x4x64xf32, #tpu.memory_space<vmem>>, vector<1x4x32xf32>
    %331 = vector.shape_cast %330 : vector<1x4x32xf32> to vector<4x32xf32>
    %332 = vector.shape_cast %328 : vector<4x32xf32> to vector<1x4x32xf32>
    tpu.vector_store %arg6[%329, %c0_89, %c32_90], %332 {strides = array<i32>} : memref<8x4x64xf32, #tpu.memory_space<vmem>>, vector<1x4x32xf32>,
    %c8_i32 = arith.constant 8 : i32
    %c0_91 = arith.constant 0 : index
    %c0_92 = arith.constant 0 : index
    %c0_93 = arith.constant 0 : index
    %333 = vector.load %arg3[%c0_91, %c0_92, %c0_93] : memref<1x64x256xf32, #tpu.memory_space<vmem>>, vector<1x64x256xf32>
    %334 = vector.shape_cast %333 : vector<1x64x256xf32> to vector<64x256xf32>
    %c0_94 = arith.constant 0 : index
    %c0_95 = arith.constant 0 : index
    %c0_96 = arith.constant 0 : index
    %335 = vector.load %arg4[%c0_94, %c0_95, %c0_96] : memref<1x1x256xf32, #tpu.memory_space<vmem>>, vector<1x1x256xf32>
    %336 = vector.shape_cast %335 : vector<1x1x256xf32> to vector<1x256xf32>
    %c0_97 = arith.constant 0 : index
    %c0_98 = arith.constant 0 : index
    %c0_99 = arith.constant 0 : index
    %337 = vector.load %arg6[%c0_97, %c0_98, %c0_99] : memref<8x4x64xf32, #tpu.memory_space<vmem>>, vector<1x4x64xf32>
    %338 = vector.shape_cast %337 : vector<1x4x64xf32> to vector<4x64xf32>
    %cst_100 = arith.constant dense<0.000000e+00> : vector<4x256xf32>
    %339 = tpu.matmul %338, %334, %cst_100 {dimension_numbers = #tpu.dot_dimension_numbers<[1], [0], [0], [1], [0, 0, 1, 1], [], []>} : vector<4x64xf32>, vector<64x256xf32>, vector<4x256xf32> -> vector<4x256xf32>
    %340 = vector.broadcast %336 : vector<1x256xf32> to vector<4x256xf32>
    %341 = arith.addf %339, %340 : vector<4x256xf32>
    %c0_101 = arith.constant 0 : index
    %c0_102 = arith.constant 0 : index
    %c0_103 = arith.constant 0 : index
    %342 = vector.load %arg7[%c0_101, %c0_102, %c0_103] : memref<8x4x256xf32, #tpu.memory_space<vmem>>, vector<1x4x256xf32>
    %343 = vector.shape_cast %342 : vector<1x4x256xf32> to vector<4x256xf32>
    %344 = vector.shape_cast %341 : vector<4x256xf32> to vector<1x4x256xf32>
    tpu.vector_store %arg7[%c0_101, %c0_102, %c0_103], %344 {strides = array<i32>} : memref<8x4x256xf32, #tpu.memory_space<vmem>>, vector<1x4x256xf32>,
    %c1 = arith.constant 1 : index
    %c0_104 = arith.constant 0 : index
    %c0_105 = arith.constant 0 : index
    %345 = vector.load %arg6[%c1, %c0_104, %c0_105] : memref<8x4x64xf32, #tpu.memory_space<vmem>>, vector<1x4x64xf32>
    %346 = vector.shape_cast %345 : vector<1x4x64xf32> to vector<4x64xf32>
    %cst_106 = arith.constant dense<0.000000e+00> : vector<4x256xf32>
    %347 = tpu.matmul %346, %334, %cst_106 {dimension_numbers = #tpu.dot_dimension_numbers<[1], [0], [0], [1], [0, 0, 1, 1], [], []>} : vector<4x64xf32>, vector<64x256xf32>, vector<4x256xf32> -> vector<4x256xf32>
    %348 = vector.broadcast %336 : vector<1x256xf32> to vector<4x256xf32>
    %349 = arith.addf %347, %348 : vector<4x256xf32>
    %c1_107 = arith.constant 1 : index
    %c0_108 = arith.constant 0 : index
    %c0_109 = arith.constant 0 : index
    %350 = vector.load %arg7[%c1_107, %c0_108, %c0_109] : memref<8x4x256xf32, #tpu.memory_space<vmem>>, vector<1x4x256xf32>
    %351 = vector.shape_cast %350 : vector<1x4x256xf32> to vector<4x256xf32>
    %352 = vector.shape_cast %349 : vector<4x256xf32> to vector<1x4x256xf32>
    tpu.vector_store %arg7[%c1_107, %c0_108, %c0_109], %352 {strides = array<i32>} : memref<8x4x256xf32, #tpu.memory_space<vmem>>, vector<1x4x256xf32>,
    %c2 = arith.constant 2 : index
    %c0_110 = arith.constant 0 : index
    %c0_111 = arith.constant 0 : index
    %353 = vector.load %arg6[%c2, %c0_110, %c0_111] : memref<8x4x64xf32, #tpu.memory_space<vmem>>, vector<1x4x64xf32>
    %354 = vector.shape_cast %353 : vector<1x4x64xf32> to vector<4x64xf32>
    %cst_112 = arith.constant dense<0.000000e+00> : vector<4x256xf32>
    %355 = tpu.matmul %354, %334, %cst_112 {dimension_numbers = #tpu.dot_dimension_numbers<[1], [0], [0], [1], [0, 0, 1, 1], [], []>} : vector<4x64xf32>, vector<64x256xf32>, vector<4x256xf32> -> vector<4x256xf32>
    %356 = vector.broadcast %336 : vector<1x256xf32> to vector<4x256xf32>
    %357 = arith.addf %355, %356 : vector<4x256xf32>
    %c2_113 = arith.constant 2 : index
    %c0_114 = arith.constant 0 : index
    %c0_115 = arith.constant 0 : index
    %358 = vector.load %arg7[%c2_113, %c0_114, %c0_115] : memref<8x4x256xf32, #tpu.memory_space<vmem>>, vector<1x4x256xf32>
    %359 = vector.shape_cast %358 : vector<1x4x256xf32> to vector<4x256xf32>
    %360 = vector.shape_cast %357 : vector<4x256xf32> to vector<1x4x256xf32>
    tpu.vector_store %arg7[%c2_113, %c0_114, %c0_115], %360 {strides = array<i32>} : memref<8x4x256xf32, #tpu.memory_space<vmem>>, vector<1x4x256xf32>,
    %c3 = arith.constant 3 : index
    %c0_116 = arith.constant 0 : index
    %c0_117 = arith.constant 0 : index
    %361 = vector.load %arg6[%c3, %c0_116, %c0_117] : memref<8x4x64xf32, #tpu.memory_space<vmem>>, vector<1x4x64xf32>
    %362 = vector.shape_cast %361 : vector<1x4x64xf32> to vector<4x64xf32>
    %cst_118 = arith.constant dense<0.000000e+00> : vector<4x256xf32>
    %363 = tpu.matmul %362, %334, %cst_118 {dimension_numbers = #tpu.dot_dimension_numbers<[1], [0], [0], [1], [0, 0, 1, 1], [], []>} : vector<4x64xf32>, vector<64x256xf32>, vector<4x256xf32> -> vector<4x256xf32>
    %364 = vector.broadcast %336 : vector<1x256xf32> to vector<4x256xf32>
    %365 = arith.addf %363, %364 : vector<4x256xf32>
    %c3_119 = arith.constant 3 : index
    %c0_120 = arith.constant 0 : index
    %c0_121 = arith.constant 0 : index
    %366 = vector.load %arg7[%c3_119, %c0_120, %c0_121] : memref<8x4x256xf32, #tpu.memory_space<vmem>>, vector<1x4x256xf32>
    %367 = vector.shape_cast %366 : vector<1x4x256xf32> to vector<4x256xf32>
    %368 = vector.shape_cast %365 : vector<4x256xf32> to vector<1x4x256xf32>
    tpu.vector_store %arg7[%c3_119, %c0_120, %c0_121], %368 {strides = array<i32>} : memref<8x4x256xf32, #tpu.memory_space<vmem>>, vector<1x4x256xf32>,
    %c4 = arith.constant 4 : index
    %c0_122 = arith.constant 0 : index
    %c0_123 = arith.constant 0 : index
    %369 = vector.load %arg6[%c4, %c0_122, %c0_123] : memref<8x4x64xf32, #tpu.memory_space<vmem>>, vector<1x4x64xf32>
    %370 = vector.shape_cast %369 : vector<1x4x64xf32> to vector<4x64xf32>
    %cst_124 = arith.constant dense<0.000000e+00> : vector<4x256xf32>
    %371 = tpu.matmul %370, %334, %cst_124 {dimension_numbers = #tpu.dot_dimension_numbers<[1], [0], [0], [1], [0, 0, 1, 1], [], []>} : vector<4x64xf32>, vector<64x256xf32>, vector<4x256xf32> -> vector<4x256xf32>
    %372 = vector.broadcast %336 : vector<1x256xf32> to vector<4x256xf32>
    %373 = arith.addf %371, %372 : vector<4x256xf32>
    %c4_125 = arith.constant 4 : index
    %c0_126 = arith.constant 0 : index
    %c0_127 = arith.constant 0 : index
    %374 = vector.load %arg7[%c4_125, %c0_126, %c0_127] : memref<8x4x256xf32, #tpu.memory_space<vmem>>, vector<1x4x256xf32>
    %375 = vector.shape_cast %374 : vector<1x4x256xf32> to vector<4x256xf32>
    %376 = vector.shape_cast %373 : vector<4x256xf32> to vector<1x4x256xf32>
    tpu.vector_store %arg7[%c4_125, %c0_126, %c0_127], %376 {strides = array<i32>} : memref<8x4x256xf32, #tpu.memory_space<vmem>>, vector<1x4x256xf32>,
    %c5 = arith.constant 5 : index
    %c0_128 = arith.constant 0 : index
    %c0_129 = arith.constant 0 : index
    %377 = vector.load %arg6[%c5, %c0_128, %c0_129] : memref<8x4x64xf32, #tpu.memory_space<vmem>>, vector<1x4x64xf32>
    %378 = vector.shape_cast %377 : vector<1x4x64xf32> to vector<4x64xf32>
    %cst_130 = arith.constant dense<0.000000e+00> : vector<4x256xf32>
    %379 = tpu.matmul %378, %334, %cst_130 {dimension_numbers = #tpu.dot_dimension_numbers<[1], [0], [0], [1], [0, 0, 1, 1], [], []>} : vector<4x64xf32>, vector<64x256xf32>, vector<4x256xf32> -> vector<4x256xf32>
    %380 = vector.broadcast %336 : vector<1x256xf32> to vector<4x256xf32>
    %381 = arith.addf %379, %380 : vector<4x256xf32>
    %c5_131 = arith.constant 5 : index
    %c0_132 = arith.constant 0 : index
    %c0_133 = arith.constant 0 : index
    %382 = vector.load %arg7[%c5_131, %c0_132, %c0_133] : memref<8x4x256xf32, #tpu.memory_space<vmem>>, vector<1x4x256xf32>
    %383 = vector.shape_cast %382 : vector<1x4x256xf32> to vector<4x256xf32>
    %384 = vector.shape_cast %381 : vector<4x256xf32> to vector<1x4x256xf32>
    tpu.vector_store %arg7[%c5_131, %c0_132, %c0_133], %384 {strides = array<i32>} : memref<8x4x256xf32, #tpu.memory_space<vmem>>, vector<1x4x256xf32>,
    %c6 = arith.constant 6 : index
    %c0_134 = arith.constant 0 : index
    %c0_135 = arith.constant 0 : index
    %385 = vector.load %arg6[%c6, %c0_134, %c0_135] : memref<8x4x64xf32, #tpu.memory_space<vmem>>, vector<1x4x64xf32>
    %386 = vector.shape_cast %385 : vector<1x4x64xf32> to vector<4x64xf32>
    %cst_136 = arith.constant dense<0.000000e+00> : vector<4x256xf32>
    %387 = tpu.matmul %386, %334, %cst_136 {dimension_numbers = #tpu.dot_dimension_numbers<[1], [0], [0], [1], [0, 0, 1, 1], [], []>} : vector<4x64xf32>, vector<64x256xf32>, vector<4x256xf32> -> vector<4x256xf32>
    %388 = vector.broadcast %336 : vector<1x256xf32> to vector<4x256xf32>
    %389 = arith.addf %387, %388 : vector<4x256xf32>
    %c6_137 = arith.constant 6 : index
    %c0_138 = arith.constant 0 : index
    %c0_139 = arith.constant 0 : index
    %390 = vector.load %arg7[%c6_137, %c0_138, %c0_139] : memref<8x4x256xf32, #tpu.memory_space<vmem>>, vector<1x4x256xf32>
    %391 = vector.shape_cast %390 : vector<1x4x256xf32> to vector<4x256xf32>
    %392 = vector.shape_cast %389 : vector<4x256xf32> to vector<1x4x256xf32>
    tpu.vector_store %arg7[%c6_137, %c0_138, %c0_139], %392 {strides = array<i32>} : memref<8x4x256xf32, #tpu.memory_space<vmem>>, vector<1x4x256xf32>,
    %c7 = arith.constant 7 : index
    %c0_140 = arith.constant 0 : index
    %c0_141 = arith.constant 0 : index
    %393 = vector.load %arg6[%c7, %c0_140, %c0_141] : memref<8x4x64xf32, #tpu.memory_space<vmem>>, vector<1x4x64xf32>
    %394 = vector.shape_cast %393 : vector<1x4x64xf32> to vector<4x64xf32>
    %cst_142 = arith.constant dense<0.000000e+00> : vector<4x256xf32>
    %395 = tpu.matmul %394, %334, %cst_142 {dimension_numbers = #tpu.dot_dimension_numbers<[1], [0], [0], [1], [0, 0, 1, 1], [], []>} : vector<4x64xf32>, vector<64x256xf32>, vector<4x256xf32> -> vector<4x256xf32>
    %396 = vector.broadcast %336 : vector<1x256xf32> to vector<4x256xf32>
    %397 = arith.addf %395, %396 : vector<4x256xf32>
    %c7_143 = arith.constant 7 : index
    %c0_144 = arith.constant 0 : index
    %c0_145 = arith.constant 0 : index
    %398 = vector.load %arg7[%c7_143, %c0_144, %c0_145] : memref<8x4x256xf32, #tpu.memory_space<vmem>>, vector<1x4x256xf32>
    %399 = vector.shape_cast %398 : vector<1x4x256xf32> to vector<4x256xf32>
    %400 = vector.shape_cast %397 : vector<4x256xf32> to vector<1x4x256xf32>
    tpu.vector_store %arg7[%c7_143, %c0_144, %c0_145], %400 {strides = array<i32>} : memref<8x4x256xf32, #tpu.memory_space<vmem>>, vector<1x4x256xf32>,
    %c1_146 = arith.constant 1 : index
    %c0_147 = arith.constant 0 : index
    %c0_148 = arith.constant 0 : index
    %401 = vector.load %arg2[%c1_146, %c0_147, %c0_148] : memref<2x64x128xf32, #tpu.memory_space<vmem>>, vector<1x64x128xf32>
    %402 = vector.shape_cast %401 : vector<1x64x128xf32> to vector<64x128xf32>
    %cst_149 = arith.constant 0.000000e+00 : f32
    %403 = vector.broadcast %cst_149 : f32 to vector<8x32xf32>
    %c0_i32_150 = arith.constant 0 : i32
    %c7_i32_151 = arith.constant 7 : i32
    %404 = arith.subi %c7_i32_151, %c0_i32_150 : i32
    %405 = arith.index_cast %c0_i32_150 : i32 to index
    %c0_152 = arith.constant 0 : index
    %c0_153 = arith.constant 0 : index
    %406 = vector.load %arg7[%405, %c0_152, %c0_153] : memref<8x4x256xf32, #tpu.memory_space<vmem>>, vector<1x4x256xf32>
    %407 = vector.shape_cast %406 : vector<1x4x256xf32> to vector<4x256xf32>
    %408 = vector.extract_strided_slice %407 {offsets = [0, 0], sizes = [4, 128], strides = [1, 1]} : vector<4x256xf32> to vector<4x128xf32>
    %409 = arith.index_cast %404 : i32 to index
    %c0_154 = arith.constant 0 : index
    %c0_155 = arith.constant 0 : index
    %410 = vector.load %arg7[%409, %c0_154, %c0_155] : memref<8x4x256xf32, #tpu.memory_space<vmem>>, vector<1x4x256xf32>
    %411 = vector.shape_cast %410 : vector<1x4x256xf32> to vector<4x256xf32>
    %412 = vector.extract_strided_slice %411 {offsets = [0, 128], sizes = [4, 128], strides = [1, 1]} : vector<4x256xf32> to vector<4x128xf32>
    %413 = tpu.concatenate %408, %412 in 0 : vector<4x128xf32>, vector<4x128xf32> -> vector<8x128xf32>
    %414 = tpu.concatenate %403, %403 in 1 : vector<8x32xf32>, vector<8x32xf32> -> vector<8x64xf32>
    %415 = arith.mulf %414, %9 : vector<8x64xf32>
    %cst_156 = arith.constant dense<0.000000e+00> : vector<8x128xf32>
    %416 = tpu.matmul %415, %402, %cst_156 {dimension_numbers = #tpu.dot_dimension_numbers<[1], [0], [0], [1], [0, 0, 1, 1], [], []>} : vector<8x64xf32>, vector<64x128xf32>, vector<8x128xf32> -> vector<8x128xf32>
    %417 = arith.addf %413, %416 : vector<8x128xf32>
    %418 = vector.extract_strided_slice %417 {offsets = [0, 0], sizes = [8, 96], strides = [1, 1]} : vector<8x128xf32> to vector<8x96xf32>
    %419 = arith.negf %418 : vector<8x96xf32>
    %420 = math.exp %419 : vector<8x96xf32>
    %cst_157 = arith.constant 1.000000e+00 : f32
    %421 = vector.broadcast %cst_157 : f32 to vector<8x96xf32>
    %422 = arith.addf %421, %420 : vector<8x96xf32>
    %423 = arith.divf %421, %422 : vector<8x96xf32>
    %424 = vector.extract_strided_slice %417 {offsets = [0, 96], sizes = [8, 32], strides = [1, 1]} : vector<8x128xf32> to vector<8x32xf32>
    %425 = math.tanh %424 : vector<8x32xf32>
    %426 = vector.extract_strided_slice %423 {offsets = [0, 32], sizes = [8, 32], strides = [1, 1]} : vector<8x96xf32> to vector<8x32xf32>
    %427 = arith.mulf %426, %403 : vector<8x32xf32>
    %428 = vector.extract_strided_slice %423 {offsets = [0, 0], sizes = [8, 32], strides = [1, 1]} : vector<8x96xf32> to vector<8x32xf32>
    %429 = arith.mulf %428, %425 : vector<8x32xf32>
    %430 = arith.addf %427, %429 : vector<8x32xf32>
    %431 = vector.extract_strided_slice %423 {offsets = [0, 64], sizes = [8, 32], strides = [1, 1]} : vector<8x96xf32> to vector<8x32xf32>
    %432 = math.tanh %430 : vector<8x32xf32>
    %433 = arith.mulf %431, %432 : vector<8x32xf32>
    %434 = vector.extract_strided_slice %433 {offsets = [0, 0], sizes = [4, 32], strides = [1, 1]} : vector<8x32xf32> to vector<4x32xf32>
    %435 = arith.index_cast %c0_i32_150 : i32 to index
    %c0_158 = arith.constant 0 : index
    %c0_159 = arith.constant 0 : index
    %436 = vector.load %arg5[%435, %c0_158, %c0_159] : memref<8x4x64xf32, #tpu.memory_space<vmem>>, vector<1x4x32xf32>
    %437 = vector.shape_cast %436 : vector<1x4x32xf32> to vector<4x32xf32>
    %438 = vector.shape_cast %434 : vector<4x32xf32> to vector<1x4x32xf32>
    tpu.vector_store %arg5[%435, %c0_158, %c0_159], %438 {strides = array<i32>} : memref<8x4x64xf32, #tpu.memory_space<vmem>>, vector<1x4x32xf32>,
    %439 = vector.extract_strided_slice %433 {offsets = [4, 0], sizes = [4, 32], strides = [1, 1]} : vector<8x32xf32> to vector<4x32xf32>
    %440 = arith.index_cast %404 : i32 to index
    %c0_160 = arith.constant 0 : index
    %c32_161 = arith.constant 32 : index
    %441 = vector.load %arg5[%440, %c0_160, %c32_161] : memref<8x4x64xf32, #tpu.memory_space<vmem>>, vector<1x4x32xf32>
    %442 = vector.shape_cast %441 : vector<1x4x32xf32> to vector<4x32xf32>
    %443 = vector.shape_cast %439 : vector<4x32xf32> to vector<1x4x32xf32>
    tpu.vector_store %arg5[%440, %c0_160, %c32_161], %443 {strides = array<i32>} : memref<8x4x64xf32, #tpu.memory_space<vmem>>, vector<1x4x32xf32>,
    %c1_i32_162 = arith.constant 1 : i32
    %c7_i32_163 = arith.constant 7 : i32
    %444 = arith.subi %c7_i32_163, %c1_i32_162 : i32
    %445 = arith.index_cast %c1_i32_162 : i32 to index
    %c0_164 = arith.constant 0 : index
    %c0_165 = arith.constant 0 : index
    %446 = vector.load %arg7[%445, %c0_164, %c0_165] : memref<8x4x256xf32, #tpu.memory_space<vmem>>, vector<1x4x256xf32>
    %447 = vector.shape_cast %446 : vector<1x4x256xf32> to vector<4x256xf32>
    %448 = vector.extract_strided_slice %447 {offsets = [0, 0], sizes = [4, 128], strides = [1, 1]} : vector<4x256xf32> to vector<4x128xf32>
    %449 = arith.index_cast %444 : i32 to index
    %c0_166 = arith.constant 0 : index
    %c0_167 = arith.constant 0 : index
    %450 = vector.load %arg7[%449, %c0_166, %c0_167] : memref<8x4x256xf32, #tpu.memory_space<vmem>>, vector<1x4x256xf32>
    %451 = vector.shape_cast %450 : vector<1x4x256xf32> to vector<4x256xf32>
    %452 = vector.extract_strided_slice %451 {offsets = [0, 128], sizes = [4, 128], strides = [1, 1]} : vector<4x256xf32> to vector<4x128xf32>
    %453 = tpu.concatenate %448, %452 in 0 : vector<4x128xf32>, vector<4x128xf32> -> vector<8x128xf32>
    %454 = tpu.concatenate %433, %433 in 1 : vector<8x32xf32>, vector<8x32xf32> -> vector<8x64xf32>
    %455 = arith.mulf %454, %9 : vector<8x64xf32>
    %cst_168 = arith.constant dense<0.000000e+00> : vector<8x128xf32>
    %456 = tpu.matmul %455, %402, %cst_168 {dimension_numbers = #tpu.dot_dimension_numbers<[1], [0], [0], [1], [0, 0, 1, 1], [], []>} : vector<8x64xf32>, vector<64x128xf32>, vector<8x128xf32> -> vector<8x128xf32>
    %457 = arith.addf %453, %456 : vector<8x128xf32>
    %458 = vector.extract_strided_slice %457 {offsets = [0, 0], sizes = [8, 96], strides = [1, 1]} : vector<8x128xf32> to vector<8x96xf32>
    %459 = arith.negf %458 : vector<8x96xf32>
    %460 = math.exp %459 : vector<8x96xf32>
    %cst_169 = arith.constant 1.000000e+00 : f32
    %461 = vector.broadcast %cst_169 : f32 to vector<8x96xf32>
    %462 = arith.addf %461, %460 : vector<8x96xf32>
    %463 = arith.divf %461, %462 : vector<8x96xf32>
    %464 = vector.extract_strided_slice %457 {offsets = [0, 96], sizes = [8, 32], strides = [1, 1]} : vector<8x128xf32> to vector<8x32xf32>
    %465 = math.tanh %464 : vector<8x32xf32>
    %466 = vector.extract_strided_slice %463 {offsets = [0, 32], sizes = [8, 32], strides = [1, 1]} : vector<8x96xf32> to vector<8x32xf32>
    %467 = arith.mulf %466, %430 : vector<8x32xf32>
    %468 = vector.extract_strided_slice %463 {offsets = [0, 0], sizes = [8, 32], strides = [1, 1]} : vector<8x96xf32> to vector<8x32xf32>
    %469 = arith.mulf %468, %465 : vector<8x32xf32>
    %470 = arith.addf %467, %469 : vector<8x32xf32>
    %471 = vector.extract_strided_slice %463 {offsets = [0, 64], sizes = [8, 32], strides = [1, 1]} : vector<8x96xf32> to vector<8x32xf32>
    %472 = math.tanh %470 : vector<8x32xf32>
    %473 = arith.mulf %471, %472 : vector<8x32xf32>
    %474 = vector.extract_strided_slice %473 {offsets = [0, 0], sizes = [4, 32], strides = [1, 1]} : vector<8x32xf32> to vector<4x32xf32>
    %475 = arith.index_cast %c1_i32_162 : i32 to index
    %c0_170 = arith.constant 0 : index
    %c0_171 = arith.constant 0 : index
    %476 = vector.load %arg5[%475, %c0_170, %c0_171] : memref<8x4x64xf32, #tpu.memory_space<vmem>>, vector<1x4x32xf32>
    %477 = vector.shape_cast %476 : vector<1x4x32xf32> to vector<4x32xf32>
    %478 = vector.shape_cast %474 : vector<4x32xf32> to vector<1x4x32xf32>
    tpu.vector_store %arg5[%475, %c0_170, %c0_171], %478 {strides = array<i32>} : memref<8x4x64xf32, #tpu.memory_space<vmem>>, vector<1x4x32xf32>,
    %479 = vector.extract_strided_slice %473 {offsets = [4, 0], sizes = [4, 32], strides = [1, 1]} : vector<8x32xf32> to vector<4x32xf32>
    %480 = arith.index_cast %444 : i32 to index
    %c0_172 = arith.constant 0 : index
    %c32_173 = arith.constant 32 : index
    %481 = vector.load %arg5[%480, %c0_172, %c32_173] : memref<8x4x64xf32, #tpu.memory_space<vmem>>, vector<1x4x32xf32>
    %482 = vector.shape_cast %481 : vector<1x4x32xf32> to vector<4x32xf32>
    %483 = vector.shape_cast %479 : vector<4x32xf32> to vector<1x4x32xf32>
    tpu.vector_store %arg5[%480, %c0_172, %c32_173], %483 {strides = array<i32>} : memref<8x4x64xf32, #tpu.memory_space<vmem>>, vector<1x4x32xf32>,
    %c2_i32_174 = arith.constant 2 : i32
    %c7_i32_175 = arith.constant 7 : i32
    %484 = arith.subi %c7_i32_175, %c2_i32_174 : i32
    %485 = arith.index_cast %c2_i32_174 : i32 to index
    %c0_176 = arith.constant 0 : index
    %c0_177 = arith.constant 0 : index
    %486 = vector.load %arg7[%485, %c0_176, %c0_177] : memref<8x4x256xf32, #tpu.memory_space<vmem>>, vector<1x4x256xf32>
    %487 = vector.shape_cast %486 : vector<1x4x256xf32> to vector<4x256xf32>
    %488 = vector.extract_strided_slice %487 {offsets = [0, 0], sizes = [4, 128], strides = [1, 1]} : vector<4x256xf32> to vector<4x128xf32>
    %489 = arith.index_cast %484 : i32 to index
    %c0_178 = arith.constant 0 : index
    %c0_179 = arith.constant 0 : index
    %490 = vector.load %arg7[%489, %c0_178, %c0_179] : memref<8x4x256xf32, #tpu.memory_space<vmem>>, vector<1x4x256xf32>
    %491 = vector.shape_cast %490 : vector<1x4x256xf32> to vector<4x256xf32>
    %492 = vector.extract_strided_slice %491 {offsets = [0, 128], sizes = [4, 128], strides = [1, 1]} : vector<4x256xf32> to vector<4x128xf32>
    %493 = tpu.concatenate %488, %492 in 0 : vector<4x128xf32>, vector<4x128xf32> -> vector<8x128xf32>
    %494 = tpu.concatenate %473, %473 in 1 : vector<8x32xf32>, vector<8x32xf32> -> vector<8x64xf32>
    %495 = arith.mulf %494, %9 : vector<8x64xf32>
    %cst_180 = arith.constant dense<0.000000e+00> : vector<8x128xf32>
    %496 = tpu.matmul %495, %402, %cst_180 {dimension_numbers = #tpu.dot_dimension_numbers<[1], [0], [0], [1], [0, 0, 1, 1], [], []>} : vector<8x64xf32>, vector<64x128xf32>, vector<8x128xf32> -> vector<8x128xf32>
    %497 = arith.addf %493, %496 : vector<8x128xf32>
    %498 = vector.extract_strided_slice %497 {offsets = [0, 0], sizes = [8, 96], strides = [1, 1]} : vector<8x128xf32> to vector<8x96xf32>
    %499 = arith.negf %498 : vector<8x96xf32>
    %500 = math.exp %499 : vector<8x96xf32>
    %cst_181 = arith.constant 1.000000e+00 : f32
    %501 = vector.broadcast %cst_181 : f32 to vector<8x96xf32>
    %502 = arith.addf %501, %500 : vector<8x96xf32>
    %503 = arith.divf %501, %502 : vector<8x96xf32>
    %504 = vector.extract_strided_slice %497 {offsets = [0, 96], sizes = [8, 32], strides = [1, 1]} : vector<8x128xf32> to vector<8x32xf32>
    %505 = math.tanh %504 : vector<8x32xf32>
    %506 = vector.extract_strided_slice %503 {offsets = [0, 32], sizes = [8, 32], strides = [1, 1]} : vector<8x96xf32> to vector<8x32xf32>
    %507 = arith.mulf %506, %470 : vector<8x32xf32>
    %508 = vector.extract_strided_slice %503 {offsets = [0, 0], sizes = [8, 32], strides = [1, 1]} : vector<8x96xf32> to vector<8x32xf32>
    %509 = arith.mulf %508, %505 : vector<8x32xf32>
    %510 = arith.addf %507, %509 : vector<8x32xf32>
    %511 = vector.extract_strided_slice %503 {offsets = [0, 64], sizes = [8, 32], strides = [1, 1]} : vector<8x96xf32> to vector<8x32xf32>
    %512 = math.tanh %510 : vector<8x32xf32>
    %513 = arith.mulf %511, %512 : vector<8x32xf32>
    %514 = vector.extract_strided_slice %513 {offsets = [0, 0], sizes = [4, 32], strides = [1, 1]} : vector<8x32xf32> to vector<4x32xf32>
    %515 = arith.index_cast %c2_i32_174 : i32 to index
    %c0_182 = arith.constant 0 : index
    %c0_183 = arith.constant 0 : index
    %516 = vector.load %arg5[%515, %c0_182, %c0_183] : memref<8x4x64xf32, #tpu.memory_space<vmem>>, vector<1x4x32xf32>
    %517 = vector.shape_cast %516 : vector<1x4x32xf32> to vector<4x32xf32>
    %518 = vector.shape_cast %514 : vector<4x32xf32> to vector<1x4x32xf32>
    tpu.vector_store %arg5[%515, %c0_182, %c0_183], %518 {strides = array<i32>} : memref<8x4x64xf32, #tpu.memory_space<vmem>>, vector<1x4x32xf32>,
    %519 = vector.extract_strided_slice %513 {offsets = [4, 0], sizes = [4, 32], strides = [1, 1]} : vector<8x32xf32> to vector<4x32xf32>
    %520 = arith.index_cast %484 : i32 to index
    %c0_184 = arith.constant 0 : index
    %c32_185 = arith.constant 32 : index
    %521 = vector.load %arg5[%520, %c0_184, %c32_185] : memref<8x4x64xf32, #tpu.memory_space<vmem>>, vector<1x4x32xf32>
    %522 = vector.shape_cast %521 : vector<1x4x32xf32> to vector<4x32xf32>
    %523 = vector.shape_cast %519 : vector<4x32xf32> to vector<1x4x32xf32>
    tpu.vector_store %arg5[%520, %c0_184, %c32_185], %523 {strides = array<i32>} : memref<8x4x64xf32, #tpu.memory_space<vmem>>, vector<1x4x32xf32>,
    %c3_i32_186 = arith.constant 3 : i32
    %c7_i32_187 = arith.constant 7 : i32
    %524 = arith.subi %c7_i32_187, %c3_i32_186 : i32
    %525 = arith.index_cast %c3_i32_186 : i32 to index
    %c0_188 = arith.constant 0 : index
    %c0_189 = arith.constant 0 : index
    %526 = vector.load %arg7[%525, %c0_188, %c0_189] : memref<8x4x256xf32, #tpu.memory_space<vmem>>, vector<1x4x256xf32>
    %527 = vector.shape_cast %526 : vector<1x4x256xf32> to vector<4x256xf32>
    %528 = vector.extract_strided_slice %527 {offsets = [0, 0], sizes = [4, 128], strides = [1, 1]} : vector<4x256xf32> to vector<4x128xf32>
    %529 = arith.index_cast %524 : i32 to index
    %c0_190 = arith.constant 0 : index
    %c0_191 = arith.constant 0 : index
    %530 = vector.load %arg7[%529, %c0_190, %c0_191] : memref<8x4x256xf32, #tpu.memory_space<vmem>>, vector<1x4x256xf32>
    %531 = vector.shape_cast %530 : vector<1x4x256xf32> to vector<4x256xf32>
    %532 = vector.extract_strided_slice %531 {offsets = [0, 128], sizes = [4, 128], strides = [1, 1]} : vector<4x256xf32> to vector<4x128xf32>
    %533 = tpu.concatenate %528, %532 in 0 : vector<4x128xf32>, vector<4x128xf32> -> vector<8x128xf32>
    %534 = tpu.concatenate %513, %513 in 1 : vector<8x32xf32>, vector<8x32xf32> -> vector<8x64xf32>
    %535 = arith.mulf %534, %9 : vector<8x64xf32>
    %cst_192 = arith.constant dense<0.000000e+00> : vector<8x128xf32>
    %536 = tpu.matmul %535, %402, %cst_192 {dimension_numbers = #tpu.dot_dimension_numbers<[1], [0], [0], [1], [0, 0, 1, 1], [], []>} : vector<8x64xf32>, vector<64x128xf32>, vector<8x128xf32> -> vector<8x128xf32>
    %537 = arith.addf %533, %536 : vector<8x128xf32>
    %538 = vector.extract_strided_slice %537 {offsets = [0, 0], sizes = [8, 96], strides = [1, 1]} : vector<8x128xf32> to vector<8x96xf32>
    %539 = arith.negf %538 : vector<8x96xf32>
    %540 = math.exp %539 : vector<8x96xf32>
    %cst_193 = arith.constant 1.000000e+00 : f32
    %541 = vector.broadcast %cst_193 : f32 to vector<8x96xf32>
    %542 = arith.addf %541, %540 : vector<8x96xf32>
    %543 = arith.divf %541, %542 : vector<8x96xf32>
    %544 = vector.extract_strided_slice %537 {offsets = [0, 96], sizes = [8, 32], strides = [1, 1]} : vector<8x128xf32> to vector<8x32xf32>
    %545 = math.tanh %544 : vector<8x32xf32>
    %546 = vector.extract_strided_slice %543 {offsets = [0, 32], sizes = [8, 32], strides = [1, 1]} : vector<8x96xf32> to vector<8x32xf32>
    %547 = arith.mulf %546, %510 : vector<8x32xf32>
    %548 = vector.extract_strided_slice %543 {offsets = [0, 0], sizes = [8, 32], strides = [1, 1]} : vector<8x96xf32> to vector<8x32xf32>
    %549 = arith.mulf %548, %545 : vector<8x32xf32>
    %550 = arith.addf %547, %549 : vector<8x32xf32>
    %551 = vector.extract_strided_slice %543 {offsets = [0, 64], sizes = [8, 32], strides = [1, 1]} : vector<8x96xf32> to vector<8x32xf32>
    %552 = math.tanh %550 : vector<8x32xf32>
    %553 = arith.mulf %551, %552 : vector<8x32xf32>
    %554 = vector.extract_strided_slice %553 {offsets = [0, 0], sizes = [4, 32], strides = [1, 1]} : vector<8x32xf32> to vector<4x32xf32>
    %555 = arith.index_cast %c3_i32_186 : i32 to index
    %c0_194 = arith.constant 0 : index
    %c0_195 = arith.constant 0 : index
    %556 = vector.load %arg5[%555, %c0_194, %c0_195] : memref<8x4x64xf32, #tpu.memory_space<vmem>>, vector<1x4x32xf32>
    %557 = vector.shape_cast %556 : vector<1x4x32xf32> to vector<4x32xf32>
    %558 = vector.shape_cast %554 : vector<4x32xf32> to vector<1x4x32xf32>
    tpu.vector_store %arg5[%555, %c0_194, %c0_195], %558 {strides = array<i32>} : memref<8x4x64xf32, #tpu.memory_space<vmem>>, vector<1x4x32xf32>,
    %559 = vector.extract_strided_slice %553 {offsets = [4, 0], sizes = [4, 32], strides = [1, 1]} : vector<8x32xf32> to vector<4x32xf32>
    %560 = arith.index_cast %524 : i32 to index
    %c0_196 = arith.constant 0 : index
    %c32_197 = arith.constant 32 : index
    %561 = vector.load %arg5[%560, %c0_196, %c32_197] : memref<8x4x64xf32, #tpu.memory_space<vmem>>, vector<1x4x32xf32>
    %562 = vector.shape_cast %561 : vector<1x4x32xf32> to vector<4x32xf32>
    %563 = vector.shape_cast %559 : vector<4x32xf32> to vector<1x4x32xf32>
    tpu.vector_store %arg5[%560, %c0_196, %c32_197], %563 {strides = array<i32>} : memref<8x4x64xf32, #tpu.memory_space<vmem>>, vector<1x4x32xf32>,
    %c4_i32_198 = arith.constant 4 : i32
    %c7_i32_199 = arith.constant 7 : i32
    %564 = arith.subi %c7_i32_199, %c4_i32_198 : i32
    %565 = arith.index_cast %c4_i32_198 : i32 to index
    %c0_200 = arith.constant 0 : index
    %c0_201 = arith.constant 0 : index
    %566 = vector.load %arg7[%565, %c0_200, %c0_201] : memref<8x4x256xf32, #tpu.memory_space<vmem>>, vector<1x4x256xf32>
    %567 = vector.shape_cast %566 : vector<1x4x256xf32> to vector<4x256xf32>
    %568 = vector.extract_strided_slice %567 {offsets = [0, 0], sizes = [4, 128], strides = [1, 1]} : vector<4x256xf32> to vector<4x128xf32>
    %569 = arith.index_cast %564 : i32 to index
    %c0_202 = arith.constant 0 : index
    %c0_203 = arith.constant 0 : index
    %570 = vector.load %arg7[%569, %c0_202, %c0_203] : memref<8x4x256xf32, #tpu.memory_space<vmem>>, vector<1x4x256xf32>
    %571 = vector.shape_cast %570 : vector<1x4x256xf32> to vector<4x256xf32>
    %572 = vector.extract_strided_slice %571 {offsets = [0, 128], sizes = [4, 128], strides = [1, 1]} : vector<4x256xf32> to vector<4x128xf32>
    %573 = tpu.concatenate %568, %572 in 0 : vector<4x128xf32>, vector<4x128xf32> -> vector<8x128xf32>
    %574 = tpu.concatenate %553, %553 in 1 : vector<8x32xf32>, vector<8x32xf32> -> vector<8x64xf32>
    %575 = arith.mulf %574, %9 : vector<8x64xf32>
    %cst_204 = arith.constant dense<0.000000e+00> : vector<8x128xf32>
    %576 = tpu.matmul %575, %402, %cst_204 {dimension_numbers = #tpu.dot_dimension_numbers<[1], [0], [0], [1], [0, 0, 1, 1], [], []>} : vector<8x64xf32>, vector<64x128xf32>, vector<8x128xf32> -> vector<8x128xf32>
    %577 = arith.addf %573, %576 : vector<8x128xf32>
    %578 = vector.extract_strided_slice %577 {offsets = [0, 0], sizes = [8, 96], strides = [1, 1]} : vector<8x128xf32> to vector<8x96xf32>
    %579 = arith.negf %578 : vector<8x96xf32>
    %580 = math.exp %579 : vector<8x96xf32>
    %cst_205 = arith.constant 1.000000e+00 : f32
    %581 = vector.broadcast %cst_205 : f32 to vector<8x96xf32>
    %582 = arith.addf %581, %580 : vector<8x96xf32>
    %583 = arith.divf %581, %582 : vector<8x96xf32>
    %584 = vector.extract_strided_slice %577 {offsets = [0, 96], sizes = [8, 32], strides = [1, 1]} : vector<8x128xf32> to vector<8x32xf32>
    %585 = math.tanh %584 : vector<8x32xf32>
    %586 = vector.extract_strided_slice %583 {offsets = [0, 32], sizes = [8, 32], strides = [1, 1]} : vector<8x96xf32> to vector<8x32xf32>
    %587 = arith.mulf %586, %550 : vector<8x32xf32>
    %588 = vector.extract_strided_slice %583 {offsets = [0, 0], sizes = [8, 32], strides = [1, 1]} : vector<8x96xf32> to vector<8x32xf32>
    %589 = arith.mulf %588, %585 : vector<8x32xf32>
    %590 = arith.addf %587, %589 : vector<8x32xf32>
    %591 = vector.extract_strided_slice %583 {offsets = [0, 64], sizes = [8, 32], strides = [1, 1]} : vector<8x96xf32> to vector<8x32xf32>
    %592 = math.tanh %590 : vector<8x32xf32>
    %593 = arith.mulf %591, %592 : vector<8x32xf32>
    %594 = vector.extract_strided_slice %593 {offsets = [0, 0], sizes = [4, 32], strides = [1, 1]} : vector<8x32xf32> to vector<4x32xf32>
    %595 = arith.index_cast %c4_i32_198 : i32 to index
    %c0_206 = arith.constant 0 : index
    %c0_207 = arith.constant 0 : index
    %596 = vector.load %arg5[%595, %c0_206, %c0_207] : memref<8x4x64xf32, #tpu.memory_space<vmem>>, vector<1x4x32xf32>
    %597 = vector.shape_cast %596 : vector<1x4x32xf32> to vector<4x32xf32>
    %598 = vector.shape_cast %594 : vector<4x32xf32> to vector<1x4x32xf32>
    tpu.vector_store %arg5[%595, %c0_206, %c0_207], %598 {strides = array<i32>} : memref<8x4x64xf32, #tpu.memory_space<vmem>>, vector<1x4x32xf32>,
    %599 = vector.extract_strided_slice %593 {offsets = [4, 0], sizes = [4, 32], strides = [1, 1]} : vector<8x32xf32> to vector<4x32xf32>
    %600 = arith.index_cast %564 : i32 to index
    %c0_208 = arith.constant 0 : index
    %c32_209 = arith.constant 32 : index
    %601 = vector.load %arg5[%600, %c0_208, %c32_209] : memref<8x4x64xf32, #tpu.memory_space<vmem>>, vector<1x4x32xf32>
    %602 = vector.shape_cast %601 : vector<1x4x32xf32> to vector<4x32xf32>
    %603 = vector.shape_cast %599 : vector<4x32xf32> to vector<1x4x32xf32>
    tpu.vector_store %arg5[%600, %c0_208, %c32_209], %603 {strides = array<i32>} : memref<8x4x64xf32, #tpu.memory_space<vmem>>, vector<1x4x32xf32>,
    %c5_i32_210 = arith.constant 5 : i32
    %c7_i32_211 = arith.constant 7 : i32
    %604 = arith.subi %c7_i32_211, %c5_i32_210 : i32
    %605 = arith.index_cast %c5_i32_210 : i32 to index
    %c0_212 = arith.constant 0 : index
    %c0_213 = arith.constant 0 : index
    %606 = vector.load %arg7[%605, %c0_212, %c0_213] : memref<8x4x256xf32, #tpu.memory_space<vmem>>, vector<1x4x256xf32>
    %607 = vector.shape_cast %606 : vector<1x4x256xf32> to vector<4x256xf32>
    %608 = vector.extract_strided_slice %607 {offsets = [0, 0], sizes = [4, 128], strides = [1, 1]} : vector<4x256xf32> to vector<4x128xf32>
    %609 = arith.index_cast %604 : i32 to index
    %c0_214 = arith.constant 0 : index
    %c0_215 = arith.constant 0 : index
    %610 = vector.load %arg7[%609, %c0_214, %c0_215] : memref<8x4x256xf32, #tpu.memory_space<vmem>>, vector<1x4x256xf32>
    %611 = vector.shape_cast %610 : vector<1x4x256xf32> to vector<4x256xf32>
    %612 = vector.extract_strided_slice %611 {offsets = [0, 128], sizes = [4, 128], strides = [1, 1]} : vector<4x256xf32> to vector<4x128xf32>
    %613 = tpu.concatenate %608, %612 in 0 : vector<4x128xf32>, vector<4x128xf32> -> vector<8x128xf32>
    %614 = tpu.concatenate %593, %593 in 1 : vector<8x32xf32>, vector<8x32xf32> -> vector<8x64xf32>
    %615 = arith.mulf %614, %9 : vector<8x64xf32>
    %cst_216 = arith.constant dense<0.000000e+00> : vector<8x128xf32>
    %616 = tpu.matmul %615, %402, %cst_216 {dimension_numbers = #tpu.dot_dimension_numbers<[1], [0], [0], [1], [0, 0, 1, 1], [], []>} : vector<8x64xf32>, vector<64x128xf32>, vector<8x128xf32> -> vector<8x128xf32>
    %617 = arith.addf %613, %616 : vector<8x128xf32>
    %618 = vector.extract_strided_slice %617 {offsets = [0, 0], sizes = [8, 96], strides = [1, 1]} : vector<8x128xf32> to vector<8x96xf32>
    %619 = arith.negf %618 : vector<8x96xf32>
    %620 = math.exp %619 : vector<8x96xf32>
    %cst_217 = arith.constant 1.000000e+00 : f32
    %621 = vector.broadcast %cst_217 : f32 to vector<8x96xf32>
    %622 = arith.addf %621, %620 : vector<8x96xf32>
    %623 = arith.divf %621, %622 : vector<8x96xf32>
    %624 = vector.extract_strided_slice %617 {offsets = [0, 96], sizes = [8, 32], strides = [1, 1]} : vector<8x128xf32> to vector<8x32xf32>
    %625 = math.tanh %624 : vector<8x32xf32>
    %626 = vector.extract_strided_slice %623 {offsets = [0, 32], sizes = [8, 32], strides = [1, 1]} : vector<8x96xf32> to vector<8x32xf32>
    %627 = arith.mulf %626, %590 : vector<8x32xf32>
    %628 = vector.extract_strided_slice %623 {offsets = [0, 0], sizes = [8, 32], strides = [1, 1]} : vector<8x96xf32> to vector<8x32xf32>
    %629 = arith.mulf %628, %625 : vector<8x32xf32>
    %630 = arith.addf %627, %629 : vector<8x32xf32>
    %631 = vector.extract_strided_slice %623 {offsets = [0, 64], sizes = [8, 32], strides = [1, 1]} : vector<8x96xf32> to vector<8x32xf32>
    %632 = math.tanh %630 : vector<8x32xf32>
    %633 = arith.mulf %631, %632 : vector<8x32xf32>
    %634 = vector.extract_strided_slice %633 {offsets = [0, 0], sizes = [4, 32], strides = [1, 1]} : vector<8x32xf32> to vector<4x32xf32>
    %635 = arith.index_cast %c5_i32_210 : i32 to index
    %c0_218 = arith.constant 0 : index
    %c0_219 = arith.constant 0 : index
    %636 = vector.load %arg5[%635, %c0_218, %c0_219] : memref<8x4x64xf32, #tpu.memory_space<vmem>>, vector<1x4x32xf32>
    %637 = vector.shape_cast %636 : vector<1x4x32xf32> to vector<4x32xf32>
    %638 = vector.shape_cast %634 : vector<4x32xf32> to vector<1x4x32xf32>
    tpu.vector_store %arg5[%635, %c0_218, %c0_219], %638 {strides = array<i32>} : memref<8x4x64xf32, #tpu.memory_space<vmem>>, vector<1x4x32xf32>,
    %639 = vector.extract_strided_slice %633 {offsets = [4, 0], sizes = [4, 32], strides = [1, 1]} : vector<8x32xf32> to vector<4x32xf32>
    %640 = arith.index_cast %604 : i32 to index
    %c0_220 = arith.constant 0 : index
    %c32_221 = arith.constant 32 : index
    %641 = vector.load %arg5[%640, %c0_220, %c32_221] : memref<8x4x64xf32, #tpu.memory_space<vmem>>, vector<1x4x32xf32>
    %642 = vector.shape_cast %641 : vector<1x4x32xf32> to vector<4x32xf32>
    %643 = vector.shape_cast %639 : vector<4x32xf32> to vector<1x4x32xf32>
    tpu.vector_store %arg5[%640, %c0_220, %c32_221], %643 {strides = array<i32>} : memref<8x4x64xf32, #tpu.memory_space<vmem>>, vector<1x4x32xf32>,
    %c6_i32_222 = arith.constant 6 : i32
    %c7_i32_223 = arith.constant 7 : i32
    %644 = arith.subi %c7_i32_223, %c6_i32_222 : i32
    %645 = arith.index_cast %c6_i32_222 : i32 to index
    %c0_224 = arith.constant 0 : index
    %c0_225 = arith.constant 0 : index
    %646 = vector.load %arg7[%645, %c0_224, %c0_225] : memref<8x4x256xf32, #tpu.memory_space<vmem>>, vector<1x4x256xf32>
    %647 = vector.shape_cast %646 : vector<1x4x256xf32> to vector<4x256xf32>
    %648 = vector.extract_strided_slice %647 {offsets = [0, 0], sizes = [4, 128], strides = [1, 1]} : vector<4x256xf32> to vector<4x128xf32>
    %649 = arith.index_cast %644 : i32 to index
    %c0_226 = arith.constant 0 : index
    %c0_227 = arith.constant 0 : index
    %650 = vector.load %arg7[%649, %c0_226, %c0_227] : memref<8x4x256xf32, #tpu.memory_space<vmem>>, vector<1x4x256xf32>
    %651 = vector.shape_cast %650 : vector<1x4x256xf32> to vector<4x256xf32>
    %652 = vector.extract_strided_slice %651 {offsets = [0, 128], sizes = [4, 128], strides = [1, 1]} : vector<4x256xf32> to vector<4x128xf32>
    %653 = tpu.concatenate %648, %652 in 0 : vector<4x128xf32>, vector<4x128xf32> -> vector<8x128xf32>
    %654 = tpu.concatenate %633, %633 in 1 : vector<8x32xf32>, vector<8x32xf32> -> vector<8x64xf32>
    %655 = arith.mulf %654, %9 : vector<8x64xf32>
    %cst_228 = arith.constant dense<0.000000e+00> : vector<8x128xf32>
    %656 = tpu.matmul %655, %402, %cst_228 {dimension_numbers = #tpu.dot_dimension_numbers<[1], [0], [0], [1], [0, 0, 1, 1], [], []>} : vector<8x64xf32>, vector<64x128xf32>, vector<8x128xf32> -> vector<8x128xf32>
    %657 = arith.addf %653, %656 : vector<8x128xf32>
    %658 = vector.extract_strided_slice %657 {offsets = [0, 0], sizes = [8, 96], strides = [1, 1]} : vector<8x128xf32> to vector<8x96xf32>
    %659 = arith.negf %658 : vector<8x96xf32>
    %660 = math.exp %659 : vector<8x96xf32>
    %cst_229 = arith.constant 1.000000e+00 : f32
    %661 = vector.broadcast %cst_229 : f32 to vector<8x96xf32>
    %662 = arith.addf %661, %660 : vector<8x96xf32>
    %663 = arith.divf %661, %662 : vector<8x96xf32>
    %664 = vector.extract_strided_slice %657 {offsets = [0, 96], sizes = [8, 32], strides = [1, 1]} : vector<8x128xf32> to vector<8x32xf32>
    %665 = math.tanh %664 : vector<8x32xf32>
    %666 = vector.extract_strided_slice %663 {offsets = [0, 32], sizes = [8, 32], strides = [1, 1]} : vector<8x96xf32> to vector<8x32xf32>
    %667 = arith.mulf %666, %630 : vector<8x32xf32>
    %668 = vector.extract_strided_slice %663 {offsets = [0, 0], sizes = [8, 32], strides = [1, 1]} : vector<8x96xf32> to vector<8x32xf32>
    %669 = arith.mulf %668, %665 : vector<8x32xf32>
    %670 = arith.addf %667, %669 : vector<8x32xf32>
    %671 = vector.extract_strided_slice %663 {offsets = [0, 64], sizes = [8, 32], strides = [1, 1]} : vector<8x96xf32> to vector<8x32xf32>
    %672 = math.tanh %670 : vector<8x32xf32>
    %673 = arith.mulf %671, %672 : vector<8x32xf32>
    %674 = vector.extract_strided_slice %673 {offsets = [0, 0], sizes = [4, 32], strides = [1, 1]} : vector<8x32xf32> to vector<4x32xf32>
    %675 = arith.index_cast %c6_i32_222 : i32 to index
    %c0_230 = arith.constant 0 : index
    %c0_231 = arith.constant 0 : index
    %676 = vector.load %arg5[%675, %c0_230, %c0_231] : memref<8x4x64xf32, #tpu.memory_space<vmem>>, vector<1x4x32xf32>
    %677 = vector.shape_cast %676 : vector<1x4x32xf32> to vector<4x32xf32>
    %678 = vector.shape_cast %674 : vector<4x32xf32> to vector<1x4x32xf32>
    tpu.vector_store %arg5[%675, %c0_230, %c0_231], %678 {strides = array<i32>} : memref<8x4x64xf32, #tpu.memory_space<vmem>>, vector<1x4x32xf32>,
    %679 = vector.extract_strided_slice %673 {offsets = [4, 0], sizes = [4, 32], strides = [1, 1]} : vector<8x32xf32> to vector<4x32xf32>
    %680 = arith.index_cast %644 : i32 to index
    %c0_232 = arith.constant 0 : index
    %c32_233 = arith.constant 32 : index
    %681 = vector.load %arg5[%680, %c0_232, %c32_233] : memref<8x4x64xf32, #tpu.memory_space<vmem>>, vector<1x4x32xf32>
    %682 = vector.shape_cast %681 : vector<1x4x32xf32> to vector<4x32xf32>
    %683 = vector.shape_cast %679 : vector<4x32xf32> to vector<1x4x32xf32>
    tpu.vector_store %arg5[%680, %c0_232, %c32_233], %683 {strides = array<i32>} : memref<8x4x64xf32, #tpu.memory_space<vmem>>, vector<1x4x32xf32>,
    %c7_i32_234 = arith.constant 7 : i32
    %c7_i32_235 = arith.constant 7 : i32
    %684 = arith.subi %c7_i32_235, %c7_i32_234 : i32
    %685 = arith.index_cast %c7_i32_234 : i32 to index
    %c0_236 = arith.constant 0 : index
    %c0_237 = arith.constant 0 : index
    %686 = vector.load %arg7[%685, %c0_236, %c0_237] : memref<8x4x256xf32, #tpu.memory_space<vmem>>, vector<1x4x256xf32>
    %687 = vector.shape_cast %686 : vector<1x4x256xf32> to vector<4x256xf32>
    %688 = vector.extract_strided_slice %687 {offsets = [0, 0], sizes = [4, 128], strides = [1, 1]} : vector<4x256xf32> to vector<4x128xf32>
    %689 = arith.index_cast %684 : i32 to index
    %c0_238 = arith.constant 0 : index
    %c0_239 = arith.constant 0 : index
    %690 = vector.load %arg7[%689, %c0_238, %c0_239] : memref<8x4x256xf32, #tpu.memory_space<vmem>>, vector<1x4x256xf32>
    %691 = vector.shape_cast %690 : vector<1x4x256xf32> to vector<4x256xf32>
    %692 = vector.extract_strided_slice %691 {offsets = [0, 128], sizes = [4, 128], strides = [1, 1]} : vector<4x256xf32> to vector<4x128xf32>
    %693 = tpu.concatenate %688, %692 in 0 : vector<4x128xf32>, vector<4x128xf32> -> vector<8x128xf32>
    %694 = tpu.concatenate %673, %673 in 1 : vector<8x32xf32>, vector<8x32xf32> -> vector<8x64xf32>
    %695 = arith.mulf %694, %9 : vector<8x64xf32>
    %cst_240 = arith.constant dense<0.000000e+00> : vector<8x128xf32>
    %696 = tpu.matmul %695, %402, %cst_240 {dimension_numbers = #tpu.dot_dimension_numbers<[1], [0], [0], [1], [0, 0, 1, 1], [], []>} : vector<8x64xf32>, vector<64x128xf32>, vector<8x128xf32> -> vector<8x128xf32>
    %697 = arith.addf %693, %696 : vector<8x128xf32>
    %698 = vector.extract_strided_slice %697 {offsets = [0, 0], sizes = [8, 96], strides = [1, 1]} : vector<8x128xf32> to vector<8x96xf32>
    %699 = arith.negf %698 : vector<8x96xf32>
    %700 = math.exp %699 : vector<8x96xf32>
    %cst_241 = arith.constant 1.000000e+00 : f32
    %701 = vector.broadcast %cst_241 : f32 to vector<8x96xf32>
    %702 = arith.addf %701, %700 : vector<8x96xf32>
    %703 = arith.divf %701, %702 : vector<8x96xf32>
    %704 = vector.extract_strided_slice %697 {offsets = [0, 96], sizes = [8, 32], strides = [1, 1]} : vector<8x128xf32> to vector<8x32xf32>
    %705 = math.tanh %704 : vector<8x32xf32>
    %706 = vector.extract_strided_slice %703 {offsets = [0, 32], sizes = [8, 32], strides = [1, 1]} : vector<8x96xf32> to vector<8x32xf32>
    %707 = arith.mulf %706, %670 : vector<8x32xf32>
    %708 = vector.extract_strided_slice %703 {offsets = [0, 0], sizes = [8, 32], strides = [1, 1]} : vector<8x96xf32> to vector<8x32xf32>
    %709 = arith.mulf %708, %705 : vector<8x32xf32>
    %710 = arith.addf %707, %709 : vector<8x32xf32>
    %711 = vector.extract_strided_slice %703 {offsets = [0, 64], sizes = [8, 32], strides = [1, 1]} : vector<8x96xf32> to vector<8x32xf32>
    %712 = math.tanh %710 : vector<8x32xf32>
    %713 = arith.mulf %711, %712 : vector<8x32xf32>
    %714 = vector.extract_strided_slice %713 {offsets = [0, 0], sizes = [4, 32], strides = [1, 1]} : vector<8x32xf32> to vector<4x32xf32>
    %715 = arith.index_cast %c7_i32_234 : i32 to index
    %c0_242 = arith.constant 0 : index
    %c0_243 = arith.constant 0 : index
    %716 = vector.load %arg5[%715, %c0_242, %c0_243] : memref<8x4x64xf32, #tpu.memory_space<vmem>>, vector<1x4x32xf32>
    %717 = vector.shape_cast %716 : vector<1x4x32xf32> to vector<4x32xf32>
    %718 = vector.shape_cast %714 : vector<4x32xf32> to vector<1x4x32xf32>
    tpu.vector_store %arg5[%715, %c0_242, %c0_243], %718 {strides = array<i32>} : memref<8x4x64xf32, #tpu.memory_space<vmem>>, vector<1x4x32xf32>,
    %719 = vector.extract_strided_slice %713 {offsets = [4, 0], sizes = [4, 32], strides = [1, 1]} : vector<8x32xf32> to vector<4x32xf32>
    %720 = arith.index_cast %684 : i32 to index
    %c0_244 = arith.constant 0 : index
    %c32_245 = arith.constant 32 : index
    %721 = vector.load %arg5[%720, %c0_244, %c32_245] : memref<8x4x64xf32, #tpu.memory_space<vmem>>, vector<1x4x32xf32>
    %722 = vector.shape_cast %721 : vector<1x4x32xf32> to vector<4x32xf32>
    %723 = vector.shape_cast %719 : vector<4x32xf32> to vector<1x4x32xf32>
    tpu.vector_store %arg5[%720, %c0_244, %c32_245], %723 {strides = array<i32>} : memref<8x4x64xf32, #tpu.memory_space<vmem>>, vector<1x4x32xf32>,
    %c8_i32_246 = arith.constant 8 : i32
    return
  }
  func.func @transform_0(%arg0: i32) -> (i32, i32, i32) {
    %c0_i32 = arith.constant 0 : i32
    %c0_i32_0 = arith.constant 0 : i32
    %c0_i32_1 = arith.constant 0 : i32
    %c0_i32_2 = arith.constant 0 : i32
    return %c0_i32, %c0_i32_0, %c0_i32_1 : i32, i32, i32
  }
  func.func @transform_1(%arg0: i32) -> (i32, i32, i32) {
    %c0_i32 = arith.constant 0 : i32
    %c0_i32_0 = arith.constant 0 : i32
    %c0_i32_1 = arith.constant 0 : i32
    %c0_i32_2 = arith.constant 0 : i32
    return %c0_i32, %c0_i32_0, %c0_i32_1 : i32, i32, i32
  }
  func.func @transform_2(%arg0: i32) -> (i32, i32, i32) {
    %c0_i32 = arith.constant 0 : i32
    %c0_i32_0 = arith.constant 0 : i32
    %c0_i32_1 = arith.constant 0 : i32
    %c0_i32_2 = arith.constant 0 : i32
    return %c0_i32, %c0_i32_0, %c0_i32_1 : i32, i32, i32
  }
  func.func @transform_3(%arg0: i32) -> (i32, i32, i32) {
    %c0_i32 = arith.constant 0 : i32
    %c0_i32_0 = arith.constant 0 : i32
    %c0_i32_1 = arith.constant 0 : i32
    %c0_i32_2 = arith.constant 0 : i32
    return %c0_i32, %c0_i32_0, %c0_i32_1 : i32, i32, i32
  }
  func.func @transform_4(%arg0: i32) -> (i32, i32, i32) {
    %c0_i32 = arith.constant 0 : i32
    %c0_i32_0 = arith.constant 0 : i32
    %c0_i32_1 = arith.constant 0 : i32
    %c0_i32_2 = arith.constant 0 : i32
    return %c0_i32, %c0_i32_0, %c0_i32_1 : i32, i32, i32
  }
}

</mosaic_0001>

<bundles_post_ra>
// kernel: encoder_brnn_pallas.1
= control target key start
LH: loop header
LB: loop body
LE: loop exit
PB: predicated region body
PF: predicated region fallthrough
CT: control target
= control target key end

     0   :  { %v17_v0 = vlaneseq  ;;  %v3515_v1 = vmov 0.0|0.0   ;;  %vm3516_vm0 = vmmov 0   ;;  %v3517_v5 = vmov 0.0   ;;  %s3519_s9 = smov 32   ;;  %s3520_s10 = smov 96   ;;  %s4253_s1 = inlined_call_operand.vmem [shape: f32[2,64,128], index: 1, kind: input, shape index: {}]   ;;  %s4254_s0 = inlined_call_operand.vmem [shape: f32[8,4,256], index: 0, kind: input, shape index: {}]   ;;  %s4255_s2 = inlined_call_operand.vmem [shape: f32[1,64,256], index: 2, kind: input, shape index: {}]   ;;  %s4256_s3 = inlined_call_operand.vmem [shape: f32[1,1,256], index: 3, kind: input, shape index: {}]   ;;  %s4257_s4 = inlined_call_operand.vmem [shape: f32[8,4,64], index: 4, kind: output, shape index: {}]  }
   0x1   :  { %3060 = vmatprep.subr.bf16.mxu0 %v3515_v1  ;;  %v27_v2 = vld [vmem:[%s4253_s1] sm:$0xff]  ;;  %v28_v3 = vld [vmem:[%s4253_s1 + $0x8] sm:$0xff]  ;;  %v29_v4 = vld [vmem:[%s4253_s1 + $0x10] sm:$0xff]  ;;  %2772 = vmatprep.mubr.msk.f32.mxu0 %vm3516_vm0, %v3517_v5  ;;  %vm3518_vm4 = vmmov 1   ;;  %vm41_vm6 = vcmask 523264   ;;  %vm38_vm7 = vcmask 1043456  }
   0x2   :  { %v3559_v6 = vpack.c.bf16 %v28_v3, %v27_v2  ;;  %v30_v7 = vld [vmem:[%s4253_s1 + $0x18] sm:$0xff]  ;;  %v3564_v8 = vshrl.u32 %v17_v0, 7  ;;  %v20_v9 = vand.u32 127, %v17_v0  ;;  %3072 = vmatprep.subr.bf16.mxu1 %v3515_v1  ;;  %2791 = vmatprep.mubr.msk.f32.mxu1 %vm3516_vm0, %v3517_v5  ;;  %v31_v11 = vld [vmem:[%s4253_s1 + $0x20] sm:$0xff]  ;;  %v32_v12 = vld [vmem:[%s4253_s1 + $0x28] sm:$0xff]  ;;  %s3521_s11 = smov 64  }
   0x3   :  { %v3570_v10 = vpack.c.bf16 %v30_v7, %v29_v4  ;;  %v3583_v13 = vpack.c.bf16 %v32_v12, %v31_v11  ;;  %v33_v14 = vld [vmem:[%s4253_s1 + $0x30] sm:$0xff]  ;;  %v34_v15 = vld [vmem:[%s4253_s1 + $0x38] sm:$0xff]  ;;  %v3625_v19 = vld [vmem:[%s4254_s0] sm:$0xff]  ;;  %vm150_vm8 = vcmask 523524   ;;  %vm144_vm9 = vcmask 257024  }
   0x4   :  { %3062 = vmatpush3.bf16.msra.mxu0 %v3559_v6  ;;  %vm21_vm1 = vcmp.lt.s32.totalorder %v3564_v8, 4  ;;  %vm22_vm2 = vcmp.lt.s32.totalorder %v20_v9, 32  ;;  %3074 = vmatpush3.bf16.msra.mxu1 %v3559_v6  ;;  %v3595_v16 = vpack.c.bf16 %v34_v15, %v33_v14  ;;  %v3630_v20 = vld [vmem:[%s4254_s0 + $0x38] sm:$0xff]  ;;  %vm157_vm10 = vcmask 261120   ;;  %v3658_v42 = vld [vmem:[%s4254_s0 + $0x8] sm:$0xff]  ;;  %v3663_v43 = vld [vmem:[%s4254_s0 + $0x30] sm:$0xff] }
   0x5   :  { %3063 = vmatprep.subr.bf16.mxu0 %v3515_v1  ;;  %3075 = vmatprep.subr.bf16.mxu1 %v3515_v1  ;;  %vm23_vm3 = vmxor %vm21_vm1, %vm22_vm2  ;;  %v39_v21 = vsel %vm38_vm7, %v3625_v19, %v3630_v20  ;;  %v156_v44 = vsel %vm38_vm7, %v3658_v42, %v3663_v43  ;;  %v3691_v2 = vld [vmem:[%s4254_s0 + $0x10] sm:$0xff]  ;;  %v3696_v3 = vld [vmem:[%s4254_s0 + $0x28] sm:$0xff] }
   0x6   :  { %vm24_vm5 = vmxor %vm23_vm3, %vm3518_vm4  ;;  %v273_v4 = vsel %vm38_vm7, %v3691_v2, %v3696_v3 }
   0x7   :  { %v3598_v17 = vsel %vm24_vm5, 1.0, %v3517_v5 }
   0x8   :  { %3065 = vmatpush3.bf16.msra.mxu0 %v3570_v10  ;;  %3077 = vmatpush3.bf16.msra.mxu1 %v3570_v10  ;;  %v3604_v18 = vmul.f32 0.0, %v3598_v17 }
   0x9   :  { %3066 = vmatprep.subr.bf16.mxu0 %v3515_v1  ;;  %3078 = vmatprep.subr.bf16.mxu1 %v3515_v1 }
   0xc   :  { %3068 = vmatpush3.bf16.msra.mxu0 %v3583_v13  ;;  %3080 = vmatpush3.bf16.msra.mxu1 %v3583_v13 }
   0xd   :  { %3069 = vmatprep.subr.bf16.mxu0 %v3515_v1  ;;  %3081 = vmatprep.subr.bf16.mxu1 %v3515_v1 }
  0x10   :  { %3071 = vmatpush3.bf16.msra.mxu0 %v3595_v16  ;;  %3083 = vmatpush3.bf16.msra.mxu1 %v3595_v16 }
  0x11   :  { %3084 = vmatprep.subr.bf16.mxu0 %v3515_v1  ;;  %3096 = vmatprep.subr.bf16.mxu1 %v3515_v1 }
  0x13   :  { %2773 = vmatmul.mubr.msk.f32.vlgmr.msra.gmra.mrb[0].mxu0 %vm41_vm6, %v3604_v18 }
  0x14   :  { %3086 = vmatpush3.bf16.msra.mxu0 %v3559_v6  ;;  %2810 = vmatprep.mubr.msk.f32.mxu0 %vm3516_vm0, %v3517_v5 }
  0x15   :  { %3087 = vmatprep.subr.bf16.mxu0 %v3515_v1 }
  0x18   :  { %3089 = vmatpush3.bf16.msra.mxu0 %v3570_v10 }
  0x19   :  { %3090 = vmatprep.subr.bf16.mxu0 %v3515_v1 }
  0x1c   :  { %3092 = vmatpush3.bf16.msra.mxu0 %v3583_v13 }
  0x1d   :  { %3093 = vmatprep.subr.bf16.mxu0 %v3515_v1 }
  0x20   :  { %3095 = vmatpush3.bf16.msra.mxu0 %v3595_v16 }
  0x21   :  { %3108 = vmatprep.subr.bf16.mxu0 %v3515_v1 }
  0xe6   :  { %v111_v22 = vpop.f32.mrb[0].mxu0 }
  0xe7   :  { %v115_v23 = vadd.f32 %v111_v22, %v39_v21  ;;  %v2774_v24 = vpop.f32.mrb[1].mxu0 }
  0xe9   :  { %3387 = vtanh.f32 %v115_v23  ;;  %v2538_v26 = vmul.f32 -1.442695, %v115_v23 }
  0xeb   :  { %3389 = vpow2.f32 %v2538_v26 }
  0xf3   :  { %v3388_v25 = vpop.eup %3387 }
  0xf4   :  { %125 = vrot.lane.b32.xlu0 %v3388_v25, %s3519_s9 }
  0xf5   :  { %v3390_v27 = vpop.eup %3389 }
  0xf6   :  { %v119_v28 = vadd.f32 1.0, %v3390_v27 }
  0xf8   :  { %3391 = vrcp.f32 %v119_v28 }
 0x102   :  { %v3392_v29 = vpop.eup %3391 }
 0x103   :  { %v123_v32 = vmul.f32 0.0, %v3392_v29 }
 0x166   :  { %v126_v30 = vpop.permute.xlu0 %125 }
 0x167   :  { %v128_v31 = vmul.f32 %v3392_v29, %v126_v30 }
 0x169   :  { %130 = vrot.lane.b32.xlu0 %v128_v31, %s3519_s9 }
 0x1db   :  { %v131_v33 = vpop.permute.xlu0 %130 }
 0x1dc   :  { %v133_v34 = vadd.f32 %v131_v33, %v123_v32 }
 0x1de   :  { %3393 = vtanh.f32 %v133_v34 }
 0x1e8   :  { %v3394_v35 = vpop.eup %3393 }
 0x1e9   :  { %136 = vrot.lane.b32.xlu1 %v3394_v35, %s3519_s9  ;;  %v2547_v35 = vld [vmem:[%s4254_s0 + $0x18] sm:$0xff] }
 0x25b   :  { %v137_v36 = vpop.permute.xlu1 %136 }
 0x25c   :  { %v139_v37 = vmul.f32 %v3392_v29, %v137_v36  ;;  %v2548_v36 = vld [vmem:[%s4254_s0 + $0x20] sm:$0xff] }
 0x25e   :  { %146 = vrot.lane.b32.xlu0 %v139_v37, %s3520_s10  ;;  %141 = vrot.lane.b32.xlu1 %v139_v37, %s3521_s11  ;;  %v389_v37 = vsel %vm38_vm7, %v2547_v35, %v2548_v36 }
 0x2d0   :  { %v147_v38 = vpop.permute.xlu0 %146  ;;  %v142_v39 = vpop.permute.xlu1 %141 }
 0x2d1   :  { %151 = vst.msk [vmem:[#allocation2 + $0x18] sm:$0xf0] %vm150_vm8, %v147_v38  ;;  %v158_v40 = vsel %vm157_vm10, %v142_v39, %v147_v38 }
 0x2d2   :  { %145 = vst.msk [vmem:[#allocation2] sm:$0xf] %vm144_vm9, %v142_v39  ;;  %v159_v41 = vmul.f32 %v3598_v17, %v158_v40 }
 0x2d4   :  { %2792 = vmatmul.mubr.msk.f32.vlgmr.msra.gmra.mrb[0].mxu1 %vm41_vm6, %v159_v41 }
 0x2d5   :  { %3098 = vmatpush3.bf16.msra.mxu1 %v3559_v6  ;;  %2829 = vmatprep.mubr.msk.f32.mxu1 %vm3516_vm0, %v3517_v5 }
 0x2d6   :  { %3099 = vmatprep.subr.bf16.mxu1 %v3515_v1 }
 0x2d9   :  { %3101 = vmatpush3.bf16.msra.mxu1 %v3570_v10 }
 0x2da   :  { %3102 = vmatprep.subr.bf16.mxu1 %v3515_v1 }
 0x2dd   :  { %3104 = vmatpush3.bf16.msra.mxu1 %v3583_v13 }
 0x2de   :  { %3105 = vmatprep.subr.bf16.mxu1 %v3515_v1 }
 0x2e1   :  { %3107 = vmatpush3.bf16.msra.mxu1 %v3595_v16 }
 0x2e2   :  { %3120 = vmatprep.subr.bf16.mxu1 %v3515_v1 }
 0x3a7   :  { %v229_v45 = vpop.f32.mrb[0].mxu1 }
 0x3a8   :  { %v233_v46 = vadd.f32 %v229_v45, %v156_v44  ;;  %v2793_v47 = vpop.f32.mrb[1].mxu1 }
 0x3aa   :  { %3395 = vtanh.f32 %v233_v46  ;;  %v2542_v49 = vmul.f32 -1.442695, %v233_v46 }
 0x3ac   :  { %3397 = vpow2.f32 %v2542_v49 }
 0x3b4   :  { %v3396_v48 = vpop.eup %3395 }
 0x3b5   :  { %243 = vrot.lane.b32.xlu1 %v3396_v48, %s3519_s9 }
 0x3b6   :  { %v3398_v50 = vpop.eup %3397 }
 0x3b7   :  { %v237_v51 = vadd.f32 1.0, %v3398_v50 }
 0x3b9   :  { %3399 = vrcp.f32 %v237_v51 }
 0x3c3   :  { %v3400_v52 = vpop.eup %3399 }
 0x3c4   :  { %v241_v55 = vmul.f32 %v3400_v52, %v133_v34 }
 0x427   :  { %v244_v53 = vpop.permute.xlu1 %243 }
 0x428   :  { %v246_v54 = vmul.f32 %v3400_v52, %v244_v53 }
 0x42a   :  { %248 = vrot.lane.b32.xlu0 %v246_v54, %s3519_s9 }
 0x49c   :  { %v249_v56 = vpop.permute.xlu0 %248 }
 0x49d   :  { %v251_v57 = vadd.f32 %v249_v56, %v241_v55 }
 0x49f   :  { %3401 = vtanh.f32 %v251_v57 }
 0x4a9   :  { %v3402_v58 = vpop.eup %3401 }
 0x4aa   :  { %254 = vrot.lane.b32.xlu1 %v3402_v58, %s3519_s9 }
 0x51c   :  { %v255_v59 = vpop.permute.xlu1 %254 }
 0x51d   :  { %v257_v60 = vmul.f32 %v3400_v52, %v255_v59 }
 0x51f   :  { %264 = vrot.lane.b32.xlu1 %v257_v60, %s3520_s10  ;;  %259 = vrot.lane.b32.xlu0 %v257_v60, %s3521_s11  ;;  %v503_v60 = vsel %vm38_vm7, %v2548_v36, %v2547_v35 }
 0x591   :  { %v265_v61 = vpop.permute.xlu1 %264  ;;  %v260_v62 = vpop.permute.xlu0 %259 }
 0x592   :  { %268 = vst.msk [vmem:[#allocation2 + $0x14] sm:$0xf0] %vm150_vm8, %v265_v61  ;;  %v274_v63 = vsel %vm157_vm10, %v260_v62, %v265_v61 }
 0x593   :  { %263 = vst.msk [vmem:[#allocation2 + $0x4] sm:$0xf] %vm144_vm9, %v260_v62  ;;  %v275_v0 = vmul.f32 %v3598_v17, %v274_v63 }
 0x595   :  { %2811 = vmatmul.mubr.msk.f32.vlgmr.msra.gmra.mrb[2].mxu0 %vm41_vm6, %v275_v0 }
 0x596   :  { %3110 = vmatpush3.bf16.msra.mxu0 %v3559_v6  ;;  %2848 = vmatprep.mubr.msk.f32.mxu0 %vm3516_vm0, %v3517_v5 }
 0x597   :  { %3111 = vmatprep.subr.bf16.mxu0 %v3515_v1 }
 0x59a   :  { %3113 = vmatpush3.bf16.msra.mxu0 %v3570_v10 }
 0x59b   :  { %3114 = vmatprep.subr.bf16.mxu0 %v3515_v1 }
 0x59e   :  { %3116 = vmatpush3.bf16.msra.mxu0 %v3583_v13 }
 0x59f   :  { %3117 = vmatprep.subr.bf16.mxu0 %v3515_v1 }
 0x5a2   :  { %3119 = vmatpush3.bf16.msra.mxu0 %v3595_v16 }
 0x5a3   :  { %3132 = vmatprep.subr.bf16.mxu0 %v3515_v1 }
 0x668   :  { %v345_v7 = vpop.f32.mrb[2].mxu0 }
 0x669   :  { %v349_v9 = vadd.f32 %v345_v7, %v273_v4  ;;  %v2812_v11 = vpop.f32.mrb[3].mxu0 }
 0x66b   :  { %3403 = vtanh.f32 %v349_v9  ;;  %v2546_v14 = vmul.f32 -1.442695, %v349_v9 }
 0x66d   :  { %3405 = vpow2.f32 %v2546_v14 }
 0x675   :  { %v3404_v12 = vpop.eup %3403 }
 0x676   :  { %359 = vrot.lane.b32.xlu0 %v3404_v12, %s3519_s9 }
 0x677   :  { %v3406_v15 = vpop.eup %3405 }
 0x678   :  { %v353_v21 = vadd.f32 1.0, %v3406_v15 }
 0x67a   :  { %3407 = vrcp.f32 %v353_v21 }
 0x684   :  { %v3408_v22 = vpop.eup %3407 }
 0x685   :  { %v357_v25 = vmul.f32 %v3408_v22, %v251_v57 }
 0x6e8   :  { %v360_v23 = vpop.permute.xlu0 %359 }
 0x6e9   :  { %v362_v24 = vmul.f32 %v3408_v22, %v360_v23 }
 0x6eb   :  { %364 = vrot.lane.b32.xlu1 %v362_v24, %s3519_s9 }
 0x75d   :  { %v365_v26 = vpop.permute.xlu1 %364 }
 0x75e   :  { %v367_v27 = vadd.f32 %v365_v26, %v357_v25 }
 0x760   :  { %3409 = vtanh.f32 %v367_v27 }
 0x76a   :  { %v3410_v28 = vpop.eup %3409 }
 0x76b   :  { %370 = vrot.lane.b32.xlu0 %v3410_v28, %s3519_s9 }
 0x7dd   :  { %v371_v29 = vpop.permute.xlu0 %370 }
 0x7de   :  { %v373_v30 = vmul.f32 %v3408_v22, %v371_v29 }
 0x7e0   :  { %380 = vrot.lane.b32.xlu0 %v373_v30, %s3520_s10  ;;  %375 = vrot.lane.b32.xlu1 %v373_v30, %s3521_s11  ;;  %v615_v30 = vsel %vm38_vm7, %v3696_v3, %v3691_v2 }
 0x852   :  { %v381_v31 = vpop.permute.xlu0 %380  ;;  %v376_v32 = vpop.permute.xlu1 %375 }
 0x853   :  { %384 = vst.msk [vmem:[#allocation2 + $0x10] sm:$0xf0] %vm150_vm8, %v381_v31  ;;  %v390_v33 = vsel %vm157_vm10, %v376_v32, %v381_v31 }
 0x854   :  { %379 = vst.msk [vmem:[#allocation2 + $0x8] sm:$0xf] %vm144_vm9, %v376_v32  ;;  %v391_v34 = vmul.f32 %v3598_v17, %v390_v33 }
 0x856   :  { %2830 = vmatmul.mubr.msk.f32.vlgmr.msra.gmra.mrb[2].mxu1 %vm41_vm6, %v391_v34 }
 0x857   :  { %3122 = vmatpush3.bf16.msra.mxu1 %v3559_v6  ;;  %2867 = vmatprep.mubr.msk.f32.mxu1 %vm3516_vm0, %v3517_v5 }
 0x858   :  { %3123 = vmatprep.subr.bf16.mxu1 %v3515_v1 }
 0x85b   :  { %3125 = vmatpush3.bf16.msra.mxu1 %v3570_v10 }
 0x85c   :  { %3126 = vmatprep.subr.bf16.mxu1 %v3515_v1 }
 0x85f   :  { %3128 = vmatpush3.bf16.msra.mxu1 %v3583_v13 }
 0x860   :  { %3129 = vmatprep.subr.bf16.mxu1 %v3515_v1 }
 0x863   :  { %3131 = vmatpush3.bf16.msra.mxu1 %v3595_v16 }
 0x864   :  { %3144 = vmatprep.subr.bf16.mxu1 %v3515_v1 }
 0x929   :  { %v461_v38 = vpop.f32.mrb[2].mxu1 }
 0x92a   :  { %v465_v39 = vadd.f32 %v461_v38, %v389_v37  ;;  %v2831_v40 = vpop.f32.mrb[3].mxu1 }
 0x92c   :  { %3411 = vtanh.f32 %v465_v39  ;;  %v2550_v44 = vmul.f32 -1.442695, %v465_v39 }
 0x92e   :  { %3413 = vpow2.f32 %v2550_v44 }
 0x936   :  { %v3412_v41 = vpop.eup %3411 }
 0x937   :  { %475 = vrot.lane.b32.xlu1 %v3412_v41, %s3519_s9 }
 0x938   :  { %v3414_v45 = vpop.eup %3413 }
 0x939   :  { %v469_v46 = vadd.f32 1.0, %v3414_v45 }
 0x93b   :  { %3415 = vrcp.f32 %v469_v46 }
 0x945   :  { %v3416_v47 = vpop.eup %3415 }
 0x946   :  { %v473_v50 = vmul.f32 %v3416_v47, %v367_v27 }
 0x9a9   :  { %v476_v48 = vpop.permute.xlu1 %475 }
 0x9aa   :  { %v478_v49 = vmul.f32 %v3416_v47, %v476_v48 }
 0x9ac   :  { %480 = vrot.lane.b32.xlu0 %v478_v49, %s3519_s9 }
 0xa1e   :  { %v481_v51 = vpop.permute.xlu0 %480 }
 0xa1f   :  { %v483_v52 = vadd.f32 %v481_v51, %v473_v50 }
 0xa21   :  { %3417 = vtanh.f32 %v483_v52 }
 0xa2b   :  { %v3418_v53 = vpop.eup %3417 }
 0xa2c   :  { %486 = vrot.lane.b32.xlu1 %v3418_v53, %s3519_s9 }
 0xa9e   :  { %v487_v54 = vpop.permute.xlu1 %486 }
 0xa9f   :  { %v489_v55 = vmul.f32 %v3416_v47, %v487_v54  ;;  %v727_v47 = vsel %vm38_vm7, %v3663_v43, %v3658_v42 }
 0xaa1   :  { %496 = vrot.lane.b32.xlu1 %v489_v55, %s3520_s10  ;;  %491 = vrot.lane.b32.xlu0 %v489_v55, %s3521_s11 }
 0xb13   :  { %v497_v56 = vpop.permute.xlu1 %496  ;;  %v492_v57 = vpop.permute.xlu0 %491 }
 0xb14   :  { %500 = vst.msk [vmem:[#allocation2 + $0xc] sm:$0xf0] %vm150_vm8, %v497_v56  ;;  %v504_v58 = vsel %vm157_vm10, %v492_v57, %v497_v56 }
 0xb15   :  { %495 = vst.msk [vmem:[#allocation2 + $0xc] sm:$0xf] %vm144_vm9, %v492_v57  ;;  %v505_v59 = vmul.f32 %v3598_v17, %v504_v58 }
 0xb17   :  { %2849 = vmatmul.mubr.msk.f32.vlgmr.msra.gmra.mrb[4].mxu0 %vm41_vm6, %v505_v59 }
 0xb18   :  { %3134 = vmatpush3.bf16.msra.mxu0 %v3559_v6  ;;  %2886 = vmatprep.mubr.msk.f32.mxu0 %vm3516_vm0, %v3517_v5 }
 0xb19   :  { %3135 = vmatprep.subr.bf16.mxu0 %v3515_v1 }
 0xb1c   :  { %3137 = vmatpush3.bf16.msra.mxu0 %v3570_v10 }
 0xb1d   :  { %3138 = vmatprep.subr.bf16.mxu0 %v3515_v1 }
 0xb20   :  { %3140 = vmatpush3.bf16.msra.mxu0 %v3583_v13 }
 0xb21   :  { %3141 = vmatprep.subr.bf16.mxu0 %v3515_v1 }
 0xb24   :  { %3143 = vmatpush3.bf16.msra.mxu0 %v3595_v16 }
 0xbea   :  { %v575_v61 = vpop.f32.mrb[4].mxu0 }
 0xbeb   :  { %v579_v62 = vadd.f32 %v575_v61, %v503_v60  ;;  %v2850_v63 = vpop.f32.mrb[5].mxu0  ;;  %v950_v60 = vld [vmem:[%s4255_s2 + $0x8] sm:$0xff]  ;;  %v952_v61 = vld [vmem:[%s4255_s2 + $0x18] sm:$0xff] }
 0xbec   :  { %v949_v63 = vld [vmem:[%s4255_s2] sm:$0xff] }
 0xbed   :  { %3419 = vtanh.f32 %v579_v62  ;;  %v2554_v4 = vmul.f32 -1.442695, %v579_v62  ;;  %v3796_v62 = vpack.c.bf16 %v952_v61, %v950_v60 }
 0xbef   :  { %3421 = vpow2.f32 %v2554_v4  ;;  %3157 = vmatprep.subr.bf16.mxu0 %v3796_v62 }
 0xbf7   :  { %v3420_v0 = vpop.eup %3419 }
 0xbf8   :  { %589 = vrot.lane.b32.xlu0 %v3420_v0, %s3519_s9  ;;  %v951_v0 = vld [vmem:[%s4255_s2 + $0x10] sm:$0xff] }
 0xbf9   :  { %v3422_v7 = vpop.eup %3421  ;;  %v3804_v4 = vpack.c.bf16 %v951_v0, %v949_v63 }
 0xbfa   :  { %v583_v9 = vadd.f32 1.0, %v3422_v7  ;;  %v954_v7 = vld [vmem:[%s4255_s2 + $0x28] sm:$0xff] }
 0xbfc   :  { %3423 = vrcp.f32 %v583_v9  ;;  %v956_v9 = vld [vmem:[%s4255_s2 + $0x38] sm:$0xff] }
 0xc06   :  { %v3424_v11 = vpop.eup %3423 }
 0xc07   :  { %v587_v15 = vmul.f32 %v3424_v11, %v483_v52 }
 0xc6a   :  { %v590_v12 = vpop.permute.xlu0 %589 }
 0xc6b   :  { %v592_v14 = vmul.f32 %v3424_v11, %v590_v12  ;;  %v953_v12 = vld [vmem:[%s4255_s2 + $0x20] sm:$0xff] }
 0xc6d   :  { %594 = vrot.lane.b32.xlu1 %v592_v14, %s3519_s9  ;;  %v955_v14 = vld [vmem:[%s4255_s2 + $0x30] sm:$0xff] }
 0xcdf   :  { %v595_v21 = vpop.permute.xlu1 %594 }
 0xce0   :  { %v597_v22 = vadd.f32 %v595_v21, %v587_v15  ;;  %v3823_v15 = vpack.c.bf16 %v955_v14, %v953_v12  ;;  %v958_v21 = vld [vmem:[%s4255_s2 + $0x48] sm:$0xff] }
 0xce2   :  { %3425 = vtanh.f32 %v597_v22 }
 0xcec   :  { %v3426_v23 = vpop.eup %3425 }
 0xced   :  { %600 = vrot.lane.b32.xlu0 %v3426_v23, %s3519_s9 }
 0xd5f   :  { %v601_v24 = vpop.permute.xlu0 %600 }
 0xd60   :  { %v603_v25 = vmul.f32 %v3424_v11, %v601_v24  ;;  %v3815_v11 = vpack.c.bf16 %v956_v9, %v954_v7  ;;  %v957_v24 = vld [vmem:[%s4255_s2 + $0x40] sm:$0xff] }
 0xd62   :  { %609 = vrot.lane.b32.xlu0 %v603_v25, %s3520_s10  ;;  %605 = vrot.lane.b32.xlu1 %v603_v25, %s3521_s11  ;;  %v959_v25 = vld [vmem:[%s4255_s2 + $0x50] sm:$0xff] }
 0xdd4   :  { %v610_v26 = vpop.permute.xlu0 %609  ;;  %v606_v27 = vpop.permute.xlu1 %605 }
 0xdd5   :  { %612 = vst.msk [vmem:[#allocation2 + $0x8] sm:$0xf0] %vm150_vm8, %v610_v26  ;;  %v616_v28 = vsel %vm157_vm10, %v606_v27, %v610_v26 }
 0xdd6   :  { %608 = vst.msk [vmem:[#allocation2 + $0x10] sm:$0xf] %vm144_vm9, %v606_v27  ;;  %v617_v29 = vmul.f32 %v3598_v17, %v616_v28  ;;  %v3841_v27 = vpack.c.bf16 %v959_v25, %v957_v24 }
 0xdd8   :  { %2868 = vmatmul.mubr.msk.f32.vlgmr.msra.gmra.mrb[4].mxu1 %vm41_vm6, %v617_v29  ;;  %v962_v29 = vld [vmem:[%s4255_s2 + $0x68] sm:$0xff] }
 0xdd9   :  { %3146 = vmatpush3.bf16.msra.mxu1 %v3559_v6  ;;  %2905 = vmatprep.mubr.msk.f32.mxu1 %vm3516_vm0, %v3517_v5 }
 0xdda   :  { %3147 = vmatprep.subr.bf16.mxu1 %v3515_v1 }
 0xddd   :  { %3149 = vmatpush3.bf16.msra.mxu1 %v3570_v10 }
 0xdde   :  { %3150 = vmatprep.subr.bf16.mxu1 %v3515_v1 }
 0xde1   :  { %3152 = vmatpush3.bf16.msra.mxu1 %v3583_v13 }
 0xde2   :  { %3153 = vmatprep.subr.bf16.mxu1 %v3515_v1 }
 0xde5   :  { %3155 = vmatpush3.bf16.msra.mxu1 %v3595_v16 }
 0xde6   :  { %3173 = vmatprep.subr.bf16.mxu1 %v3796_v62 }
 0xeab   :  { %v687_v6 = vpop.f32.mrb[4].mxu1 }
 0xeac   :  { %v691_v31 = vadd.f32 %v687_v6, %v615_v30  ;;  %v2869_v32 = vpop.f32.mrb[5].mxu1  ;;  %v964_v30 = vld [vmem:[%s4255_s2 + $0x78] sm:$0xff] }
 0xead   :  { %v3853_v6 = vpack.c.bf16 %v964_v30, %v962_v29  ;;  %v963_v32 = vld [vmem:[%s4255_s2 + $0x70] sm:$0xff] }
 0xeae   :  { %3427 = vtanh.f32 %v691_v31  ;;  %v2558_v10 = vmul.f32 -1.442695, %v691_v31  ;;  %v961_v31 = vld [vmem:[%s4255_s2 + $0x60] sm:$0xff] }
 0xeb0   :  { %3429 = vpow2.f32 %v2558_v10 }
 0xeb8   :  { %v3428_v33 = vpop.eup %3427 }
 0xeb9   :  { %701 = vrot.lane.b32.xlu1 %v3428_v33, %s3519_s9  ;;  %v3861_v33 = vpack.c.bf16 %v963_v32, %v961_v31  ;;  %v2576_v32 = vld [vmem:[%s4253_s1 + $0x50] sm:$0xff] }
 0xeba   :  { %v3430_v34 = vpop.eup %3429 }
 0xebb   :  { %v695_v35 = vadd.f32 1.0, %v3430_v34 }
 0xebd   :  { %3431 = vrcp.f32 %v695_v35 }
 0xec7   :  { %v3432_v13 = vpop.eup %3431 }
 0xec8   :  { %v699_v16 = vmul.f32 %v3432_v13, %v597_v22  ;;  %v960_v22 = vld [vmem:[%s4255_s2 + $0x58] sm:$0xff] }
 0xec9   :  { %v3833_v23 = vpack.c.bf16 %v960_v22, %v958_v21 }
 0xf2b   :  { %v702_v36 = vpop.permute.xlu1 %701 }
 0xf2c   :  { %v704_v37 = vmul.f32 %v3432_v13, %v702_v36 }
 0xf2e   :  { %706 = vrot.lane.b32.xlu0 %v704_v37, %s3519_s9  ;;  %v1219_v37 = vld [vmem:[#allocation2 + $0xc] sm:$0xf] }
 0xfa0   :  { %v707_v38 = vpop.permute.xlu0 %706 }
 0xfa1   :  { %v709_v2 = vadd.f32 %v707_v38, %v699_v16  ;;  %v839_v38 = vsel %vm38_vm7, %v3630_v20, %v3625_v19 }
 0xfa3   :  { %3433 = vtanh.f32 %v709_v2 }
 0xfad   :  { %v3434_v3 = vpop.eup %3433 }
 0xfae   :  { %712 = vrot.lane.b32.xlu1 %v3434_v3, %s3519_s9 }
0x1020   :  { %v713_v39 = vpop.permute.xlu1 %712 }
0x1021   :  { %v715_v40 = vmul.f32 %v3432_v13, %v713_v39 }
0x1023   :  { %721 = vrot.lane.b32.xlu1 %v715_v40, %s3520_s10  ;;  %717 = vrot.lane.b32.xlu0 %v715_v40, %s3521_s11  ;;  %v970_v40 = vsub.s32 0, %v3564_v8 }
0x1095   :  { %v722_v41 = vpop.permute.xlu1 %721  ;;  %v718_v44 = vpop.permute.xlu0 %717 }
0x1096   :  { %724 = vst.msk [vmem:[#allocation2 + $0x4] sm:$0xf0] %vm150_vm8, %v722_v41  ;;  %v728_v45 = vsel %vm157_vm10, %v718_v44, %v722_v41  ;;  %v965_v41 = vld [vmem:[%s4256_s3] sm:$0x3] }
0x1097   :  { %720 = vst.msk [vmem:[#allocation2 + $0x14] sm:$0xf] %vm144_vm9, %v718_v44  ;;  %v729_v46 = vmul.f32 %v3598_v17, %v728_v45  ;;  %v974_v44 = vsub.s32 1, %v3564_v8 }
0x1099   :  { %2887 = vmatmul.mubr.msk.f32.vlgmr.msra.gmra.mrb[6].mxu0 %vm41_vm6, %v729_v46  ;;  %v3918_v46 = vrot.slane %v965_v41, %v970_v40 }
0x109a   :  { %1045 = vmatprep.mubr.f32.mxu0 %v3517_v5  ;;  %3159 = vmatpush1.bf16.msra.mxu0 %v3804_v4 }
0x109b   :  { %3161 = vmatprep.subr.bf16.mxu0 %v3815_v11 }
0x109e   :  { %3163 = vmatpush1.bf16.msra.mxu0 %v3823_v15  ;;  %v1381_v16 = vld [vmem:[#allocation2 + $0x14] sm:$0xf] }
0x109f   :  { %3165 = vmatprep.subr.bf16.mxu0 %v3833_v23 }
0x10a2   :  { %3167 = vmatpush1.bf16.msra.mxu0 %v3841_v27 }
0x10a3   :  { %3169 = vmatprep.subr.bf16.mxu0 %v3853_v6 }
0x10a6   :  { %3171 = vmatpush1.bf16.msra.mxu0 %v3861_v33 }
0x10a7   :  { %3189 = vmatprep.subr.bf16.mxu0 %v3796_v62 }
0x116c   :  { %v799_v48 = vpop.f32.mrb[6].mxu0 }
0x116d   :  { %v803_v49 = vadd.f32 %v799_v48, %v727_v47  ;;  %v2888_v50 = vpop.f32.mrb[7].mxu0  ;;  %v3921_v47 = vrot.slane %v965_v41, %v974_v44 }
0x116f   :  { %3435 = vtanh.f32 %v803_v49  ;;  %v2562_v52 = vmul.f32 -1.442695, %v803_v49 }
0x1171   :  { %3437 = vpow2.f32 %v2562_v52 }
0x1179   :  { %v3436_v51 = vpop.eup %3435 }
0x117a   :  { %813 = vrot.lane.b32.xlu0 %v3436_v51, %s3519_s9 }
0x117b   :  { %v3438_v53 = vpop.eup %3437 }
0x117c   :  { %v807_v54 = vadd.f32 1.0, %v3438_v53 }
0x117e   :  { %3439 = vrcp.f32 %v807_v54 }
0x1188   :  { %v3440_v55 = vpop.eup %3439 }
0x1189   :  { %v811_v58 = vmul.f32 %v3440_v55, %v709_v2 }
0x11ec   :  { %v814_v56 = vpop.permute.xlu0 %813 }
0x11ed   :  { %v816_v57 = vmul.f32 %v3440_v55, %v814_v56 }
0x11ef   :  { %818 = vrot.lane.b32.xlu1 %v816_v57, %s3519_s9 }
0x1261   :  { %v819_v59 = vpop.permute.xlu1 %818 }
0x1262   :  { %v3786_v42 = vadd.f32 %v819_v59, %v811_v58 }
0x1264   :  { %3441 = vtanh.f32 %v3786_v42 }
0x126e   :  { %v3442_v43 = vpop.eup %3441 }
0x126f   :  { %824 = vrot.lane.b32.xlu0 %v3442_v43, %s3519_s9 }
0x12e1   :  { %v825_v26 = vpop.permute.xlu0 %824 }
0x12e2   :  { %v827_v28 = vmul.f32 %v3440_v55, %v825_v26 }
0x12e4   :  { %833 = vrot.lane.b32.xlu0 %v827_v28, %s3520_s10  ;;  %829 = vrot.lane.b32.xlu1 %v827_v28, %s3521_s11  ;;  %v2575_v28 = vld [vmem:[%s4253_s1 + $0x48] sm:$0xff] }
0x1356   :  { %v834_v10 = vpop.permute.xlu0 %833  ;;  %v830_v34 = vpop.permute.xlu1 %829 }
0x1357   :  { %836 = vst.msk [vmem:[#allocation2] sm:$0xf0] %vm150_vm8, %v834_v10  ;;  %v840_v35 = vsel %vm157_vm10, %v830_v34, %v834_v10  ;;  %v2577_v10 = vld [vmem:[%s4253_s1 + $0x58] sm:$0xff] }
0x1358   :  { %832 = vst.msk [vmem:[#allocation2 + $0x18] sm:$0xf] %vm144_vm9, %v830_v34  ;;  %v841_v13 = vmul.f32 %v3598_v17, %v840_v35  ;;  %v3965_v34 = vpack.c.bf16 %v2577_v10, %v2576_v32  ;;  %v2578_v35 = vld [vmem:[%s4253_s1 + $0x60] sm:$0xff] }
0x135a   :  { %2906 = vmatmul.mubr.msk.f32.vlgmr.msra.gmra.mrb[6].mxu1 %vm41_vm6, %v841_v13  ;;  %v2579_v13 = vld [vmem:[%s4253_s1 + $0x68] sm:$0xff] }
0x135b   :  { %3175 = vmatpush1.bf16.msra.mxu1 %v3804_v4  ;;  %1125 = vmatprep.mubr.f32.mxu1 %v3517_v5 }
0x135c   :  { %3177 = vmatprep.subr.bf16.mxu1 %v3815_v11 }
0x135e   :  { %v1057_v36 = vld [vmem:[#allocation2 + $0x4] sm:$0xf] }
0x135f   :  { %3179 = vmatpush1.bf16.msra.mxu1 %v3823_v15 }
0x1360   :  { %3181 = vmatprep.subr.bf16.mxu1 %v3833_v23 }
0x1363   :  { %3183 = vmatpush1.bf16.msra.mxu1 %v3841_v27 }
0x1364   :  { %3185 = vmatprep.subr.bf16.mxu1 %v3853_v6 }
0x1367   :  { %3187 = vmatpush1.bf16.msra.mxu1 %v3861_v33 }
0x1368   :  { %3205 = vmatprep.subr.bf16.mxu1 %v3796_v62 }
0x136a   :  { %2567 = vmatmul.mubr.msk.f32.vlgmr.msra.gmra.mrb[8].mxu1 %vm41_vm6, %v1057_v36  ;;  %v3977_v36 = vpack.c.bf16 %v2579_v13, %v2578_v35 }
0x136b   :  { %3207 = vmatpush1.bf16.msra.mxu1 %v3804_v4  ;;  %1287 = vmatprep.mubr.f32.mxu1 %v3517_v5 }
0x136c   :  { %3209 = vmatprep.subr.bf16.mxu1 %v3815_v11 }
0x136f   :  { %3211 = vmatpush1.bf16.msra.mxu1 %v3823_v15 }
0x1370   :  { %3213 = vmatprep.subr.bf16.mxu1 %v3833_v23 }
0x1373   :  { %3215 = vmatpush1.bf16.msra.mxu1 %v3841_v27 }
0x1374   :  { %3217 = vmatprep.subr.bf16.mxu1 %v3853_v6 }
0x1377   :  { %3219 = vmatpush1.bf16.msra.mxu1 %v3861_v33 }
0x1378   :  { %3237 = vmatprep.subr.bf16.mxu1 %v3796_v62 }
0x137a   :  { %2569 = vmatmul.mubr.msk.f32.vlgmr.msra.gmra.mrb[10].mxu1 %vm41_vm6, %v1219_v37  ;;  %v2580_v37 = vld [vmem:[%s4253_s1 + $0x70] sm:$0xff] }
0x137b   :  { %3239 = vmatpush1.bf16.msra.mxu1 %v3804_v4  ;;  %1449 = vmatprep.mubr.f32.mxu1 %v3517_v5 }
0x137c   :  { %3241 = vmatprep.subr.bf16.mxu1 %v3815_v11 }
0x137f   :  { %3243 = vmatpush1.bf16.msra.mxu1 %v3823_v15 }
0x1380   :  { %3245 = vmatprep.subr.bf16.mxu1 %v3833_v23 }
0x1383   :  { %3247 = vmatpush1.bf16.msra.mxu1 %v3841_v27 }
0x1384   :  { %3249 = vmatprep.subr.bf16.mxu1 %v3853_v6 }
0x1387   :  { %3251 = vmatpush1.bf16.msra.mxu1 %v3861_v33 }
0x1388   :  { %3269 = vmatprep.subr.bf16.mxu1 %v3796_v62 }
0x138a   :  { %2571 = vmatmul.mubr.msk.f32.vlgmr.msra.gmra.mrb[12].mxu1 %vm41_vm6, %v1381_v16  ;;  %v2581_v16 = vld [vmem:[%s4253_s1 + $0x78] sm:$0xff] }
0x138b   :  { %3271 = vmatpush1.bf16.msra.mxu1 %v3804_v4  ;;  %1611 = vmatprep.mubr.f32.mxu1 %v3517_v5 }
0x138c   :  { %3273 = vmatprep.subr.bf16.mxu1 %v3815_v11 }
0x138f   :  { %3275 = vmatpush1.bf16.msra.mxu1 %v3823_v15 }
0x1390   :  { %3277 = vmatprep.subr.bf16.mxu1 %v3833_v23 }
0x1393   :  { %3279 = vmatpush1.bf16.msra.mxu1 %v3841_v27 }
0x1394   :  { %3281 = vmatprep.subr.bf16.mxu1 %v3853_v6 }
0x1397   :  { %3283 = vmatpush1.bf16.msra.mxu1 %v3861_v33 }
0x1398   :  { %3296 = vmatprep.subr.bf16.mxu1 %v3515_v1 }
0x142d   :  { %v911_v2 = vpop.f32.mrb[6].mxu1 }
0x142e   :  { %v915_v3 = vadd.f32 %v911_v2, %v839_v38  ;;  %v2907_v39 = vpop.f32.mrb[7].mxu1  ;;  %v3989_v38 = vpack.c.bf16 %v2581_v16, %v2580_v37  ;;  %v1138_v2 = vld [vmem:[#allocation2 + $0x8] sm:$0xf] }
0x1430   :  { %3443 = vtanh.f32 %v915_v3  ;;  %v2565_v43 = vmul.f32 -1.442695, %v915_v3  ;;  %v1300_v3 = vld [vmem:[#allocation2 + $0x10] sm:$0xf] }
0x1432   :  { %3445 = vpow2.f32 %v2565_v43 }
0x143a   :  { %v3444_v45 = vpop.eup %3443 }
0x143b   :  { %925 = vrot.lane.b32.xlu1 %v3444_v45, %s3519_s9 }
0x143c   :  { %v3446_v60 = vpop.eup %3445 }
0x143d   :  { %v1127_v19 = vpop.f32.mrb[8].mxu1  ;;  %v919_v61 = vadd.f32 1.0, %v3446_v60 }
0x143e   :  { %v1128_v20 = vadd.f32 %v1127_v19, %v3918_v46  ;;  %v1129_v48 = vpop.f32.mrb[9].mxu1 }
0x143f   :  { %v1130_v49 = vadd.f32 %v1129_v48, %v3921_v47  ;;  %3447 = vrcp.f32 %v919_v61 }
0x1441   :  { %v3925_v50 = vcombine.low %v1128_v20, %v1130_v49 }
0x1449   :  { %v3448_v63 = vpop.eup %3447 }
0x144a   :  { %v923_v9 = vmul.f32 %v3448_v63, %v3786_v42  ;;  %v2574_v42 = vld [vmem:[%s4253_s1 + $0x40] sm:$0xff] }
0x144b   :  { %v3950_v31 = vpack.c.bf16 %v2575_v28, %v2574_v42 }
0x144d   :  { %v1289_v51 = vpop.f32.mrb[10].mxu1 }
0x144e   :  { %v1290_v52 = vadd.f32 %v1289_v51, %v3918_v46  ;;  %v1291_v53 = vpop.f32.mrb[11].mxu1 }
0x144f   :  { %v1292_v8 = vadd.f32 %v1291_v53, %v3921_v47 }
0x1451   :  { %v3929_v54 = vcombine.low %v1290_v52, %v1292_v8 }
0x145d   :  { %v1451_v55 = vpop.f32.mrb[12].mxu1 }
0x145e   :  { %v1452_v56 = vadd.f32 %v1451_v55, %v3918_v46  ;;  %v1453_v57 = vpop.f32.mrb[13].mxu1 }
0x145f   :  { %v1454_v58 = vadd.f32 %v1453_v57, %v3921_v47 }
0x1461   :  { %v3933_v59 = vcombine.low %v1452_v56, %v1454_v58 }
0x14ad   :  { %v926_v0 = vpop.permute.xlu1 %925 }
0x14ae   :  { %v928_v7 = vmul.f32 %v3448_v63, %v926_v0 }
0x14b0   :  { %930 = vrot.lane.b32.xlu0 %v928_v7, %s3519_s9 }
0x1522   :  { %v931_v12 = vpop.permute.xlu0 %930 }
0x1523   :  { %v933_v14 = vadd.f32 %v931_v12, %v923_v9 }
0x1525   :  { %3449 = vtanh.f32 %v933_v14 }
0x152f   :  { %v3450_v21 = vpop.eup %3449 }
0x1530   :  { %936 = vrot.lane.b32.xlu1 %v3450_v21, %s3519_s9 }
0x15a2   :  { %v937_v22 = vpop.permute.xlu1 %936 }
0x15a3   :  { %v939_v24 = vmul.f32 %v3448_v63, %v937_v22 }
0x15a5   :  { %941 = vrot.lane.b32.xlu1 %v939_v24, %s3521_s11  ;;  %945 = vrot.lane.b32.xlu0 %v939_v24, %s3520_s10 }
0x1617   :  { %v942_v25 = vpop.permute.xlu1 %941  ;;  %v946_v26 = vpop.permute.xlu0 %945 }
0x1618   :  { %944 = vst.msk [vmem:[#allocation2 + $0x1c] sm:$0xf] %vm144_vm9, %v942_v25 }
0x1619   :  { %948 = vst.msk [vmem:[#allocation2 - $0x4] sm:$0xf0] %vm150_vm8, %v946_v26 }
0x161f   :  { %v1543_v30 = vld [vmem:[#allocation2 + $0x1c] sm:$0xf] }
0x1620   :  { %v966_v29 = vld [vmem:[#allocation2] sm:$0xf]  ;;  %2573 = vmatmul.mubr.msk.f32.vlgmr.msra.gmra.mrb[14].mxu1 %vm41_vm6, %v1543_v30 }
0x1621   :  { %2566 = vmatmul.mubr.msk.f32.vlgmr.msra.gmra.mrb[8].mxu0 %vm41_vm6, %v966_v29  ;;  %3298 = vmatpush3.bf16.msra.mxu1 %v3950_v31 }
0x1622   :  { %3191 = vmatpush1.bf16.msra.mxu0 %v3804_v4  ;;  %1206 = vmatprep.mubr.f32.mxu0 %v3517_v5 }
0x1623   :  { %3193 = vmatprep.subr.bf16.mxu0 %v3815_v11  ;;  %3299 = vmatprep.subr.bf16.mxu1 %v3515_v1 }
0x1624   :  { %2943 = vmatprep.mubr.msk.f32.mxu1 %vm3516_vm0, %v3517_v5 }
0x1625   :  { %3301 = vmatpush3.bf16.msra.mxu1 %v3965_v34 }
0x1626   :  { %3195 = vmatpush1.bf16.msra.mxu0 %v3823_v15  ;;  %3302 = vmatprep.subr.bf16.mxu1 %v3515_v1 }
0x1627   :  { %3197 = vmatprep.subr.bf16.mxu0 %v3833_v23 }
0x1629   :  { %3304 = vmatpush3.bf16.msra.mxu1 %v3977_v36 }
0x162a   :  { %3199 = vmatpush1.bf16.msra.mxu0 %v3841_v27  ;;  %3305 = vmatprep.subr.bf16.mxu1 %v3515_v1 }
0x162b   :  { %3201 = vmatprep.subr.bf16.mxu0 %v3853_v6 }
0x162d   :  { %3307 = vmatpush3.bf16.msra.mxu1 %v3989_v38 }
0x162e   :  { %3203 = vmatpush1.bf16.msra.mxu0 %v3861_v33  ;;  %3320 = vmatprep.subr.bf16.mxu1 %v3515_v1 }
0x162f   :  { %3221 = vmatprep.subr.bf16.mxu0 %v3796_v62 }
0x1631   :  { %2568 = vmatmul.mubr.msk.f32.vlgmr.msra.gmra.mrb[10].mxu0 %vm41_vm6, %v1138_v2 }
0x1632   :  { %3223 = vmatpush1.bf16.msra.mxu0 %v3804_v4  ;;  %1368 = vmatprep.mubr.f32.mxu0 %v3517_v5 }
0x1633   :  { %3225 = vmatprep.subr.bf16.mxu0 %v3815_v11 }
0x1636   :  { %3227 = vmatpush1.bf16.msra.mxu0 %v3823_v15 }
0x1637   :  { %3229 = vmatprep.subr.bf16.mxu0 %v3833_v23 }
0x163a   :  { %3231 = vmatpush1.bf16.msra.mxu0 %v3841_v27 }
0x163b   :  { %3233 = vmatprep.subr.bf16.mxu0 %v3853_v6 }
0x163e   :  { %3235 = vmatpush1.bf16.msra.mxu0 %v3861_v33 }
0x163f   :  { %3253 = vmatprep.subr.bf16.mxu0 %v3796_v62  ;;  %v1462_v62 = vld [vmem:[#allocation2 + $0x18] sm:$0xf] }
0x1641   :  { %2570 = vmatmul.mubr.msk.f32.vlgmr.msra.gmra.mrb[12].mxu0 %vm41_vm6, %v1300_v3 }
0x1642   :  { %3255 = vmatpush1.bf16.msra.mxu0 %v3804_v4  ;;  %1530 = vmatprep.mubr.f32.mxu0 %v3517_v5 }
0x1643   :  { %3257 = vmatprep.subr.bf16.mxu0 %v3815_v11 }
0x1646   :  { %3259 = vmatpush1.bf16.msra.mxu0 %v3823_v15 }
0x1647   :  { %3261 = vmatprep.subr.bf16.mxu0 %v3833_v23 }
0x164a   :  { %3263 = vmatpush1.bf16.msra.mxu0 %v3841_v27 }
0x164b   :  { %3265 = vmatprep.subr.bf16.mxu0 %v3853_v6 }
0x164e   :  { %3267 = vmatpush1.bf16.msra.mxu0 %v3861_v33 }
0x164f   :  { %3284 = vmatprep.subr.bf16.mxu0 %v3515_v1 }
0x1651   :  { %2572 = vmatmul.mubr.msk.f32.vlgmr.msra.gmra.mrb[14].mxu0 %vm41_vm6, %v1462_v62 }
0x1652   :  { %3286 = vmatpush3.bf16.msra.mxu0 %v3950_v31  ;;  %2924 = vmatprep.mubr.msk.f32.mxu0 %vm3516_vm0, %v3517_v5 }
0x1653   :  { %3287 = vmatprep.subr.bf16.mxu0 %v3515_v1 }
0x1656   :  { %3289 = vmatpush3.bf16.msra.mxu0 %v3965_v34 }
0x1657   :  { %3290 = vmatprep.subr.bf16.mxu0 %v3515_v1 }
0x165a   :  { %3292 = vmatpush3.bf16.msra.mxu0 %v3977_v36 }
0x165b   :  { %3293 = vmatprep.subr.bf16.mxu0 %v3515_v1 }
0x165e   :  { %3295 = vmatpush3.bf16.msra.mxu0 %v3989_v38 }
0x165f   :  { %3308 = vmatprep.subr.bf16.mxu0 %v3515_v1 }
0x1661   :  { %2925 = vmatmul.mubr.msk.f32.vlgmr.msra.gmra.mrb[16].mxu0 %vm41_vm6, %v3604_v18 }
0x1662   :  { %3310 = vmatpush3.bf16.msra.mxu0 %v3950_v31  ;;  %2962 = vmatprep.mubr.msk.f32.mxu0 %vm3516_vm0, %v3517_v5 }
0x1663   :  { %3311 = vmatprep.subr.bf16.mxu0 %v3515_v1 }
0x1666   :  { %3313 = vmatpush3.bf16.msra.mxu0 %v3965_v34 }
0x1667   :  { %3314 = vmatprep.subr.bf16.mxu0 %v3515_v1 }
0x166a   :  { %3316 = vmatpush3.bf16.msra.mxu0 %v3977_v36 }
0x166b   :  { %3317 = vmatprep.subr.bf16.mxu0 %v3515_v1 }
0x166e   :  { %3319 = vmatpush3.bf16.msra.mxu0 %v3989_v38 }
0x166f   :  { %3332 = vmatprep.subr.bf16.mxu0 %v3515_v1 }
0x16f3   :  { %v1613_v4 = vpop.f32.mrb[14].mxu1 }
0x16f4   :  { %v1047_v18 = vpop.f32.mrb[8].mxu0  ;;  %v1614_v15 = vadd.f32 %v1613_v4, %v3918_v46  ;;  %v1615_v27 = vpop.f32.mrb[15].mxu1 }
0x16f5   :  { %v1048_v11 = vadd.f32 %v1047_v18, %v3918_v46  ;;  %v1049_v23 = vpop.f32.mrb[9].mxu0  ;;  %v1616_v33 = vadd.f32 %v1615_v27, %v3921_v47 }
0x16f6   :  { %v1050_v6 = vadd.f32 %v1049_v23, %v3921_v47 }
0x16f7   :  { %v1620_v40 = vcombine.low %v1614_v15, %v1616_v33 }
0x16f8   :  { %v1054_v39 = vcombine.low %v1048_v11, %v1050_v6 }
0x16fa   :  { %v1635_v41 = vsel %vm38_vm7, %v1054_v39, %v1620_v40  ;;  %v4044_v44 = vsel %vm38_vm7, %v1620_v40, %v1054_v39 }
0x1704   :  { %v1208_v45 = vpop.f32.mrb[10].mxu0 }
0x1705   :  { %v1209_v19 = vadd.f32 %v1208_v45, %v3918_v46  ;;  %v1210_v20 = vpop.f32.mrb[11].mxu0 }
0x1706   :  { %v1211_v48 = vadd.f32 %v1210_v20, %v3921_v47 }
0x1708   :  { %v1215_v49 = vcombine.low %v1209_v19, %v1211_v48 }
0x170a   :  { %v4050_v51 = vsel %vm38_vm7, %v1215_v49, %v3933_v59  ;;  %v4054_v52 = vsel %vm38_vm7, %v3933_v59, %v1215_v49 }
0x1714   :  { %v1370_v53 = vpop.f32.mrb[12].mxu0 }
0x1715   :  { %v1371_v8 = vadd.f32 %v1370_v53, %v3918_v46  ;;  %v1372_v55 = vpop.f32.mrb[13].mxu0 }
0x1716   :  { %v1373_v56 = vadd.f32 %v1372_v55, %v3921_v47 }
0x1718   :  { %v1377_v57 = vcombine.low %v1371_v8, %v1373_v56 }
0x171a   :  { %v4060_v58 = vsel %vm38_vm7, %v3929_v54, %v1377_v57  ;;  %v4064_v43 = vsel %vm38_vm7, %v1377_v57, %v3929_v54 }
0x1724   :  { %v1532_v60 = vpop.f32.mrb[14].mxu0 }
0x1725   :  { %v1533_v61 = vadd.f32 %v1532_v60, %v3918_v46  ;;  %v1534_v59 = vpop.f32.mrb[15].mxu0 }
0x1726   :  { %v1535_v63 = vadd.f32 %v1534_v59, %v3921_v47 }
0x1728   :  { %v1539_v0 = vcombine.low %v1533_v61, %v1535_v63 }
0x172a   :  { %v1743_v7 = vsel %vm38_vm7, %v3925_v50, %v1539_v0  ;;  %v4072_v9 = vsel %vm38_vm7, %v1539_v0, %v3925_v50 }
0x1734   :  { %v1702_v12 = vpop.f32.mrb[16].mxu0 }
0x1735   :  { %v1706_v14 = vadd.f32 %v1702_v12, %v1635_v41  ;;  %v2926_v21 = vpop.f32.mrb[17].mxu0 }
0x1737   :  { %3451 = vtanh.f32 %v1706_v14  ;;  %v2583_v22 = vmul.f32 -1.442695, %v1706_v14 }
0x1739   :  { %3453 = vpow2.f32 %v2583_v22 }
0x1741   :  { %v3452_v54 = vpop.eup %3451 }
0x1742   :  { %1716 = vrot.lane.b32.xlu0 %v3452_v54, %s3519_s9 }
0x1743   :  { %v3454_v46 = vpop.eup %3453 }
0x1744   :  { %v1710_v24 = vadd.f32 1.0, %v3454_v46 }
0x1746   :  { %3455 = vrcp.f32 %v1710_v24 }
0x1750   :  { %v3456_v47 = vpop.eup %3455 }
0x1751   :  { %v1714_v42 = vmul.f32 0.0, %v3456_v47 }
0x17b4   :  { %v1717_v25 = vpop.permute.xlu0 %1716 }
0x17b5   :  { %v1719_v26 = vmul.f32 %v3456_v47, %v1717_v25 }
0x17b7   :  { %1721 = vrot.lane.b32.xlu1 %v1719_v26, %s3519_s9 }
0x1829   :  { %v1722_v50 = vpop.permute.xlu1 %1721 }
0x182a   :  { %v1724_v28 = vadd.f32 %v1722_v50, %v1714_v42 }
0x182c   :  { %3457 = vtanh.f32 %v1724_v28 }
0x1836   :  { %v3458_v29 = vpop.eup %3457 }
0x1837   :  { %1727 = vrot.lane.b32.xlu0 %v3458_v29, %s3519_s9 }
0x18a9   :  { %v1728_v30 = vpop.permute.xlu0 %1727 }
0x18aa   :  { %v1730_v32 = vmul.f32 %v3456_v47, %v1728_v30 }
0x18ac   :  { %1736 = vrot.lane.b32.xlu0 %v1730_v32, %s3520_s10  ;;  %1732 = vrot.lane.b32.xlu1 %v1730_v32, %s3521_s11 }
0x191e   :  { %v1737_v10 = vpop.permute.xlu0 %1736  ;;  %v1733_v35 = vpop.permute.xlu1 %1732 }
0x191f   :  { %2584 = vst.msk [vmem:[%s4257_s4 + $0x18] sm:$0xf0] %vm150_vm8, %v1737_v10  ;;  %v1744_v13 = vsel %vm157_vm10, %v1733_v35, %v1737_v10 }
0x1920   :  { %1735 = vst.msk [vmem:[%s4257_s4] sm:$0xf] %vm144_vm9, %v1733_v35  ;;  %v1745_v37 = vmul.f32 %v3598_v17, %v1744_v13 }
0x1922   :  { %2944 = vmatmul.mubr.msk.f32.vlgmr.msra.gmra.mrb[16].mxu1 %vm41_vm6, %v1745_v37 }
0x1923   :  { %3322 = vmatpush3.bf16.msra.mxu1 %v3950_v31  ;;  %2981 = vmatprep.mubr.msk.f32.mxu1 %vm3516_vm0, %v3517_v5 }
0x1924   :  { %3323 = vmatprep.subr.bf16.mxu1 %v3515_v1 }
0x1927   :  { %3325 = vmatpush3.bf16.msra.mxu1 %v3965_v34 }
0x1928   :  { %3326 = vmatprep.subr.bf16.mxu1 %v3515_v1 }
0x192b   :  { %3328 = vmatpush3.bf16.msra.mxu1 %v3977_v36 }
0x192c   :  { %3329 = vmatprep.subr.bf16.mxu1 %v3515_v1 }
0x192f   :  { %3331 = vmatpush3.bf16.msra.mxu1 %v3989_v38 }
0x1930   :  { %3344 = vmatprep.subr.bf16.mxu1 %v3515_v1 }
0x19f5   :  { %v1815_v16 = vpop.f32.mrb[16].mxu1 }
0x19f6   :  { %v1819_v2 = vadd.f32 %v1815_v16, %v1743_v7  ;;  %v2945_v3 = vpop.f32.mrb[17].mxu1 }
0x19f8   :  { %3459 = vtanh.f32 %v1819_v2  ;;  %v2586_v18 = vmul.f32 -1.442695, %v1819_v2 }
0x19fa   :  { %3461 = vpow2.f32 %v2586_v18 }
0x1a02   :  { %v3460_v62 = vpop.eup %3459 }
0x1a03   :  { %1829 = vrot.lane.b32.xlu1 %v3460_v62, %s3519_s9 }
0x1a04   :  { %v3462_v4 = vpop.eup %3461 }
0x1a05   :  { %v1823_v11 = vadd.f32 1.0, %v3462_v4 }
0x1a07   :  { %3463 = vrcp.f32 %v1823_v11 }
0x1a11   :  { %v3464_v15 = vpop.eup %3463 }
0x1a12   :  { %v1827_v6 = vmul.f32 %v3464_v15, %v1724_v28 }
0x1a75   :  { %v1830_v23 = vpop.permute.xlu1 %1829 }
0x1a76   :  { %v1832_v27 = vmul.f32 %v3464_v15, %v1830_v23 }
0x1a78   :  { %1834 = vrot.lane.b32.xlu0 %v1832_v27, %s3519_s9 }
0x1aea   :  { %v1835_v33 = vpop.permute.xlu0 %1834 }
0x1aeb   :  { %v1837_v39 = vadd.f32 %v1835_v33, %v1827_v6 }
0x1aed   :  { %3465 = vtanh.f32 %v1837_v39 }
0x1af7   :  { %v3466_v40 = vpop.eup %3465 }
0x1af8   :  { %1840 = vrot.lane.b32.xlu1 %v3466_v40, %s3519_s9 }
0x1b6a   :  { %v1841_v41 = vpop.permute.xlu1 %1840 }
0x1b6b   :  { %v1843_v45 = vmul.f32 %v3464_v15, %v1841_v41 }
0x1b6d   :  { %1850 = vrot.lane.b32.xlu1 %v1843_v45, %s3520_s10  ;;  %1845 = vrot.lane.b32.xlu0 %v1843_v45, %s3521_s11 }
0x1bdf   :  { %v1851_v19 = vpop.permute.xlu1 %1850  ;;  %v1846_v20 = vpop.permute.xlu0 %1845 }
0x1be0   :  { %2588 = vst.msk [vmem:[%s4257_s4 + $0x14] sm:$0xf0] %vm150_vm8, %v1851_v19  ;;  %v1858_v48 = vsel %vm157_vm10, %v1846_v20, %v1851_v19 }
0x1be1   :  { %2587 = vst.msk [vmem:[%s4257_s4 + $0x4] sm:$0xf] %vm144_vm9, %v1846_v20  ;;  %v1859_v49 = vmul.f32 %v3598_v17, %v1858_v48 }
0x1be3   :  { %2963 = vmatmul.mubr.msk.f32.vlgmr.msra.gmra.mrb[18].mxu0 %vm41_vm6, %v1859_v49 }
0x1be4   :  { %3334 = vmatpush3.bf16.msra.mxu0 %v3950_v31  ;;  %3000 = vmatprep.mubr.msk.f32.mxu0 %vm3516_vm0, %v3517_v5 }
0x1be5   :  { %3335 = vmatprep.subr.bf16.mxu0 %v3515_v1 }
0x1be8   :  { %3337 = vmatpush3.bf16.msra.mxu0 %v3965_v34 }
0x1be9   :  { %3338 = vmatprep.subr.bf16.mxu0 %v3515_v1 }
0x1bec   :  { %3340 = vmatpush3.bf16.msra.mxu0 %v3977_v36 }
0x1bed   :  { %3341 = vmatprep.subr.bf16.mxu0 %v3515_v1 }
0x1bf0   :  { %3343 = vmatpush3.bf16.msra.mxu0 %v3989_v38 }
0x1bf1   :  { %3356 = vmatprep.subr.bf16.mxu0 %v3515_v1 }
0x1cb6   :  { %v1929_v53 = vpop.f32.mrb[18].mxu0 }
0x1cb7   :  { %v1933_v8 = vadd.f32 %v1929_v53, %v4050_v51  ;;  %v2964_v55 = vpop.f32.mrb[19].mxu0 }
0x1cb9   :  { %3467 = vtanh.f32 %v1933_v8  ;;  %v2590_v57 = vmul.f32 -1.442695, %v1933_v8 }
0x1cbb   :  { %3469 = vpow2.f32 %v2590_v57 }
0x1cc3   :  { %v3468_v56 = vpop.eup %3467 }
0x1cc4   :  { %1943 = vrot.lane.b32.xlu0 %v3468_v56, %s3519_s9 }
0x1cc5   :  { %v3470_v60 = vpop.eup %3469 }
0x1cc6   :  { %v1937_v61 = vadd.f32 1.0, %v3470_v60 }
0x1cc8   :  { %3471 = vrcp.f32 %v1937_v61 }
0x1cd2   :  { %v3472_v59 = vpop.eup %3471 }
0x1cd3   :  { %v1941_v7 = vmul.f32 %v3472_v59, %v1837_v39 }
0x1d36   :  { %v1944_v63 = vpop.permute.xlu0 %1943 }
0x1d37   :  { %v1946_v0 = vmul.f32 %v3472_v59, %v1944_v63 }
0x1d39   :  { %1948 = vrot.lane.b32.xlu1 %v1946_v0, %s3519_s9 }
0x1dab   :  { %v1949_v12 = vpop.permute.xlu1 %1948 }
0x1dac   :  { %v1951_v14 = vadd.f32 %v1949_v12, %v1941_v7 }
0x1dae   :  { %3473 = vtanh.f32 %v1951_v14 }
0x1db8   :  { %v3474_v51 = vpop.eup %3473 }
0x1db9   :  { %1954 = vrot.lane.b32.xlu0 %v3474_v51, %s3519_s9 }
0x1e2b   :  { %v1955_v21 = vpop.permute.xlu0 %1954 }
0x1e2c   :  { %v1957_v54 = vmul.f32 %v3472_v59, %v1955_v21 }
0x1e2e   :  { %1964 = vrot.lane.b32.xlu0 %v1957_v54, %s3520_s10  ;;  %1959 = vrot.lane.b32.xlu1 %v1957_v54, %s3521_s11 }
0x1ea0   :  { %v1965_v22 = vpop.permute.xlu0 %1964  ;;  %v1960_v46 = vpop.permute.xlu1 %1959 }
0x1ea1   :  { %2592 = vst.msk [vmem:[%s4257_s4 + $0x10] sm:$0xf0] %vm150_vm8, %v1965_v22  ;;  %v1972_v24 = vsel %vm157_vm10, %v1960_v46, %v1965_v22 }
0x1ea2   :  { %2591 = vst.msk [vmem:[%s4257_s4 + $0x8] sm:$0xf] %vm144_vm9, %v1960_v46  ;;  %v1973_v47 = vmul.f32 %v3598_v17, %v1972_v24 }
0x1ea4   :  { %2982 = vmatmul.mubr.msk.f32.vlgmr.msra.gmra.mrb[18].mxu1 %vm41_vm6, %v1973_v47 }
0x1ea5   :  { %3346 = vmatpush3.bf16.msra.mxu1 %v3950_v31  ;;  %3019 = vmatprep.mubr.msk.f32.mxu1 %vm3516_vm0, %v3517_v5 }
0x1ea6   :  { %3347 = vmatprep.subr.bf16.mxu1 %v3515_v1 }
0x1ea9   :  { %3349 = vmatpush3.bf16.msra.mxu1 %v3965_v34 }
0x1eaa   :  { %3350 = vmatprep.subr.bf16.mxu1 %v3515_v1 }
0x1ead   :  { %3352 = vmatpush3.bf16.msra.mxu1 %v3977_v36 }
0x1eae   :  { %3353 = vmatprep.subr.bf16.mxu1 %v3515_v1 }
0x1eb1   :  { %3355 = vmatpush3.bf16.msra.mxu1 %v3989_v38 }
0x1eb2   :  { %3368 = vmatprep.subr.bf16.mxu1 %v3515_v1 }
0x1f77   :  { %v2043_v25 = vpop.f32.mrb[18].mxu1 }
0x1f78   :  { %v2047_v26 = vadd.f32 %v2043_v25, %v4060_v58  ;;  %v2983_v42 = vpop.f32.mrb[19].mxu1 }
0x1f7a   :  { %3475 = vtanh.f32 %v2047_v26  ;;  %v2594_v28 = vmul.f32 -1.442695, %v2047_v26 }
0x1f7c   :  { %3477 = vpow2.f32 %v2594_v28 }
0x1f84   :  { %v3476_v50 = vpop.eup %3475 }
0x1f85   :  { %2057 = vrot.lane.b32.xlu1 %v3476_v50, %s3519_s9 }
0x1f86   :  { %v3478_v29 = vpop.eup %3477 }
0x1f87   :  { %v2051_v30 = vadd.f32 1.0, %v3478_v29 }
0x1f89   :  { %3479 = vrcp.f32 %v2051_v30 }
0x1f93   :  { %v3480_v32 = vpop.eup %3479 }
0x1f94   :  { %v2055_v13 = vmul.f32 %v3480_v32, %v1951_v14 }
0x1ff7   :  { %v2058_v10 = vpop.permute.xlu1 %2057 }
0x1ff8   :  { %v2060_v35 = vmul.f32 %v3480_v32, %v2058_v10 }
0x1ffa   :  { %2062 = vrot.lane.b32.xlu0 %v2060_v35, %s3519_s9 }
0x206c   :  { %v2063_v37 = vpop.permute.xlu0 %2062 }
0x206d   :  { %v2065_v16 = vadd.f32 %v2063_v37, %v2055_v13 }
0x206f   :  { %3481 = vtanh.f32 %v2065_v16 }
0x2079   :  { %v3482_v58 = vpop.eup %3481 }
0x207a   :  { %2068 = vrot.lane.b32.xlu1 %v3482_v58, %s3519_s9 }
0x20ec   :  { %v2069_v2 = vpop.permute.xlu1 %2068 }
0x20ed   :  { %v2071_v3 = vmul.f32 %v3480_v32, %v2069_v2 }
0x20ef   :  { %2078 = vrot.lane.b32.xlu1 %v2071_v3, %s3520_s10  ;;  %2073 = vrot.lane.b32.xlu0 %v2071_v3, %s3521_s11 }
0x2161   :  { %v2079_v62 = vpop.permute.xlu1 %2078  ;;  %v2074_v18 = vpop.permute.xlu0 %2073 }
0x2162   :  { %2596 = vst.msk [vmem:[%s4257_s4 + $0xc] sm:$0xf0] %vm150_vm8, %v2079_v62  ;;  %v2086_v4 = vsel %vm157_vm10, %v2074_v18, %v2079_v62 }
0x2163   :  { %2595 = vst.msk [vmem:[%s4257_s4 + $0xc] sm:$0xf] %vm144_vm9, %v2074_v18  ;;  %v2087_v11 = vmul.f32 %v3598_v17, %v2086_v4 }
0x2165   :  { %3001 = vmatmul.mubr.msk.f32.vlgmr.msra.gmra.mrb[20].mxu0 %vm41_vm6, %v2087_v11 }
0x2166   :  { %3358 = vmatpush3.bf16.msra.mxu0 %v3950_v31  ;;  %3038 = vmatprep.mubr.msk.f32.mxu0 %vm3516_vm0, %v3517_v5 }
0x2167   :  { %3359 = vmatprep.subr.bf16.mxu0 %v3515_v1 }
0x216a   :  { %3361 = vmatpush3.bf16.msra.mxu0 %v3965_v34 }
0x216b   :  { %3362 = vmatprep.subr.bf16.mxu0 %v3515_v1 }
0x216e   :  { %3364 = vmatpush3.bf16.msra.mxu0 %v3977_v36 }
0x216f   :  { %3365 = vmatprep.subr.bf16.mxu0 %v3515_v1 }
0x2172   :  { %3367 = vmatpush3.bf16.msra.mxu0 %v3989_v38 }
0x2238   :  { %v2157_v15 = vpop.f32.mrb[20].mxu0 }
0x2239   :  { %v2161_v23 = vadd.f32 %v2157_v15, %v4064_v43  ;;  %v3002_v27 = vpop.f32.mrb[21].mxu0 }
0x223b   :  { %3483 = vtanh.f32 %v2161_v23  ;;  %v2598_v33 = vmul.f32 -1.442695, %v2161_v23 }
0x223d   :  { %3485 = vpow2.f32 %v2598_v33 }
0x2245   :  { %v3484_v6 = vpop.eup %3483 }
0x2246   :  { %2171 = vrot.lane.b32.xlu0 %v3484_v6, %s3519_s9 }
0x2247   :  { %v3486_v39 = vpop.eup %3485 }
0x2248   :  { %v2165_v40 = vadd.f32 1.0, %v3486_v39 }
0x224a   :  { %3487 = vrcp.f32 %v2165_v40 }
0x2254   :  { %v3488_v41 = vpop.eup %3487 }
0x2255   :  { %v2169_v20 = vmul.f32 %v3488_v41, %v2065_v16 }
0x22b8   :  { %v2172_v45 = vpop.permute.xlu0 %2171 }
0x22b9   :  { %v2174_v19 = vmul.f32 %v3488_v41, %v2172_v45 }
0x22bb   :  { %2176 = vrot.lane.b32.xlu1 %v2174_v19, %s3519_s9 }
0x232d   :  { %v2177_v48 = vpop.permute.xlu1 %2176 }
0x232e   :  { %v2179_v49 = vadd.f32 %v2177_v48, %v2169_v20 }
0x2330   :  { %3489 = vtanh.f32 %v2179_v49 }
0x233a   :  { %v3490_v43 = vpop.eup %3489 }
0x233b   :  { %2182 = vrot.lane.b32.xlu0 %v3490_v43, %s3519_s9 }
0x23ad   :  { %v2183_v53 = vpop.permute.xlu0 %2182 }
0x23ae   :  { %v2185_v8 = vmul.f32 %v3488_v41, %v2183_v53 }
0x23b0   :  { %2191 = vrot.lane.b32.xlu0 %v2185_v8, %s3520_s10  ;;  %2187 = vrot.lane.b32.xlu1 %v2185_v8, %s3521_s11 }
0x2422   :  { %v2192_v55 = vpop.permute.xlu0 %2191  ;;  %v2188_v56 = vpop.permute.xlu1 %2187 }
0x2423   :  { %2600 = vst.msk [vmem:[%s4257_s4 + $0x8] sm:$0xf0] %vm150_vm8, %v2192_v55  ;;  %v2198_v57 = vsel %vm157_vm10, %v2188_v56, %v2192_v55 }
0x2424   :  { %2599 = vst.msk [vmem:[%s4257_s4 + $0x10] sm:$0xf] %vm144_vm9, %v2188_v56  ;;  %v2199_v60 = vmul.f32 %v3598_v17, %v2198_v57 }
0x2426   :  { %3020 = vmatmul.mubr.msk.f32.vlgmr.msra.gmra.mrb[20].mxu1 %vm41_vm6, %v2199_v60 }
0x2427   :  { %3370 = vmatpush3.bf16.msra.mxu1 %v3950_v31  ;;  %3057 = vmatprep.mubr.msk.f32.mxu1 %vm3516_vm0, %v3517_v5 }
0x2428   :  { %3371 = vmatprep.subr.bf16.mxu1 %v3515_v1 }
0x242b   :  { %3373 = vmatpush3.bf16.msra.mxu1 %v3965_v34 }
0x242c   :  { %3374 = vmatprep.subr.bf16.mxu1 %v3515_v1 }
0x242f   :  { %3376 = vmatpush3.bf16.msra.mxu1 %v3977_v36 }
0x2430   :  { %3377 = vmatprep.subr.bf16.mxu1 %v3515_v1 }
0x2433   :  { %3379 = vmatpush3.bf16.msra.mxu1 %v3989_v38 }
0x24f9   :  { %v2269_v61 = vpop.f32.mrb[20].mxu1 }
0x24fa   :  { %v2273_v59 = vadd.f32 %v2269_v61, %v4054_v52  ;;  %v3021_v63 = vpop.f32.mrb[21].mxu1 }
0x24fc   :  { %3491 = vtanh.f32 %v2273_v59  ;;  %v2602_v5 = vmul.f32 -1.442695, %v2273_v59 }
0x24fe   :  { %3493 = vpow2.f32 %v2602_v5 }
0x2506   :  { %v3492_v31 = vpop.eup %3491 }
0x2507   :  { %2283 = vrot.lane.b32.xlu1 %v3492_v31, %s3519_s9 }
0x2508   :  { %v3494_v0 = vpop.eup %3493 }
0x2509   :  { %v2277_v34 = vadd.f32 1.0, %v3494_v0 }
0x250b   :  { %3495 = vrcp.f32 %v2277_v34 }
0x2515   :  { %v3496_v7 = vpop.eup %3495 }
0x2516   :  { %v2281_v1 = vmul.f32 %v3496_v7, %v2179_v49 }
0x2579   :  { %v2284_v12 = vpop.permute.xlu1 %2283 }
0x257a   :  { %v2286_v36 = vmul.f32 %v3496_v7, %v2284_v12 }
0x257c   :  { %2288 = vrot.lane.b32.xlu0 %v2286_v36, %s3519_s9 }
0x25ee   :  { %v2289_v38 = vpop.permute.xlu0 %2288 }
0x25ef   :  { %v2291_v14 = vadd.f32 %v2289_v38, %v2281_v1 }
0x25f1   :  { %3497 = vtanh.f32 %v2291_v14 }
0x25fb   :  { %v3498_v52 = vpop.eup %3497 }
0x25fc   :  { %2294 = vrot.lane.b32.xlu1 %v3498_v52, %s3519_s9 }
0x266e   :  { %v2295_v51 = vpop.permute.xlu1 %2294 }
0x266f   :  { %v2297_v21 = vmul.f32 %v3496_v7, %v2295_v51 }
0x2671   :  { %2303 = vrot.lane.b32.xlu1 %v2297_v21, %s3520_s10  ;;  %2299 = vrot.lane.b32.xlu0 %v2297_v21, %s3521_s11 }
0x26e3   :  { %v2304_v54 = vpop.permute.xlu1 %2303  ;;  %v2300_v22 = vpop.permute.xlu0 %2299 }
0x26e4   :  { %2604 = vst.msk [vmem:[%s4257_s4 + $0x4] sm:$0xf0] %vm150_vm8, %v2304_v54  ;;  %v2310_v46 = vsel %vm157_vm10, %v2300_v22, %v2304_v54 }
0x26e5   :  { %2603 = vst.msk [vmem:[%s4257_s4 + $0x14] sm:$0xf] %vm144_vm9, %v2300_v22  ;;  %v2311_v24 = vmul.f32 %v3598_v17, %v2310_v46 }
0x26e7   :  { %3039 = vmatmul.mubr.msk.f32.vlgmr.msra.gmra.mrb[22].mxu0 %vm41_vm6, %v2311_v24 }
0x27ba   :  { %v2381_v47 = vpop.f32.mrb[22].mxu0 }
0x27bb   :  { %v2385_v25 = vadd.f32 %v2381_v47, %v4072_v9  ;;  %v3040_v26 = vpop.f32.mrb[23].mxu0 }
0x27bd   :  { %3499 = vtanh.f32 %v2385_v25  ;;  %v2606_v50 = vmul.f32 -1.442695, %v2385_v25 }
0x27bf   :  { %3501 = vpow2.f32 %v2606_v50 }
0x27c7   :  { %v3500_v42 = vpop.eup %3499 }
0x27c8   :  { %2395 = vrot.lane.b32.xlu0 %v3500_v42, %s3519_s9 }
0x27c9   :  { %v3502_v28 = vpop.eup %3501 }
0x27ca   :  { %v2389_v29 = vadd.f32 1.0, %v3502_v28 }
0x27cc   :  { %3503 = vrcp.f32 %v2389_v29 }
0x27d6   :  { %v3504_v30 = vpop.eup %3503 }
0x27d7   :  { %v2393_v35 = vmul.f32 %v3504_v30, %v2291_v14 }
0x283a   :  { %v2396_v32 = vpop.permute.xlu0 %2395 }
0x283b   :  { %v2398_v10 = vmul.f32 %v3504_v30, %v2396_v32 }
0x283d   :  { %2400 = vrot.lane.b32.xlu1 %v2398_v10, %s3519_s9 }
0x28af   :  { %v2401_v13 = vpop.permute.xlu1 %2400 }
0x28b0   :  { %v2403_v37 = vadd.f32 %v2401_v13, %v2393_v35 }
0x28b2   :  { %3505 = vtanh.f32 %v2403_v37 }
0x28bc   :  { %v3506_v9 = vpop.eup %3505 }
0x28bd   :  { %2406 = vrot.lane.b32.xlu0 %v3506_v9, %s3519_s9 }
0x292f   :  { %v2407_v16 = vpop.permute.xlu0 %2406 }
0x2930   :  { %v2409_v58 = vmul.f32 %v3504_v30, %v2407_v16 }
0x2932   :  { %2415 = vrot.lane.b32.xlu0 %v2409_v58, %s3520_s10  ;;  %2411 = vrot.lane.b32.xlu1 %v2409_v58, %s3521_s11 }
0x29a4   :  { %v2416_v2 = vpop.permute.xlu0 %2415  ;;  %v2412_v3 = vpop.permute.xlu1 %2411 }
0x29a5   :  { %2608 = vst.msk [vmem:[%s4257_s4] sm:$0xf0] %vm150_vm8, %v2416_v2  ;;  %v2422_v62 = vsel %vm157_vm10, %v2412_v3, %v2416_v2 }
0x29a6   :  { %2607 = vst.msk [vmem:[%s4257_s4 + $0x18] sm:$0xf] %vm144_vm9, %v2412_v3  ;;  %v2423_v18 = vmul.f32 %v3598_v17, %v2422_v62 }
0x29a8   :  { %3058 = vmatmul.mubr.msk.f32.vlgmr.msra.gmra.mrb[22].mxu1 %vm41_vm6, %v2423_v18 }
0x2a7b   :  { %v2493_v4 = vpop.f32.mrb[22].mxu1 }
0x2a7c   :  { %v2497_v11 = vadd.f32 %v2493_v4, %v4044_v44  ;;  %v3059_v15 = vpop.f32.mrb[23].mxu1 }
0x2a7e   :  { %3507 = vtanh.f32 %v2497_v11  ;;  %v2610_v27 = vmul.f32 -1.442695, %v2497_v11 }
0x2a80   :  { %3509 = vpow2.f32 %v2610_v27 }
0x2a88   :  { %v3508_v23 = vpop.eup %3507 }
0x2a89   :  { %2507 = vrot.lane.b32.xlu1 %v3508_v23, %s3519_s9 }
0x2a8a   :  { %v3510_v6 = vpop.eup %3509 }
0x2a8b   :  { %v2501_v33 = vadd.f32 1.0, %v3510_v6 }
0x2a8d   :  { %3511 = vrcp.f32 %v2501_v33 }
0x2a97   :  { %v3512_v39 = vpop.eup %3511 }
0x2a98   :  { %v2505_v17 = vmul.f32 %v3512_v39, %v2403_v37 }
0x2afb   :  { %v2508_v40 = vpop.permute.xlu1 %2507 }
0x2afc   :  { %v2510_v41 = vmul.f32 %v3512_v39, %v2508_v40 }
0x2afe   :  { %2512 = vrot.lane.b32.xlu0 %v2510_v41, %s3519_s9 }
0x2b70   :  { %v2513_v45 = vpop.permute.xlu0 %2512 }
0x2b71   :  { %v2515_v19 = vadd.f32 %v2513_v45, %v2505_v17 }
0x2b73   :  { %3513 = vtanh.f32 %v2515_v19 }
0x2b7d   :  { %v3514_v44 = vpop.eup %3513 }
0x2b7e   :  { %2518 = vrot.lane.b32.xlu1 %v3514_v44, %s3519_s9 }
0x2bf0   :  { %v2519_v20 = vpop.permute.xlu1 %2518 }
0x2bf1   :  { %v2521_v48 = vmul.f32 %v3512_v39, %v2519_v20 }
0x2bf3   :  { %2527 = vrot.lane.b32.xlu1 %v2521_v48, %s3520_s10  ;;  %2523 = vrot.lane.b32.xlu0 %v2521_v48, %s3521_s11 }
0x2c65   :  { %v2528_v49 = vpop.permute.xlu1 %2527  ;;  %v2524_v43 = vpop.permute.xlu0 %2523 }
0x2c66   :  { %2530 = vst.msk [vmem:[%s4257_s4 - $0x4] sm:$0xf0] %vm150_vm8, %v2528_v49 }
0x2c67   :  { %2611 = vst.msk [vmem:[%s4257_s4 + $0x1c] sm:$0xf] %vm144_vm9, %v2524_v43 }

</bundles_post_ra>
